<compile_context>
chip_gen: v7x
topology: tpu7x:2x2x1
jax: 0.10.0
libtpu: 0.0.40
codegen_flags: <defaults>
</compile_context>

<pallas_src>
import jax
import jax.numpy as jnp
from jax import lax
from jax.experimental import pallas as pl
from jax.experimental.pallas import tpu as pltpu

EPS = 1e-5                              # nn.BatchNorm2d default eps
_VMEM_LIMIT = 32 * 1024 * 1024          # fits every generation incl. v7x


def _cparams():
    return pltpu.CompilerParams(dimension_semantics=("parallel",),
                                vmem_limit_bytes=_VMEM_LIMIT)


# --------------------------- stage 1: conv1 (1x1) ---------------------------
def _conv1_kernel(x_ref, w1_ref, y_ref, s_ref, q_ref):
    """1x1 conv as a matmul (bf16 in / f32 acc) + per-tile BN partial stats."""
    y = jnp.dot(x_ref[...].astype(jnp.bfloat16), w1_ref[...],
                preferred_element_type=jnp.float32)              # (TM, P) f32
    y_ref[...] = y
    s_ref[...] = jnp.broadcast_to(jnp.sum(y, axis=0, keepdims=True), s_ref.shape)
    q_ref[...] = jnp.broadcast_to(jnp.sum(y * y, axis=0, keepdims=True), q_ref.shape)


# ------------------- stage 2: bn1 + relu + conv2 (3x3, im2col) --------------
def _bn_relu_conv3x3_kernel(y1_ref, sc_ref, sh_ref, w2_ref,
                            y2_ref, s_ref, q_ref, pad_ref, col_ref):
    _, H, W, P = y1_ref.shape
    # bn1 (global train-mode stats folded into scale/shift) + ReLU, in f32.
    a = jnp.maximum(y1_ref[...].reshape(H * W, P) * sc_ref[...] + sh_ref[...], 0.0)

    # Zero ONLY the halo of the padded buffer; the interior is fully
    # overwritten every grid step (scratch persists across iterations).
    pad_ref[0:1] = jnp.zeros((1, W + 2, P), jnp.float32)
    pad_ref[H + 1:H + 2] = jnp.zeros((1, W + 2, P), jnp.float32)
    pad_ref[:, 0:1] = jnp.zeros((H + 2, 1, P), jnp.float32)
    pad_ref[:, W + 1:W + 2] = jnp.zeros((H + 2, 1, P), jnp.float32)
    pad_ref[1:H + 1, 1:W + 1, :] = a.reshape(H, W, P)

    # im2col: gather the 9 taps into a (H*W, 9*P) scratch -> ONE matmul
    # (K = 9*P) instead of nine drain-dominated K=P matmuls.
    for t in range(9):
        dy, dx = t // 3, t % 3
        col_ref[:, t * P:(t + 1) * P] = (
            pad_ref[dy:dy + H, dx:dx + W, :].reshape(H * W, P))
    y = jnp.dot(col_ref[...].astype(jnp.bfloat16), w2_ref[...],
                preferred_element_type=jnp.float32)              # (H*W, P) f32
    y2_ref[...] = y.reshape(1, H, W, P)
    s_ref[...] = jnp.broadcast_to(jnp.sum(y, axis=0, keepdims=True), s_ref.shape)
    q_ref[...] = jnp.broadcast_to(jnp.sum(y * y, axis=0, keepdims=True), q_ref.shape)


# ------------------- stage 3: bn2 + relu + conv3 (1x1) ----------------------
def _bn_relu_conv_kernel(y_ref, sc_ref, sh_ref, w_ref, o_ref, s_ref, q_ref):
    a = jnp.maximum(y_ref[...] * sc_ref[...] + sh_ref[...], 0.0)     # f32
    y = jnp.dot(a.astype(jnp.bfloat16), w_ref[...],
                preferred_element_type=jnp.float32)              # (TM, C4) f32
    o_ref[...] = y
    s_ref[...] = jnp.broadcast_to(jnp.sum(y, axis=0, keepdims=True), s_ref.shape)
    q_ref[...] = jnp.broadcast_to(jnp.sum(y * y, axis=0, keepdims=True), q_ref.shape)


# ------------------- stage 4: bn3 + residual + relu (lane-dense) ------------
def _bn_add_relu_kernel(y_ref, x_ref, sc_ref, sh_ref, o_ref):
    o_ref[...] = jnp.maximum(
        y_ref[...] * sc_ref[...] + sh_ref[...] + x_ref[...], 0.0)


# ----------------------------- host-side glue -------------------------------
def _fold_bn(sums, sumsqs, count, gamma, beta):
    """Per-tile replicated partial sums -> per-channel BN scale/shift (O(C))."""
    c = gamma.shape[-1]
    s = sums.reshape(-1, 8, c)[:, 0, :].sum(axis=0)
    q = sumsqs.reshape(-1, 8, c)[:, 0, :].sum(axis=0)
    mean = s / count
    var = jnp.maximum(q / count - mean * mean, 0.0)
    inv = gamma.reshape(-1) * lax.rsqrt(var + EPS)
    return inv.reshape(1, c), (beta.reshape(-1) - mean * inv).reshape(1, c)


@jax.jit
def bottleneck_forward(x_nhwc, params):
    """x_nhwc: (N, H, W, Cin) f32. Returns (N, H, W, Cout=Cin) f32."""
    w1, g1, b1, w2f, g2, b2, w3, g3, b3 = params
    N, H, W, Cin = x_nhwc.shape
    P = w1.shape[1]
    C4 = w3.shape[1]
    assert C4 == Cin, "downsample is None -> inplanes must equal planes*4"
    M = N * H * W
    TM = 256 if M % 256 == 0 else M
    nt = M // TM

    x2d = x_nhwc.reshape(M, Cin)

    # ---- conv1 (1x1) + bn1 partial stats -------------------------------
    y1, s1, q1 = pl.pallas_call(
        _conv1_kernel,
        out_shape=(jax.ShapeDtypeStruct((M, P), jnp.float32),
                   jax.ShapeDtypeStruct((nt * 8, P), jnp.float32),
                   jax.ShapeDtypeStruct((nt * 8, P), jnp.float32)),
        grid=(nt,),
        in_specs=[pl.BlockSpec((TM, Cin), lambda i: (i, 0)),
                  pl.BlockSpec((Cin, P), lambda i: (0, 0))],
        out_specs=(pl.BlockSpec((TM, P), lambda i: (i, 0)),
                   pl.BlockSpec((8, P), lambda i: (i, 0)),
                   pl.BlockSpec((8, P), lambda i: (i, 0))),
        compiler_params=_cparams(),
    )(x2d, w1)
    sc1, sh1 = _fold_bn(s1, q1, M, g1, b1)

    # ---- bn1 + relu -> conv2 (3x3 im2col) + bn2 partial stats -----------
    y2, s2, q2 = pl.pallas_call(
        _bn_relu_conv3x3_kernel,
        out_shape=(jax.ShapeDtypeStruct((N, H, W, P), jnp.float32),
                   jax.ShapeDtypeStruct((N * 8, P), jnp.float32),
                   jax.ShapeDtypeStruct((N * 8, P), jnp.float32)),
        grid=(N,),
        in_specs=[pl.BlockSpec((1, H, W, P), lambda n: (n, 0, 0, 0)),
                  pl.BlockSpec((1, P), lambda n: (0, 0)),
                  pl.BlockSpec((1, P), lambda n: (0, 0)),
                  pl.BlockSpec((9 * P, P), lambda n: (0, 0))],
        out_specs=(pl.BlockSpec((1, H, W, P), lambda n: (n, 0, 0, 0)),
                   pl.BlockSpec((8, P), lambda n: (n, 0)),
                   pl.BlockSpec((8, P), lambda n: (n, 0))),
        scratch_shapes=[pltpu.VMEM((H + 2, W + 2, P), jnp.float32),
                        pltpu.VMEM((H * W, 9 * P), jnp.float32)],
        compiler_params=_cparams(),
    )(y1.reshape(N, H, W, P), sc1, sh1, w2f)
    sc2, sh2 = _fold_bn(s2, q2, M, g2, b2)

    # ---- bn2 + relu -> conv3 (1x1) + bn3 partial stats ------------------
    y3, s3, q3 = pl.pallas_call(
        _bn_relu_conv_kernel,
        out_shape=(jax.ShapeDtypeStruct((M, C4), jnp.float32),
                   jax.ShapeDtypeStruct((nt * 8, C4), jnp.float32),
                   jax.ShapeDtypeStruct((nt * 8, C4), jnp.float32)),
        grid=(nt,),
        in_specs=[pl.BlockSpec((TM, P), lambda i: (i, 0)),
                  pl.BlockSpec((1, P), lambda i: (0, 0)),
                  pl.BlockSpec((1, P), lambda i: (0, 0)),
                  pl.BlockSpec((P, C4), lambda i: (0, 0))],
        out_specs=(pl.BlockSpec((TM, C4), lambda i: (i, 0)),
                   pl.BlockSpec((8, C4), lambda i: (i, 0)),
                   pl.BlockSpec((8, C4), lambda i: (i, 0))),
        compiler_params=_cparams(),
    )(y2.reshape(M, P), sc2, sh2, w3)
    sc3, sh3 = _fold_bn(s3, q3, M, g3, b3)

    # ---- bn3 + residual + relu on a lane-dense (N*H, W*C) view ----------
    R, Wd = N * H, W * C4
    TR = 8 if R % 8 == 0 else R
    sc3_t = jnp.tile(sc3, (1, W))          # (1, W*C4), matches flattened layout
    sh3_t = jnp.tile(sh3, (1, W))
    out2d = pl.pallas_call(
        _bn_add_relu_kernel,
        out_shape=jax.ShapeDtypeStruct((R, Wd), jnp.float32),
        grid=(R // TR,),
        in_specs=[pl.BlockSpec((TR, Wd), lambda i: (i, 0)),
                  pl.BlockSpec((TR, Wd), lambda i: (i, 0)),
                  pl.BlockSpec((1, Wd), lambda i: (0, 0)),
                  pl.BlockSpec((1, Wd), lambda i: (0, 0))],
        out_specs=pl.BlockSpec((TR, Wd), lambda i: (i, 0)),
        compiler_params=_cparams(),
    )(y3.reshape(R, Wd), x_nhwc.reshape(R, Wd), sc3_t, sh3_t)
    return out2d.reshape(N, H, W, C4)


# ----------------------------- pure-JAX reference ---------------------------
def _ref_bn(x, g, b):
    mean = jnp.mean(x, axis=(0, 1, 2), keepdims=True)
    var = jnp.mean((x - mean) ** 2, axis=(0, 1, 2), keepdims=True)
    return (x - mean) * lax.rsqrt(var + EPS) * g.reshape(1, 1, 1, -1) \
        + b.reshape(1, 1, 1, -1)


def bottleneck_reference(x, w1, g1, b1, w2, g2, b2, w3, g3, b3):
    """Same math, same bf16-operand / f32-accumulation policy as the kernels."""
    dn = ("NHWC", "HWIO", "NHWC")

    def conv(a, w, pad):
        return lax.conv_general_dilated(
            a.astype(jnp.bfloat16), w.astype(jnp.bfloat16), (1, 1), pad,
            dimension_numbers=dn, preferred_element_type=jnp.float32)

    y = conv(x, w1[None, None], "VALID")
    y = jnp.maximum(_ref_bn(y, g1, b1), 0.0)
    y = conv(y, w2, ((1, 1), (1, 1)))
    y = jnp.maximum(_ref_bn(y, g2, b2), 0.0)
    y = conv(y, w3[None, None], "VALID")
    y = _ref_bn(y, g3, b3)
    return jnp.maximum(y + x, 0.0)


if __name__ == "__main__":
    key = jax.random.PRNGKey(0)
    N, H, W = 2, 16, 16
    planes = 8
    inplanes = planes * 4      # expansion=4; residual add without downsample

    k0, k1, k2, k3 = jax.random.split(key, 4)
    x_nchw = jax.random.normal(k0, (N, inplanes, H, W), jnp.float32)

    # PyTorch weight layout (Cout, Cin, KH, KW) -> kernel layouts.
    w1_t = jax.random.normal(k1, (planes, inplanes, 1, 1), jnp.float32) * 0.1
    w2_t = jax.random.normal(k2, (planes, planes, 3, 3), jnp.float32) * 0.1
    w3_t = jax.random.normal(k3, (planes * 4, planes, 1, 1), jnp.float32) * 0.1
    w1 = jnp.transpose(w1_t[:, :, 0, 0], (1, 0))            # (Cin, P)
    w2 = jnp.transpose(w2_t, (2, 3, 1, 0))                  # (KH, KW, Cin, Cout)
    w3 = jnp.transpose(w3_t[:, :, 0, 0], (1, 0))            # (P, 4P)

    # BatchNorm affine params (PyTorch defaults gamma=1, beta=0), kept 2D.
    g1 = jnp.ones((1, planes), jnp.float32);     b1 = jnp.zeros((1, planes), jnp.float32)
    g2 = jnp.ones((1, planes), jnp.float32);     b2 = jnp.zeros((1, planes), jnp.float32)
    g3 = jnp.ones((1, planes * 4), jnp.float32); b3 = jnp.zeros((1, planes * 4), jnp.float32)

    params = (w1.astype(jnp.bfloat16), g1, b1,
              w2.reshape(9 * planes, planes).astype(jnp.bfloat16), g2, b2,
              w3.astype(jnp.bfloat16), g3, b3)

    x_nhwc = jnp.transpose(x_nchw, (0, 2, 3, 1))
    out_nhwc = bottleneck_forward(x_nhwc, params)
    out_nchw = jnp.transpose(out_nhwc, (0, 3, 1, 2))
    jax.block_until_ready(out_nchw)

    ref = bottleneck_reference(x_nhwc, w1, g1[0], b1[0], w2, g2[0], b2[0],
                               w3, g3[0], b3[0])
    assert out_nhwc.shape == (N, H, W, inplanes)
    max_err = float(jnp.max(jnp.abs(out_nhwc - ref)))
    assert jnp.allclose(out_nhwc, ref, atol=5e-3, rtol=5e-3), max_err

    print("KERNEL_OK")
</pallas_src>

<mosaic_0001>
module attributes {stable_mosaic.version = 11 : i64} {
  func.func @_conv1_kernel(%arg0: i32, %arg1: memref<256x32xf32, #tpu.memory_space<vmem>>, %arg2: memref<32x8xbf16, #tpu.memory_space<vmem>>, %arg3: memref<256x8xf32, #tpu.memory_space<vmem>>, %arg4: memref<8x8xf32, #tpu.memory_space<vmem>>, %arg5: memref<8x8xf32, #tpu.memory_space<vmem>>) attributes {dimension_semantics = [#tpu.dimension_semantics<parallel>], iteration_bounds = array<i64: 2>, scalar_prefetch = 0 : i64, scratch_operands = 0 : i64, tpu.core_type = #tpu.core_type<tc>, window_params = [{transform_indices = @transform_0, window_bounds = array<i64: 256, 32>}, {pipeline_mode = #tpu.pipeline_mode<synchronous>, transform_indices = @transform_1, window_bounds = array<i64: 32, 8>}, {transform_indices = @transform_2, window_bounds = array<i64: 256, 8>}, {transform_indices = @transform_3, window_bounds = array<i64: 8, 8>}, {transform_indices = @transform_4, window_bounds = array<i64: 8, 8>}]} {
    %c0 = arith.constant 0 : index
    %c0_0 = arith.constant 0 : index
    %0 = vector.load %arg1[%c0, %c0_0] : memref<256x32xf32, #tpu.memory_space<vmem>>, vector<256x32xf32>
    %1 = arith.truncf %0 : vector<256x32xf32> to vector<256x32xbf16>
    %c0_1 = arith.constant 0 : index
    %c0_2 = arith.constant 0 : index
    %2 = vector.load %arg2[%c0_1, %c0_2] : memref<32x8xbf16, #tpu.memory_space<vmem>>, vector<32x8xbf16>
    %cst = arith.constant dense<0.000000e+00> : vector<256x8xf32>
    %3 = tpu.matmul %1, %2, %cst {dimension_numbers = #tpu.dot_dimension_numbers<[1], [0], [0], [1], [0, 0, 1, 1], [], []>} : vector<256x32xbf16>, vector<32x8xbf16>, vector<256x8xf32> -> vector<256x8xf32>
    %c0_3 = arith.constant 0 : index
    %c0_4 = arith.constant 0 : index
    %4 = vector.load %arg3[%c0_3, %c0_4] : memref<256x8xf32, #tpu.memory_space<vmem>>, vector<256x8xf32>
    tpu.vector_store %arg3[%c0_3, %c0_4], %3 {strides = array<i32>} : memref<256x8xf32, #tpu.memory_space<vmem>>, vector<256x8xf32>,
    %cst_5 = arith.constant dense<0.000000e+00> : vector<8xf32>
    %5 = vector.multi_reduction <add>, %3, %cst_5 [0] : vector<256x8xf32> to vector<8xf32>
    %6 = vector.shape_cast %5 : vector<8xf32> to vector<1x8xf32>
    %7 = vector.shape_cast %6 : vector<1x8xf32> to vector<1x8xf32>
    %8 = vector.broadcast %7 : vector<1x8xf32> to vector<8x8xf32>
    %c0_6 = arith.constant 0 : index
    %c0_7 = arith.constant 0 : index
    %9 = vector.load %arg4[%c0_6, %c0_7] : memref<8x8xf32, #tpu.memory_space<vmem>>, vector<8x8xf32>
    tpu.vector_store %arg4[%c0_6, %c0_7], %8 {strides = array<i32>} : memref<8x8xf32, #tpu.memory_space<vmem>>, vector<8x8xf32>,
    %10 = arith.mulf %3, %3 : vector<256x8xf32>
    %cst_8 = arith.constant dense<0.000000e+00> : vector<8xf32>
    %11 = vector.multi_reduction <add>, %10, %cst_8 [0] : vector<256x8xf32> to vector<8xf32>
    %12 = vector.shape_cast %11 : vector<8xf32> to vector<1x8xf32>
    %13 = vector.shape_cast %12 : vector<1x8xf32> to vector<1x8xf32>
    %14 = vector.broadcast %13 : vector<1x8xf32> to vector<8x8xf32>
    %c0_9 = arith.constant 0 : index
    %c0_10 = arith.constant 0 : index
    %15 = vector.load %arg5[%c0_9, %c0_10] : memref<8x8xf32, #tpu.memory_space<vmem>>, vector<8x8xf32>
    tpu.vector_store %arg5[%c0_9, %c0_10], %14 {strides = array<i32>} : memref<8x8xf32, #tpu.memory_space<vmem>>, vector<8x8xf32>,
    return
  }
  func.func @transform_0(%arg0: i32) -> (i32, i32) {
    %c0_i32 = arith.constant 0 : i32
    %c0_i32_0 = arith.constant 0 : i32
    return %arg0, %c0_i32 : i32, i32
  }
  func.func @transform_1(%arg0: i32) -> (i32, i32) {
    %c0_i32 = arith.constant 0 : i32
    %c0_i32_0 = arith.constant 0 : i32
    %c0_i32_1 = arith.constant 0 : i32
    return %c0_i32, %c0_i32_0 : i32, i32
  }
  func.func @transform_2(%arg0: i32) -> (i32, i32) {
    %c0_i32 = arith.constant 0 : i32
    %c0_i32_0 = arith.constant 0 : i32
    return %arg0, %c0_i32 : i32, i32
  }
  func.func @transform_3(%arg0: i32) -> (i32, i32) {
    %c0_i32 = arith.constant 0 : i32
    %c0_i32_0 = arith.constant 0 : i32
    return %arg0, %c0_i32 : i32, i32
  }
  func.func @transform_4(%arg0: i32) -> (i32, i32) {
    %c0_i32 = arith.constant 0 : i32
    %c0_i32_0 = arith.constant 0 : i32
    return %arg0, %c0_i32 : i32, i32
  }
}

module attributes {stable_mosaic.version = 11 : i64} {
  func.func @_bn_relu_conv_kernel(%arg0: i32, %arg1: memref<256x8xf32, #tpu.memory_space<vmem>>, %arg2: memref<1x8xf32, #tpu.memory_space<vmem>>, %arg3: memref<1x8xf32, #tpu.memory_space<vmem>>, %arg4: memref<8x32xbf16, #tpu.memory_space<vmem>>, %arg5: memref<256x32xf32, #tpu.memory_space<vmem>>, %arg6: memref<8x32xf32, #tpu.memory_space<vmem>>, %arg7: memref<8x32xf32, #tpu.memory_space<vmem>>) attributes {dimension_semantics = [#tpu.dimension_semantics<parallel>], iteration_bounds = array<i64: 2>, scalar_prefetch = 0 : i64, scratch_operands = 0 : i64, tpu.core_type = #tpu.core_type<tc>, window_params = [{transform_indices = @transform_0, window_bounds = array<i64: 256, 8>}, {pipeline_mode = #tpu.pipeline_mode<synchronous>, transform_indices = @transform_1, window_bounds = array<i64: 1, 8>}, {pipeline_mode = #tpu.pipeline_mode<synchronous>, transform_indices = @transform_2, window_bounds = array<i64: 1, 8>}, {pipeline_mode = #tpu.pipeline_mode<synchronous>, transform_indices = @transform_3, window_bounds = array<i64: 8, 32>}, {transform_indices = @transform_4, window_bounds = array<i64: 256, 32>}, {transform_indices = @transform_5, window_bounds = array<i64: 8, 32>}, {transform_indices = @transform_6, window_bounds = array<i64: 8, 32>}]} {
    %c0 = arith.constant 0 : index
    %c0_0 = arith.constant 0 : index
    %0 = vector.load %arg1[%c0, %c0_0] : memref<256x8xf32, #tpu.memory_space<vmem>>, vector<256x8xf32>
    %c0_1 = arith.constant 0 : index
    %c0_2 = arith.constant 0 : index
    %1 = vector.load %arg2[%c0_1, %c0_2] : memref<1x8xf32, #tpu.memory_space<vmem>>, vector<1x8xf32>
    %2 = vector.broadcast %1 : vector<1x8xf32> to vector<256x8xf32>
    %3 = arith.mulf %0, %2 : vector<256x8xf32>
    %c0_3 = arith.constant 0 : index
    %c0_4 = arith.constant 0 : index
    %4 = vector.load %arg3[%c0_3, %c0_4] : memref<1x8xf32, #tpu.memory_space<vmem>>, vector<1x8xf32>
    %5 = vector.broadcast %4 : vector<1x8xf32> to vector<256x8xf32>
    %6 = arith.addf %3, %5 : vector<256x8xf32>
    %cst = arith.constant 0.000000e+00 : f32
    %7 = vector.broadcast %cst : f32 to vector<256x8xf32>
    %8 = arith.maximumf %6, %7 : vector<256x8xf32>
    %9 = arith.truncf %8 : vector<256x8xf32> to vector<256x8xbf16>
    %c0_5 = arith.constant 0 : index
    %c0_6 = arith.constant 0 : index
    %10 = vector.load %arg4[%c0_5, %c0_6] : memref<8x32xbf16, #tpu.memory_space<vmem>>, vector<8x32xbf16>
    %cst_7 = arith.constant dense<0.000000e+00> : vector<256x32xf32>
    %11 = tpu.matmul %9, %10, %cst_7 {dimension_numbers = #tpu.dot_dimension_numbers<[1], [0], [0], [1], [0, 0, 1, 1], [], []>} : vector<256x8xbf16>, vector<8x32xbf16>, vector<256x32xf32> -> vector<256x32xf32>
    %c0_8 = arith.constant 0 : index
    %c0_9 = arith.constant 0 : index
    %12 = vector.load %arg5[%c0_8, %c0_9] : memref<256x32xf32, #tpu.memory_space<vmem>>, vector<256x32xf32>
    tpu.vector_store %arg5[%c0_8, %c0_9], %11 {strides = array<i32>} : memref<256x32xf32, #tpu.memory_space<vmem>>, vector<256x32xf32>,
    %cst_10 = arith.constant dense<0.000000e+00> : vector<32xf32>
    %13 = vector.multi_reduction <add>, %11, %cst_10 [0] : vector<256x32xf32> to vector<32xf32>
    %14 = vector.shape_cast %13 : vector<32xf32> to vector<1x32xf32>
    %15 = vector.shape_cast %14 : vector<1x32xf32> to vector<1x32xf32>
    %16 = vector.broadcast %15 : vector<1x32xf32> to vector<8x32xf32>
    %c0_11 = arith.constant 0 : index
    %c0_12 = arith.constant 0 : index
    %17 = vector.load %arg6[%c0_11, %c0_12] : memref<8x32xf32, #tpu.memory_space<vmem>>, vector<8x32xf32>
    tpu.vector_store %arg6[%c0_11, %c0_12], %16 {strides = array<i32>} : memref<8x32xf32, #tpu.memory_space<vmem>>, vector<8x32xf32>,
    %18 = arith.mulf %11, %11 : vector<256x32xf32>
    %cst_13 = arith.constant dense<0.000000e+00> : vector<32xf32>
    %19 = vector.multi_reduction <add>, %18, %cst_13 [0] : vector<256x32xf32> to vector<32xf32>
    %20 = vector.shape_cast %19 : vector<32xf32> to vector<1x32xf32>
    %21 = vector.shape_cast %20 : vector<1x32xf32> to vector<1x32xf32>
    %22 = vector.broadcast %21 : vector<1x32xf32> to vector<8x32xf32>
    %c0_14 = arith.constant 0 : index
    %c0_15 = arith.constant 0 : index
    %23 = vector.load %arg7[%c0_14, %c0_15] : memref<8x32xf32, #tpu.memory_space<vmem>>, vector<8x32xf32>
    tpu.vector_store %arg7[%c0_14, %c0_15], %22 {strides = array<i32>} : memref<8x32xf32, #tpu.memory_space<vmem>>, vector<8x32xf32>,
    return
  }
  func.func @transform_0(%arg0: i32) -> (i32, i32) {
    %c0_i32 = arith.constant 0 : i32
    %c0_i32_0 = arith.constant 0 : i32
    return %arg0, %c0_i32 : i32, i32
  }
  func.func @transform_1(%arg0: i32) -> (i32, i32) {
    %c0_i32 = arith.constant 0 : i32
    %c0_i32_0 = arith.constant 0 : i32
    %c0_i32_1 = arith.constant 0 : i32
    return %c0_i32, %c0_i32_0 : i32, i32
  }
  func.func @transform_2(%arg0: i32) -> (i32, i32) {
    %c0_i32 = arith.constant 0 : i32
    %c0_i32_0 = arith.constant 0 : i32
    %c0_i32_1 = arith.constant 0 : i32
    return %c0_i32, %c0_i32_0 : i32, i32
  }
  func.func @transform_3(%arg0: i32) -> (i32, i32) {
    %c0_i32 = arith.constant 0 : i32
    %c0_i32_0 = arith.constant 0 : i32
    %c0_i32_1 = arith.constant 0 : i32
    return %c0_i32, %c0_i32_0 : i32, i32
  }
  func.func @transform_4(%arg0: i32) -> (i32, i32) {
    %c0_i32 = arith.constant 0 : i32
    %c0_i32_0 = arith.constant 0 : i32
    return %arg0, %c0_i32 : i32, i32
  }
  func.func @transform_5(%arg0: i32) -> (i32, i32) {
    %c0_i32 = arith.constant 0 : i32
    %c0_i32_0 = arith.constant 0 : i32
    return %arg0, %c0_i32 : i32, i32
  }
  func.func @transform_6(%arg0: i32) -> (i32, i32) {
    %c0_i32 = arith.constant 0 : i32
    %c0_i32_0 = arith.constant 0 : i32
    return %arg0, %c0_i32 : i32, i32
  }
}

module attributes {stable_mosaic.version = 11 : i64} {
  func.func @_bn_relu_conv3x3_kernel(%arg0: i32, %arg1: memref<1x16x16x8xf32, #tpu.memory_space<vmem>>, %arg2: memref<1x8xf32, #tpu.memory_space<vmem>>, %arg3: memref<1x8xf32, #tpu.memory_space<vmem>>, %arg4: memref<72x8xbf16, #tpu.memory_space<vmem>>, %arg5: memref<1x16x16x8xf32, #tpu.memory_space<vmem>>, %arg6: memref<8x8xf32, #tpu.memory_space<vmem>>, %arg7: memref<8x8xf32, #tpu.memory_space<vmem>>, %arg8: memref<18x18x8xf32, #tpu.memory_space<vmem>>, %arg9: memref<256x72xf32, #tpu.memory_space<vmem>>) attributes {dimension_semantics = [#tpu.dimension_semantics<parallel>], iteration_bounds = array<i64: 2>, scalar_prefetch = 0 : i64, scratch_operands = 2 : i64, tpu.core_type = #tpu.core_type<tc>, window_params = [{transform_indices = @transform_0, window_bounds = array<i64: 1, 16, 16, 8>}, {pipeline_mode = #tpu.pipeline_mode<synchronous>, transform_indices = @transform_1, window_bounds = array<i64: 1, 8>}, {pipeline_mode = #tpu.pipeline_mode<synchronous>, transform_indices = @transform_2, window_bounds = array<i64: 1, 8>}, {pipeline_mode = #tpu.pipeline_mode<synchronous>, transform_indices = @transform_3, window_bounds = array<i64: 72, 8>}, {transform_indices = @transform_4, window_bounds = array<i64: 1, 16, 16, 8>}, {transform_indices = @transform_5, window_bounds = array<i64: 8, 8>}, {transform_indices = @transform_6, window_bounds = array<i64: 8, 8>}]} {
    %c0 = arith.constant 0 : index
    %c0_0 = arith.constant 0 : index
    %c0_1 = arith.constant 0 : index
    %c0_2 = arith.constant 0 : index
    %0 = vector.load %arg1[%c0, %c0_0, %c0_1, %c0_2] : memref<1x16x16x8xf32, #tpu.memory_space<vmem>>, vector<1x16x16x8xf32>
    %1 = vector.shape_cast %0 : vector<1x16x16x8xf32> to vector<256x8xf32>
    %c0_3 = arith.constant 0 : index
    %c0_4 = arith.constant 0 : index
    %2 = vector.load %arg2[%c0_3, %c0_4] : memref<1x8xf32, #tpu.memory_space<vmem>>, vector<1x8xf32>
    %3 = vector.broadcast %2 : vector<1x8xf32> to vector<256x8xf32>
    %4 = arith.mulf %1, %3 : vector<256x8xf32>
    %c0_5 = arith.constant 0 : index
    %c0_6 = arith.constant 0 : index
    %5 = vector.load %arg3[%c0_5, %c0_6] : memref<1x8xf32, #tpu.memory_space<vmem>>, vector<1x8xf32>
    %6 = vector.broadcast %5 : vector<1x8xf32> to vector<256x8xf32>
    %7 = arith.addf %4, %6 : vector<256x8xf32>
    %cst = arith.constant 0.000000e+00 : f32
    %8 = vector.broadcast %cst : f32 to vector<256x8xf32>
    %9 = arith.maximumf %7, %8 : vector<256x8xf32>
    %cst_7 = arith.constant 0.000000e+00 : f32
    %10 = vector.broadcast %cst_7 : f32 to vector<1x18x8xf32>
    %c0_8 = arith.constant 0 : index
    %c0_9 = arith.constant 0 : index
    %c0_10 = arith.constant 0 : index
    %11 = vector.load %arg8[%c0_8, %c0_9, %c0_10] : memref<18x18x8xf32, #tpu.memory_space<vmem>>, vector<1x18x8xf32>
    tpu.vector_store %arg8[%c0_8, %c0_9, %c0_10], %10 {strides = array<i32>} : memref<18x18x8xf32, #tpu.memory_space<vmem>>, vector<1x18x8xf32>,
    %cst_11 = arith.constant 0.000000e+00 : f32
    %12 = vector.broadcast %cst_11 : f32 to vector<1x18x8xf32>
    %c17 = arith.constant 17 : index
    %c0_12 = arith.constant 0 : index
    %c0_13 = arith.constant 0 : index
    %13 = vector.load %arg8[%c17, %c0_12, %c0_13] : memref<18x18x8xf32, #tpu.memory_space<vmem>>, vector<1x18x8xf32>
    tpu.vector_store %arg8[%c17, %c0_12, %c0_13], %12 {strides = array<i32>} : memref<18x18x8xf32, #tpu.memory_space<vmem>>, vector<1x18x8xf32>,
    %cst_14 = arith.constant 0.000000e+00 : f32
    %14 = vector.broadcast %cst_14 : f32 to vector<18x1x8xf32>
    %c0_15 = arith.constant 0 : index
    %c0_16 = arith.constant 0 : index
    %c0_17 = arith.constant 0 : index
    %15 = vector.load %arg8[%c0_15, %c0_16, %c0_17] : memref<18x18x8xf32, #tpu.memory_space<vmem>>, vector<18x1x8xf32>
    tpu.vector_store %arg8[%c0_15, %c0_16, %c0_17], %14 {strides = array<i32>} : memref<18x18x8xf32, #tpu.memory_space<vmem>>, vector<18x1x8xf32>,
    %cst_18 = arith.constant 0.000000e+00 : f32
    %16 = vector.broadcast %cst_18 : f32 to vector<18x1x8xf32>
    %c0_19 = arith.constant 0 : index
    %c17_20 = arith.constant 17 : index
    %c0_21 = arith.constant 0 : index
    %17 = vector.load %arg8[%c0_19, %c17_20, %c0_21] : memref<18x18x8xf32, #tpu.memory_space<vmem>>, vector<18x1x8xf32>
    tpu.vector_store %arg8[%c0_19, %c17_20, %c0_21], %16 {strides = array<i32>} : memref<18x18x8xf32, #tpu.memory_space<vmem>>, vector<18x1x8xf32>,
    %18 = vector.shape_cast %9 : vector<256x8xf32> to vector<16x16x8xf32>
    %c1 = arith.constant 1 : index
    %c1_22 = arith.constant 1 : index
    %c0_23 = arith.constant 0 : index
    %19 = vector.load %arg8[%c1, %c1_22, %c0_23] : memref<18x18x8xf32, #tpu.memory_space<vmem>>, vector<16x16x8xf32>
    tpu.vector_store %arg8[%c1, %c1_22, %c0_23], %18 {strides = array<i32>} : memref<18x18x8xf32, #tpu.memory_space<vmem>>, vector<16x16x8xf32>,
    %c0_24 = arith.constant 0 : index
    %c0_25 = arith.constant 0 : index
    %c0_26 = arith.constant 0 : index
    %20 = vector.load %arg8[%c0_24, %c0_25, %c0_26] : memref<18x18x8xf32, #tpu.memory_space<vmem>>, vector<16x16x8xf32>
    %21 = vector.shape_cast %20 : vector<16x16x8xf32> to vector<256x8xf32>
    %c0_27 = arith.constant 0 : index
    %c0_28 = arith.constant 0 : index
    %22 = vector.load %arg9[%c0_27, %c0_28] : memref<256x72xf32, #tpu.memory_space<vmem>>, vector<256x8xf32>
    tpu.vector_store %arg9[%c0_27, %c0_28], %21 {strides = array<i32>} : memref<256x72xf32, #tpu.memory_space<vmem>>, vector<256x8xf32>,
    %c0_29 = arith.constant 0 : index
    %c1_30 = arith.constant 1 : index
    %c0_31 = arith.constant 0 : index
    %23 = vector.load %arg8[%c0_29, %c1_30, %c0_31] : memref<18x18x8xf32, #tpu.memory_space<vmem>>, vector<16x16x8xf32>
    %24 = vector.shape_cast %23 : vector<16x16x8xf32> to vector<256x8xf32>
    %c0_32 = arith.constant 0 : index
    %c8 = arith.constant 8 : index
    %25 = vector.load %arg9[%c0_32, %c8] : memref<256x72xf32, #tpu.memory_space<vmem>>, vector<256x8xf32>
    tpu.vector_store %arg9[%c0_32, %c8], %24 {strides = array<i32>} : memref<256x72xf32, #tpu.memory_space<vmem>>, vector<256x8xf32>,
    %c0_33 = arith.constant 0 : index
    %c2 = arith.constant 2 : index
    %c0_34 = arith.constant 0 : index
    %26 = vector.load %arg8[%c0_33, %c2, %c0_34] : memref<18x18x8xf32, #tpu.memory_space<vmem>>, vector<16x16x8xf32>
    %27 = vector.shape_cast %26 : vector<16x16x8xf32> to vector<256x8xf32>
    %c0_35 = arith.constant 0 : index
    %c16 = arith.constant 16 : index
    %28 = vector.load %arg9[%c0_35, %c16] : memref<256x72xf32, #tpu.memory_space<vmem>>, vector<256x8xf32>
    tpu.vector_store %arg9[%c0_35, %c16], %27 {strides = array<i32>} : memref<256x72xf32, #tpu.memory_space<vmem>>, vector<256x8xf32>,
    %c1_36 = arith.constant 1 : index
    %c0_37 = arith.constant 0 : index
    %c0_38 = arith.constant 0 : index
    %29 = vector.load %arg8[%c1_36, %c0_37, %c0_38] : memref<18x18x8xf32, #tpu.memory_space<vmem>>, vector<16x16x8xf32>
    %30 = vector.shape_cast %29 : vector<16x16x8xf32> to vector<256x8xf32>
    %c0_39 = arith.constant 0 : index
    %c24 = arith.constant 24 : index
    %31 = vector.load %arg9[%c0_39, %c24] : memref<256x72xf32, #tpu.memory_space<vmem>>, vector<256x8xf32>
    tpu.vector_store %arg9[%c0_39, %c24], %30 {strides = array<i32>} : memref<256x72xf32, #tpu.memory_space<vmem>>, vector<256x8xf32>,
    %c1_40 = arith.constant 1 : index
    %c1_41 = arith.constant 1 : index
    %c0_42 = arith.constant 0 : index
    %32 = vector.load %arg8[%c1_40, %c1_41, %c0_42] : memref<18x18x8xf32, #tpu.memory_space<vmem>>, vector<16x16x8xf32>
    %33 = vector.shape_cast %32 : vector<16x16x8xf32> to vector<256x8xf32>
    %c0_43 = arith.constant 0 : index
    %c32 = arith.constant 32 : index
    %34 = vector.load %arg9[%c0_43, %c32] : memref<256x72xf32, #tpu.memory_space<vmem>>, vector<256x8xf32>
    tpu.vector_store %arg9[%c0_43, %c32], %33 {strides = array<i32>} : memref<256x72xf32, #tpu.memory_space<vmem>>, vector<256x8xf32>,
    %c1_44 = arith.constant 1 : index
    %c2_45 = arith.constant 2 : index
    %c0_46 = arith.constant 0 : index
    %35 = vector.load %arg8[%c1_44, %c2_45, %c0_46] : memref<18x18x8xf32, #tpu.memory_space<vmem>>, vector<16x16x8xf32>
    %36 = vector.shape_cast %35 : vector<16x16x8xf32> to vector<256x8xf32>
    %c0_47 = arith.constant 0 : index
    %c40 = arith.constant 40 : index
    %37 = vector.load %arg9[%c0_47, %c40] : memref<256x72xf32, #tpu.memory_space<vmem>>, vector<256x8xf32>
    tpu.vector_store %arg9[%c0_47, %c40], %36 {strides = array<i32>} : memref<256x72xf32, #tpu.memory_space<vmem>>, vector<256x8xf32>,
    %c2_48 = arith.constant 2 : index
    %c0_49 = arith.constant 0 : index
    %c0_50 = arith.constant 0 : index
    %38 = vector.load %arg8[%c2_48, %c0_49, %c0_50] : memref<18x18x8xf32, #tpu.memory_space<vmem>>, vector<16x16x8xf32>
    %39 = vector.shape_cast %38 : vector<16x16x8xf32> to vector<256x8xf32>
    %c0_51 = arith.constant 0 : index
    %c48 = arith.constant 48 : index
    %40 = vector.load %arg9[%c0_51, %c48] : memref<256x72xf32, #tpu.memory_space<vmem>>, vector<256x8xf32>
    tpu.vector_store %arg9[%c0_51, %c48], %39 {strides = array<i32>} : memref<256x72xf32, #tpu.memory_space<vmem>>, vector<256x8xf32>,
    %c2_52 = arith.constant 2 : index
    %c1_53 = arith.constant 1 : index
    %c0_54 = arith.constant 0 : index
    %41 = vector.load %arg8[%c2_52, %c1_53, %c0_54] : memref<18x18x8xf32, #tpu.memory_space<vmem>>, vector<16x16x8xf32>
    %42 = vector.shape_cast %41 : vector<16x16x8xf32> to vector<256x8xf32>
    %c0_55 = arith.constant 0 : index
    %c56 = arith.constant 56 : index
    %43 = vector.load %arg9[%c0_55, %c56] : memref<256x72xf32, #tpu.memory_space<vmem>>, vector<256x8xf32>
    tpu.vector_store %arg9[%c0_55, %c56], %42 {strides = array<i32>} : memref<256x72xf32, #tpu.memory_space<vmem>>, vector<256x8xf32>,
    %c2_56 = arith.constant 2 : index
    %c2_57 = arith.constant 2 : index
    %c0_58 = arith.constant 0 : index
    %44 = vector.load %arg8[%c2_56, %c2_57, %c0_58] : memref<18x18x8xf32, #tpu.memory_space<vmem>>, vector<16x16x8xf32>
    %45 = vector.shape_cast %44 : vector<16x16x8xf32> to vector<256x8xf32>
    %c0_59 = arith.constant 0 : index
    %c64 = arith.constant 64 : index
    %46 = vector.load %arg9[%c0_59, %c64] : memref<256x72xf32, #tpu.memory_space<vmem>>, vector<256x8xf32>
    tpu.vector_store %arg9[%c0_59, %c64], %45 {strides = array<i32>} : memref<256x72xf32, #tpu.memory_space<vmem>>, vector<256x8xf32>,
    %c0_60 = arith.constant 0 : index
    %c0_61 = arith.constant 0 : index
    %47 = vector.load %arg9[%c0_60, %c0_61] : memref<256x72xf32, #tpu.memory_space<vmem>>, vector<256x72xf32>
    %48 = arith.truncf %47 : vector<256x72xf32> to vector<256x72xbf16>
    %c0_62 = arith.constant 0 : index
    %c0_63 = arith.constant 0 : index
    %49 = vector.load %arg4[%c0_62, %c0_63] : memref<72x8xbf16, #tpu.memory_space<vmem>>, vector<72x8xbf16>
    %cst_64 = arith.constant dense<0.000000e+00> : vector<256x8xf32>
    %50 = tpu.matmul %48, %49, %cst_64 {dimension_numbers = #tpu.dot_dimension_numbers<[1], [0], [0], [1], [0, 0, 1, 1], [], []>} : vector<256x72xbf16>, vector<72x8xbf16>, vector<256x8xf32> -> vector<256x8xf32>
    %51 = vector.shape_cast %50 : vector<256x8xf32> to vector<1x16x16x8xf32>
    %c0_65 = arith.constant 0 : index
    %c0_66 = arith.constant 0 : index
    %c0_67 = arith.constant 0 : index
    %c0_68 = arith.constant 0 : index
    %52 = vector.load %arg5[%c0_65, %c0_66, %c0_67, %c0_68] : memref<1x16x16x8xf32, #tpu.memory_space<vmem>>, vector<1x16x16x8xf32>
    tpu.vector_store %arg5[%c0_65, %c0_66, %c0_67, %c0_68], %51 {strides = array<i32>} : memref<1x16x16x8xf32, #tpu.memory_space<vmem>>, vector<1x16x16x8xf32>,
    %cst_69 = arith.constant dense<0.000000e+00> : vector<8xf32>
    %53 = vector.multi_reduction <add>, %50, %cst_69 [0] : vector<256x8xf32> to vector<8xf32>
    %54 = vector.shape_cast %53 : vector<8xf32> to vector<1x8xf32>
    %55 = vector.shape_cast %54 : vector<1x8xf32> to vector<1x8xf32>
    %56 = vector.broadcast %55 : vector<1x8xf32> to vector<8x8xf32>
    %c0_70 = arith.constant 0 : index
    %c0_71 = arith.constant 0 : index
    %57 = vector.load %arg6[%c0_70, %c0_71] : memref<8x8xf32, #tpu.memory_space<vmem>>, vector<8x8xf32>
    tpu.vector_store %arg6[%c0_70, %c0_71], %56 {strides = array<i32>} : memref<8x8xf32, #tpu.memory_space<vmem>>, vector<8x8xf32>,
    %58 = arith.mulf %50, %50 : vector<256x8xf32>
    %cst_72 = arith.constant dense<0.000000e+00> : vector<8xf32>
    %59 = vector.multi_reduction <add>, %58, %cst_72 [0] : vector<256x8xf32> to vector<8xf32>
    %60 = vector.shape_cast %59 : vector<8xf32> to vector<1x8xf32>
    %61 = vector.shape_cast %60 : vector<1x8xf32> to vector<1x8xf32>
    %62 = vector.broadcast %61 : vector<1x8xf32> to vector<8x8xf32>
    %c0_73 = arith.constant 0 : index
    %c0_74 = arith.constant 0 : index
    %63 = vector.load %arg7[%c0_73, %c0_74] : memref<8x8xf32, #tpu.memory_space<vmem>>, vector<8x8xf32>
    tpu.vector_store %arg7[%c0_73, %c0_74], %62 {strides = array<i32>} : memref<8x8xf32, #tpu.memory_space<vmem>>, vector<8x8xf32>,
    return
  }
  func.func @transform_0(%arg0: i32) -> (i32, i32, i32, i32) {
    %c0_i32 = arith.constant 0 : i32
    %c0_i32_0 = arith.constant 0 : i32
    %c0_i32_1 = arith.constant 0 : i32
    %c0_i32_2 = arith.constant 0 : i32
    return %arg0, %c0_i32, %c0_i32_0, %c0_i32_1 : i32, i32, i32, i32
  }
  func.func @transform_1(%arg0: i32) -> (i32, i32) {
    %c0_i32 = arith.constant 0 : i32
    %c0_i32_0 = arith.constant 0 : i32
    %c0_i32_1 = arith.constant 0 : i32
    return %c0_i32, %c0_i32_0 : i32, i32
  }
  func.func @transform_2(%arg0: i32) -> (i32, i32) {
    %c0_i32 = arith.constant 0 : i32
    %c0_i32_0 = arith.constant 0 : i32
    %c0_i32_1 = arith.constant 0 : i32
    return %c0_i32, %c0_i32_0 : i32, i32
  }
  func.func @transform_3(%arg0: i32) -> (i32, i32) {
    %c0_i32 = arith.constant 0 : i32
    %c0_i32_0 = arith.constant 0 : i32
    %c0_i32_1 = arith.constant 0 : i32
    return %c0_i32, %c0_i32_0 : i32, i32
  }
  func.func @transform_4(%arg0: i32) -> (i32, i32, i32, i32) {
    %c0_i32 = arith.constant 0 : i32
    %c0_i32_0 = arith.constant 0 : i32
    %c0_i32_1 = arith.constant 0 : i32
    %c0_i32_2 = arith.constant 0 : i32
    return %arg0, %c0_i32, %c0_i32_0, %c0_i32_1 : i32, i32, i32, i32
  }
  func.func @transform_5(%arg0: i32) -> (i32, i32) {
    %c0_i32 = arith.constant 0 : i32
    %c0_i32_0 = arith.constant 0 : i32
    return %arg0, %c0_i32 : i32, i32
  }
  func.func @transform_6(%arg0: i32) -> (i32, i32) {
    %c0_i32 = arith.constant 0 : i32
    %c0_i32_0 = arith.constant 0 : i32
    return %arg0, %c0_i32 : i32, i32
  }
}

module attributes {stable_mosaic.version = 11 : i64} {
  func.func @_bn_add_relu_kernel(%arg0: i32, %arg1: memref<8x512xf32, #tpu.memory_space<vmem>>, %arg2: memref<8x512xf32, #tpu.memory_space<vmem>>, %arg3: memref<1x512xf32, #tpu.memory_space<vmem>>, %arg4: memref<1x512xf32, #tpu.memory_space<vmem>>, %arg5: memref<8x512xf32, #tpu.memory_space<vmem>>) attributes {dimension_semantics = [#tpu.dimension_semantics<parallel>], iteration_bounds = array<i64: 4>, scalar_prefetch = 0 : i64, scratch_operands = 0 : i64, tpu.core_type = #tpu.core_type<tc>, window_params = [{transform_indices = @transform_0, window_bounds = array<i64: 8, 512>}, {transform_indices = @transform_1, window_bounds = array<i64: 8, 512>}, {pipeline_mode = #tpu.pipeline_mode<synchronous>, transform_indices = @transform_2, window_bounds = array<i64: 1, 512>}, {pipeline_mode = #tpu.pipeline_mode<synchronous>, transform_indices = @transform_3, window_bounds = array<i64: 1, 512>}, {transform_indices = @transform_4, window_bounds = array<i64: 8, 512>}]} {
    %c0 = arith.constant 0 : index
    %c0_0 = arith.constant 0 : index
    %0 = vector.load %arg1[%c0, %c0_0] : memref<8x512xf32, #tpu.memory_space<vmem>>, vector<8x512xf32>
    %c0_1 = arith.constant 0 : index
    %c0_2 = arith.constant 0 : index
    %1 = vector.load %arg3[%c0_1, %c0_2] : memref<1x512xf32, #tpu.memory_space<vmem>>, vector<1x512xf32>
    %2 = vector.broadcast %1 : vector<1x512xf32> to vector<8x512xf32>
    %3 = arith.mulf %0, %2 : vector<8x512xf32>
    %c0_3 = arith.constant 0 : index
    %c0_4 = arith.constant 0 : index
    %4 = vector.load %arg4[%c0_3, %c0_4] : memref<1x512xf32, #tpu.memory_space<vmem>>, vector<1x512xf32>
    %5 = vector.broadcast %4 : vector<1x512xf32> to vector<8x512xf32>
    %6 = arith.addf %3, %5 : vector<8x512xf32>
    %c0_5 = arith.constant 0 : index
    %c0_6 = arith.constant 0 : index
    %7 = vector.load %arg2[%c0_5, %c0_6] : memref<8x512xf32, #tpu.memory_space<vmem>>, vector<8x512xf32>
    %8 = arith.addf %6, %7 : vector<8x512xf32>
    %cst = arith.constant 0.000000e+00 : f32
    %9 = vector.broadcast %cst : f32 to vector<8x512xf32>
    %10 = arith.maximumf %8, %9 : vector<8x512xf32>
    %c0_7 = arith.constant 0 : index
    %c0_8 = arith.constant 0 : index
    %11 = vector.load %arg5[%c0_7, %c0_8] : memref<8x512xf32, #tpu.memory_space<vmem>>, vector<8x512xf32>
    tpu.vector_store %arg5[%c0_7, %c0_8], %10 {strides = array<i32>} : memref<8x512xf32, #tpu.memory_space<vmem>>, vector<8x512xf32>,
    return
  }
  func.func @transform_0(%arg0: i32) -> (i32, i32) {
    %c0_i32 = arith.constant 0 : i32
    %c0_i32_0 = arith.constant 0 : i32
    return %arg0, %c0_i32 : i32, i32
  }
  func.func @transform_1(%arg0: i32) -> (i32, i32) {
    %c0_i32 = arith.constant 0 : i32
    %c0_i32_0 = arith.constant 0 : i32
    return %arg0, %c0_i32 : i32, i32
  }
  func.func @transform_2(%arg0: i32) -> (i32, i32) {
    %c0_i32 = arith.constant 0 : i32
    %c0_i32_0 = arith.constant 0 : i32
    %c0_i32_1 = arith.constant 0 : i32
    return %c0_i32, %c0_i32_0 : i32, i32
  }
  func.func @transform_3(%arg0: i32) -> (i32, i32) {
    %c0_i32 = arith.constant 0 : i32
    %c0_i32_0 = arith.constant 0 : i32
    %c0_i32_1 = arith.constant 0 : i32
    return %c0_i32, %c0_i32_0 : i32, i32
  }
  func.func @transform_4(%arg0: i32) -> (i32, i32) {
    %c0_i32 = arith.constant 0 : i32
    %c0_i32_0 = arith.constant 0 : i32
    return %arg0, %c0_i32 : i32, i32
  }
}

</mosaic_0001>

<bundles_post_ra>
// kernel: bottleneck_forward.4
= control target key start
LH: loop header
LB: loop body
LE: loop exit
PB: predicated region body
PF: predicated region fallthrough
CT: control target
= control target key end

     0   :  { %10 = vsyncpa [#allocation3], 0  ;;  %s1478_s0 = inlined_call_operand.hbm [shape: f32[512,32], index: 0, kind: input, shape index: {}]   ;;  %s1479_s1 = inlined_call_operand.vmem [shape: bf16[32,8], index: 1, kind: input, shape index: {}]   ;;  %s1480_s2 = inlined_call_operand.vmem [shape: f32[512,8], index: 2, kind: output, shape index: {0}]   ;;  %s1481_s3 = inlined_call_operand.vmem [shape: f32[16,8], index: 3, kind: output, shape index: {1}]   ;;  %s1482_s4 = inlined_call_operand.vmem [shape: f32[16,8], index: 4, kind: output, shape index: {2}]  }
   0x1   :  { %12 = vsyncpa [#allocation3 + $0x1], 0  ;;  %s1079_s15 = smov 0   ;;  %s1081_s16 = smov 0  }
   0x2   :  { %s1083_s17 = smov 0   ;;  %s1085_s18 = smov 0  }
   0x3 LB: > { %s1098_s19 = sadd.s32 4294967295, %s1049_s18   ;;  %s1101_s20 = sadd.s32 1, %s1049_s18   ;;  %s1049_s18 = sphi %s1085_s18, %s1489_s18   ;;  %s1045_s17 = sphi %s1083_s17, %s1488_s17   ;;  %s1041_s16 = sphi %s1081_s16, %s1487_s16   ;;  %s1037_s15 = sphi %s1079_s15, %s1486_s15  }
   0x4   : > { %s22_s21 = ssub.s32 %s1049_s18, %s1101_s20  ;;  %s25_s22 = sadd.s32 1, %s1045_s17 }
   0x5   : > { %p23_p0 = scmp.eq.s32.totalorder %s22_s21, 0  ;;  %p32_p1 = scmp.ne.s32.totalorder %s1045_s17, %s1041_s16 }
   0x6   : > { %p33_p2 = scmp.eq.s32.totalorder %s1049_s18, 0  ;;  %p38_p3 = scmp.ne.s32.totalorder %s1041_s16, %s1037_s15 }
   0x7   : > { %s1111_s23 = scalar_select %p23_p0, %s1045_s17, %s25_s22  }
   0x8   : > { %p34_p4 = por %p33_p2, %p32_p1  ;;  %p39_p5 = scmp.eq.s32.totalorder %s1098_s19, 0 }
   0x9   : > { %p948_p6 = scmp.lt.s32.totalorder %s1049_s18, 2  ;;  %s164_s25 = sand.u32 1, %s1045_s17  }
   0xa   : > { %p1115_p7 = por %p39_p5, %p38_p3  ;;  %s854_s26 = sshll.u32 %s164_s25, 8 }
   0xb   : > { %s883_s27 = sshll.u32 %s1049_s18, 12  ;;  %s168_s5 = scalar_lea.vmem [#allocation2], %s854_s26 }
   0xc   : > { %s1124_s30 = scalar_lea.hbm %s1478_s0, %s883_s27  ;;  %s175_s6 = sshll.u32 %s168_s5, 4  ;;  %s1126_s6 = int_to_ptr.vmem [resolvable:$true] %s175_s6 }
   0xd   : > { %p1128_p8 = pnand %p948_p6, %p34_p4  ;;  %s1133_s8 = scalar_lea.sflag [#allocation3], %s164_s25 }
   0xe   : > { %s985_s9 = scalar_lea.hbm %s1124_s30, 4096  ;;  %s990_s12 = scalar_lea.hbm %s1478_s0, 8192 }
   0xf   : > { %p986_p10 = scmp.ne.s32.totalorder %s1124_s30, %s985_s9  ;;  %p987_p11 = pneg %p1128_p8 }
  0x10   : > { %p991_p0 = scmp.lt.u32.totalorder %s1124_s30, %s1478_s0  ;;  %p992_p1 = scmp.lt.u32.totalorder %s990_s12, %s985_s9 }
  0x11   : > { %p988_p12 = pnand %p987_p11, %p986_p10  ;;  %p994_p3 = scmp.lt.u32.totalorder %s985_s9, %s1124_s30 }
  0x12   : > { %p993_p2 = por %p992_p1, %p991_p0 }
  0x13   : > { %p989_p13 = pneg %p988_p12 }
  0x14   : > { %p995_p4 = por %p994_p3, %p993_p2 }
  0x16   : > { %p996_p5 = pnand %p995_p4, %p989_p13 }
  0x18   : > { %999 = shalt.err (!%p996_p5)
}
  0x19   : > { %s1000_s15 = scalar_lea.vmem %s1126_s6, 4096  ;;  %s1051_s21 = smov [#allocation2]  }
  0x1a   : > { %p1001_p6 = scmp.ne.s32.totalorder %s1126_s6, %s1000_s15  ;;  %s1005_s22 = sshll.u32 %s1051_s21, 4  ;;  %s1006_s22 = int_to_ptr.vmem [resolvable:$false] %s1005_s22 }
  0x1b   : > { %s1007_s25 = scalar_lea.vmem %s1006_s22, 8192  ;;  %p1008_p9 = scmp.lt.s32.totalorder %s1126_s6, %s1006_s22 }
  0x1c   : > { %p1003_p10 = pnand %p1001_p6, %p987_p11  ;;  %p1009_p0 = scmp.lt.s32.totalorder %s1007_s25, %s1000_s15 }
  0x1e   : > { %p1004_p12 = pneg %p1003_p10  ;;  %p1010_p1 = por %p1009_p0, %p1008_p9 }
  0x20   : > { %p1011_p2 = pnand %p1010_p1, %p1004_p12 }
  0x22   : > { %1014 = shalt.err (!%p1011_p2)
}
  0x23   : > { %s1052_s26 = smov 128   ;;  %s1053_s27 = smov 8  }
  0x24   : > { %947 = dma.hbm_to_vmem [thread:$0]  (!%p1128_p8), %s1124_s30, 4096, %s1126_s6, %s1133_s8, %s1052_s26, %s1052_s26, %s1053_s27  }
  0x25   : > { %p183_p11 = scmp.lt.s32.totalorder %s1049_s18, 3  ;;  %p1485_p13 = scmp.ge.s32.totalorder %s1049_s18, 1 }
  0x27   : > { %p184_p3 = pnand %p1485_p13, %p183_p11 }
  0x28   : > { %s189_s28 = sand.u32 (!%p184_p3), 1, %s1041_s16  }
  0x29   : > { %187 = sbr.rel (%p184_p3) target bundleno = 351 (0x15f), region = 28  ;;  %s858_s29 = sshll.u32 (!%p184_p3), %s189_s28, 8 }
  0x2a   : > { %s190_s5 = scalar_lea.sflag (!%p184_p3), [#allocation3], %s189_s28  ;;  %s1165_s9 = scalar_lea.vmem (!%p184_p3), [#allocation2], %s858_s29 }
  0x30   : > { %1032 = dma.done.wait (%p1115_p7), %s190_s5, 4096  }
  0x31   : > { %1034 = vsyncadd (%p1115_p7), %s190_s5, 4294963200  ;;  %v983_v0 = vld [vmem:[%s1479_s1] sm:$0xff]   ;;  %v984_v1 = vld [vmem:[%s1479_s1 + $0x8] sm:$0xff]   ;;  %vm306_vm0 = vcmask 261120   ;;  %s859_s24 = sshll.u32 %s1098_s19, 5  ;;  %vm516_vm1 = vcmask 64512  }
  0x32   : > { %902 = vmatprep.subr.bf16.mxu0 %v983_v0  ;;  %v242_v2 = vld [vmem:[%s1165_s9] sm:$0xff]  ;;  %v243_v3 = vld [vmem:[%s1165_s9 + $0x8] sm:$0xff]  ;;  %938 = vmatprep.subr.bf16.mxu1 %v983_v0  ;;  %v244_v5 = vld [vmem:[%s1165_s9 + $0x10] sm:$0xff]  ;;  %p228_p7 = scmp.lt.s32.totalorder %s859_s24, 63  ;;  %p233_p8 = scmp.lt.s32.totalorder %s1098_s19, 1 }
  0x33   : > { %903 = vmatpush3.bf16.msra.mxu0 %v983_v0  ;;  %v274_v4 = vpack.c.bf16 %v243_v3, %v242_v2  ;;  %v245_v6 = vld [vmem:[%s1165_s9 + $0x18] sm:$0xff]  ;;  %940 = vmatpush3.bf16.msra.mxu1 %v983_v0  ;;  %v246_v7 = vld [vmem:[%s1165_s9 + $0x20] sm:$0xff]  ;;  %v247_v8 = vld [vmem:[%s1165_s9 + $0x28] sm:$0xff] }
  0x34   : > { %904 = vmatprep.subr.bf16.mxu0 %v984_v1  ;;  %939 = vmatprep.subr.bf16.mxu1 %v984_v1  ;;  %v275_v9 = vpack.c.bf16 %v245_v6, %v244_v5  ;;  %v276_v10 = vpack.c.bf16 %v247_v8, %v246_v7  ;;  %v258_v11 = vld [vmem:[%s1165_s9 + $0x80] sm:$0xff]  ;;  %v259_v12 = vld [vmem:[%s1165_s9 + $0x88] sm:$0xff]  ;;  %v260_v14 = vld [vmem:[%s1165_s9 + $0x90] sm:$0xff]  ;;  %s1491_s24 = smov (!%p228_p7, %s859_s24), 63  ;;  %s1493_s19 = smov (!%p233_p8, %s1098_s19), 1 }
  0x35   : > { %906 = vmatprep.mubr.msk.bf16.mxu0 %vm306_vm0, %v274_v4  ;;  %v282_v13 = vpack.c.bf16 %v259_v12, %v258_v11  ;;  %v261_v15 = vld [vmem:[%s1165_s9 + $0x98] sm:$0xff]  ;;  %v262_v16 = vld [vmem:[%s1165_s9 + $0xa0] sm:$0xff]  ;;  %v263_v18 = vld [vmem:[%s1165_s9 + $0xa8] sm:$0xff]  ;;  %s860_s6 = sshll.u32 %s1491_s24, 3  ;;  %s861_s13 = sshll.u32 %s1493_s19, 3 }
  0x36   : > { %v283_v17 = vpack.c.bf16 %v261_v15, %v260_v14  ;;  %v284_v19 = vpack.c.bf16 %v263_v18, %v262_v16  ;;  %v248_v20 = vld [vmem:[%s1165_s9 + $0x30] sm:$0xff]  ;;  %v249_v21 = vld [vmem:[%s1165_s9 + $0x38] sm:$0xff]  ;;  %v250_v22 = vld [vmem:[%s1165_s9 + $0x40] sm:$0xff]  ;;  %s1229_s12 = scalar_lea.vmem %s1480_s2, %s860_s6  ;;  %s236_s21 = scalar_lea.vmem %s1481_s3, %s861_s13 }
  0x37   : > { %905 = vmatpush3.bf16.msra.mxu0 %v984_v1  ;;  %941 = vmatpush3.bf16.msra.mxu1 %v984_v1  ;;  %v251_v23 = vld [vmem:[%s1165_s9 + $0x48] sm:$0xff]  ;;  %v264_v24 = vld [vmem:[%s1165_s9 + $0xb0] sm:$0xff]  ;;  %v265_v25 = vld [vmem:[%s1165_s9 + $0xb8] sm:$0xff]  ;;  %v277_v28 = vpack.c.bf16 %v249_v21, %v248_v20  ;;  %s240_s26 = scalar_lea.vmem %s1482_s4, %s861_s13 }
  0x38   : > { %922 = vmatprep.mubr.msk.bf16.mxu1 %vm306_vm0, %v282_v13  ;;  %v266_v26 = vld [vmem:[%s1165_s9 + $0xc0] sm:$0xff]  ;;  %v267_v27 = vld [vmem:[%s1165_s9 + $0xc8] sm:$0xff]  ;;  %v278_v29 = vpack.c.bf16 %v251_v23, %v250_v22  ;;  %v285_v30 = vpack.c.bf16 %v265_v25, %v264_v24  ;;  %v252_v32 = vld [vmem:[%s1165_s9 + $0x50] sm:$0xff] }
  0x39   : > { %v286_v31 = vpack.c.bf16 %v267_v27, %v266_v26  ;;  %v253_v33 = vld [vmem:[%s1165_s9 + $0x58] sm:$0xff]  ;;  %v254_v34 = vld [vmem:[%s1165_s9 + $0x60] sm:$0xff]  ;;  %v255_v35 = vld [vmem:[%s1165_s9 + $0x68] sm:$0xff] }
  0x3a   : > { %907 = vmatmul.mubr.msk.bf16.vlgmr.msra.gmra.mrb[0].mxu0 %vm306_vm0, %v275_v9  ;;  %923 = vmatmul.mubr.msk.bf16.vlgmr.msra.gmra.mrb[0].mxu1 %vm306_vm0, %v283_v17  ;;  %v268_v36 = vld [vmem:[%s1165_s9 + $0xd0] sm:$0xff]  ;;  %v269_v37 = vld [vmem:[%s1165_s9 + $0xd8] sm:$0xff]  ;;  %v270_v38 = vld [vmem:[%s1165_s9 + $0xe0] sm:$0xff]  ;;  %v279_v40 = vpack.c.bf16 %v253_v33, %v252_v32  ;;  %v280_v41 = vpack.c.bf16 %v255_v35, %v254_v34 }
  0x3b   : > { %910 = vmatprep.mubr.msk.bf16.mxu0 %vm306_vm0, %v276_v10  ;;  %926 = vmatprep.mubr.msk.bf16.mxu1 %vm306_vm0, %v284_v19  ;;  %v271_v39 = vld [vmem:[%s1165_s9 + $0xe8] sm:$0xff]  ;;  %v287_v42 = vpack.c.bf16 %v269_v37, %v268_v36  ;;  %v256_v44 = vld [vmem:[%s1165_s9 + $0x70] sm:$0xff]  ;;  %v257_v45 = vld [vmem:[%s1165_s9 + $0x78] sm:$0xff] }
  0x3c   : > { %v288_v43 = vpack.c.bf16 %v271_v39, %v270_v38  ;;  %v272_v46 = vld [vmem:[%s1165_s9 + $0xf0] sm:$0xff]  ;;  %v273_v47 = vld [vmem:[%s1165_s9 + $0xf8] sm:$0xff]  ;;  %v281_v48 = vpack.c.bf16 %v257_v45, %v256_v44 }
  0x3d   : > { %v289_v49 = vpack.c.bf16 %v273_v47, %v272_v46 }
  0x42   : > { %911 = vmatmul.mubr.msk.bf16.gmra.mrb[4].mxu0 %vm306_vm0, %v277_v28  ;;  %927 = vmatmul.mubr.msk.bf16.gmra.mrb[4].mxu1 %vm306_vm0, %v285_v30 }
  0x43   : > { %914 = vmatprep.mubr.msk.bf16.mxu0 %vm306_vm0, %v278_v29  ;;  %930 = vmatprep.mubr.msk.bf16.mxu1 %vm306_vm0, %v286_v31 }
  0x4a   : > { %915 = vmatmul.mubr.msk.bf16.gmra.mrb[8].mxu0 %vm306_vm0, %v279_v40  ;;  %931 = vmatmul.mubr.msk.bf16.gmra.mrb[8].mxu1 %vm306_vm0, %v287_v42 }
  0x4b   : > { %918 = vmatprep.mubr.msk.bf16.mxu0 %vm306_vm0, %v280_v41  ;;  %934 = vmatprep.mubr.msk.bf16.mxu1 %vm306_vm0, %v288_v43 }
  0x52   : > { %919 = vmatmul.mubr.msk.bf16.gmra.mrb[12].mxu0 %vm306_vm0, %v281_v48  ;;  %935 = vmatmul.mubr.msk.bf16.gmra.mrb[12].mxu1 %vm306_vm0, %v289_v49 }
 0x10d   : > { %v908_v50 = vpop.f32.mrb[0].mxu0  ;;  %v1233_v52 = vpop.f32.mrb[0].mxu1 }
 0x10e   : > { %519 = vst.msk [vmem:[%s1229_s12 + $0x10] sm:$0xff] %vm516_vm1, %v908_v50  ;;  %v389_v51 = vpop.f32.mrb[1].mxu0  ;;  %535 = vst.msk [vmem:[%s1229_s12 + $0x90] sm:$0xff] %vm516_vm1, %v1233_v52  ;;  %v1240_v55 = vpop.f32.mrb[1].mxu1  ;;  %v621_v58 = vmul.f32 %v908_v50, %v908_v50  ;;  %v552_v0 = vsel %vm516_vm1, %v908_v50, 0.0 }
 0x10f   : > { %517 = vst.msk [vmem:[%s1229_s12] sm:$0xff] %vm516_vm1, %v389_v51  ;;  %v619_v53 = vmul.f32 %v389_v51, %v389_v51  ;;  %v909_v54 = vpop.f32.mrb[2].mxu0  ;;  %533 = vst.msk [vmem:[%s1229_s12 + $0x80] sm:$0xff] %vm516_vm1, %v1240_v55  ;;  %v1247_v57 = vpop.f32.mrb[2].mxu1  ;;  %v549_v59 = vsel %vm516_vm1, %v389_v51, 0.0 }
 0x110   : > { %520 = vst.msk [vmem:[%s1229_s12 + $0x18] sm:$0xff] %vm516_vm1, %v909_v54  ;;  %v392_v56 = vpop.f32.mrb[3].mxu0  ;;  %536 = vst.msk [vmem:[%s1229_s12 + $0x98] sm:$0xff] %vm516_vm1, %v1247_v57  ;;  %v1256_v62 = vpop.f32.mrb[3].mxu1  ;;  %v622_v2 = vmul.f32 %v909_v54, %v909_v54  ;;  %v654_v6 = vsel %vm516_vm1, %v621_v58, 0.0  ;;  %v554_v7 = vsel %vm516_vm1, %v909_v54, 0.0 }
 0x111   : > { %518 = vst.msk [vmem:[%s1229_s12 + $0x8] sm:$0xff] %vm516_vm1, %v392_v56  ;;  %v550_v60 = vsel %vm516_vm1, %v392_v56, 0.0  ;;  %v620_v61 = vmul.f32 %v392_v56, %v392_v56  ;;  %534 = vst.msk [vmem:[%s1229_s12 + $0x88] sm:$0xff] %vm516_vm1, %v1256_v62  ;;  %v651_v1 = vsel %vm516_vm1, %v619_v53, 0.0 }
 0x112   : > { %v551_v63 = vadd.f32 %v550_v60, %v549_v59  ;;  %v656_v13 = vsel %vm516_vm1, %v622_v2, 0.0 }
 0x113   : > { %v652_v3 = vsel %vm516_vm1, %v620_v61, 0.0 }
 0x114   : > { %v553_v4 = vadd.f32 %v552_v0, %v551_v63  ;;  %v653_v5 = vadd.f32 %v652_v3, %v651_v1 }
 0x115   : > { %v912_v8 = vpop.f32.mrb[4].mxu0  ;;  %v1268_v12 = vpop.f32.mrb[4].mxu1 }
 0x116   : > { %v655_v9 = vadd.f32 %v654_v6, %v653_v5  ;;  %523 = vst.msk [vmem:[%s1229_s12 + $0x30] sm:$0xff] %vm516_vm1, %v912_v8  ;;  %v405_v10 = vpop.f32.mrb[5].mxu0  ;;  %v555_v11 = vadd.f32 %v554_v7, %v553_v4  ;;  %539 = vst.msk [vmem:[%s1229_s12 + $0xb0] sm:$0xff] %vm516_vm1, %v1268_v12  ;;  %v1277_v17 = vpop.f32.mrb[5].mxu1  ;;  %v625_v22 = vmul.f32 %v912_v8, %v912_v8  ;;  %v560_v29 = vsel %vm516_vm1, %v912_v8, 0.0 }
 0x117   : > { %521 = vst.msk [vmem:[%s1229_s12 + $0x20] sm:$0xff] %vm516_vm1, %v405_v10  ;;  %v556_v14 = vsel %vm516_vm1, %v405_v10, 0.0  ;;  %v623_v15 = vmul.f32 %v405_v10, %v405_v10  ;;  %v913_v16 = vpop.f32.mrb[6].mxu0  ;;  %537 = vst.msk [vmem:[%s1229_s12 + $0xa0] sm:$0xff] %vm516_vm1, %v1277_v17  ;;  %v1284_v21 = vpop.f32.mrb[6].mxu1 }
 0x118   : > { %v557_v18 = vadd.f32 %v556_v14, %v555_v11  ;;  %v657_v19 = vadd.f32 %v656_v13, %v655_v9  ;;  %524 = vst.msk [vmem:[%s1229_s12 + $0x38] sm:$0xff] %vm516_vm1, %v913_v16  ;;  %v408_v20 = vpop.f32.mrb[7].mxu0  ;;  %540 = vst.msk [vmem:[%s1229_s12 + $0xb8] sm:$0xff] %vm516_vm1, %v1284_v21  ;;  %v1293_v26 = vpop.f32.mrb[7].mxu1  ;;  %v626_v30 = vmul.f32 %v913_v16, %v913_v16  ;;  %v662_v34 = vsel %vm516_vm1, %v625_v22, 0.0 }
 0x119   : > { %v658_v23 = vsel %vm516_vm1, %v623_v15, 0.0  ;;  %522 = vst.msk [vmem:[%s1229_s12 + $0x28] sm:$0xff] %vm516_vm1, %v408_v20  ;;  %v558_v24 = vsel %vm516_vm1, %v408_v20, 0.0  ;;  %v624_v25 = vmul.f32 %v408_v20, %v408_v20  ;;  %538 = vst.msk [vmem:[%s1229_s12 + $0xa8] sm:$0xff] %vm516_vm1, %v1293_v26  ;;  %v562_v35 = vsel %vm516_vm1, %v913_v16, 0.0 }
 0x11a   : > { %v659_v27 = vadd.f32 %v658_v23, %v657_v19  ;;  %v559_v28 = vadd.f32 %v558_v24, %v557_v18  ;;  %v664_v41 = vsel %vm516_vm1, %v626_v30, 0.0 }
 0x11b   : > { %v660_v31 = vsel %vm516_vm1, %v624_v25, 0.0 }
 0x11c   : > { %v561_v32 = vadd.f32 %v560_v29, %v559_v28  ;;  %v661_v33 = vadd.f32 %v660_v31, %v659_v27 }
 0x11d   : > { %v916_v36 = vpop.f32.mrb[8].mxu0  ;;  %v1304_v40 = vpop.f32.mrb[8].mxu1 }
 0x11e   : > { %v663_v37 = vadd.f32 %v662_v34, %v661_v33  ;;  %527 = vst.msk [vmem:[%s1229_s12 + $0x50] sm:$0xff] %vm516_vm1, %v916_v36  ;;  %v421_v38 = vpop.f32.mrb[9].mxu0  ;;  %v563_v39 = vadd.f32 %v562_v35, %v561_v32  ;;  %543 = vst.msk [vmem:[%s1229_s12 + $0xd0] sm:$0xff] %vm516_vm1, %v1304_v40  ;;  %v1313_v45 = vpop.f32.mrb[9].mxu1  ;;  %v629_v50 = vmul.f32 %v916_v36, %v916_v36  ;;  %v568_v60 = vsel %vm516_vm1, %v916_v36, 0.0 }
 0x11f   : > { %525 = vst.msk [vmem:[%s1229_s12 + $0x40] sm:$0xff] %vm516_vm1, %v421_v38  ;;  %v564_v42 = vsel %vm516_vm1, %v421_v38, 0.0  ;;  %v627_v43 = vmul.f32 %v421_v38, %v421_v38  ;;  %v917_v44 = vpop.f32.mrb[10].mxu0  ;;  %541 = vst.msk [vmem:[%s1229_s12 + $0xc0] sm:$0xff] %vm516_vm1, %v1313_v45  ;;  %v1320_v49 = vpop.f32.mrb[10].mxu1  ;;  %v635_v32 = vmul.f32 %v1240_v55, %v1240_v55 }
 0x120   : > { %v565_v46 = vadd.f32 %v564_v42, %v563_v39  ;;  %v665_v47 = vadd.f32 %v664_v41, %v663_v37  ;;  %528 = vst.msk [vmem:[%s1229_s12 + $0x58] sm:$0xff] %vm516_vm1, %v917_v44  ;;  %v424_v48 = vpop.f32.mrb[11].mxu0  ;;  %544 = vst.msk [vmem:[%s1229_s12 + $0xd8] sm:$0xff] %vm516_vm1, %v1320_v49  ;;  %v1329_v56 = vpop.f32.mrb[11].mxu1  ;;  %v630_v61 = vmul.f32 %v917_v44, %v917_v44  ;;  %v670_v2 = vsel %vm516_vm1, %v629_v50, 0.0 }
 0x121   : > { %v666_v51 = vsel %vm516_vm1, %v627_v43, 0.0  ;;  %526 = vst.msk [vmem:[%s1229_s12 + $0x48] sm:$0xff] %vm516_vm1, %v424_v48  ;;  %v566_v53 = vsel %vm516_vm1, %v424_v48, 0.0  ;;  %v628_v54 = vmul.f32 %v424_v48, %v424_v48  ;;  %542 = vst.msk [vmem:[%s1229_s12 + $0xc8] sm:$0xff] %vm516_vm1, %v1329_v56  ;;  %v570_v3 = vsel %vm516_vm1, %v917_v44, 0.0 }
 0x122   : > { %v667_v58 = vadd.f32 %v666_v51, %v665_v47  ;;  %v567_v59 = vadd.f32 %v566_v53, %v565_v46  ;;  %v672_v9 = vsel %vm516_vm1, %v630_v61, 0.0  ;;  %v580_v37 = vsel %vm516_vm1, %v1240_v55, 0.0 }
 0x123   : > { %v668_v63 = vsel %vm516_vm1, %v628_v54, 0.0  ;;  %v682_v42 = vsel %vm516_vm1, %v635_v32, 0.0  ;;  %v636_v43 = vmul.f32 %v1256_v62, %v1256_v62  ;;  %v637_v47 = vmul.f32 %v1233_v52, %v1233_v52 }
 0x124   : > { %v569_v0 = vadd.f32 %v568_v60, %v567_v59  ;;  %v669_v1 = vadd.f32 %v668_v63, %v667_v58  ;;  %v582_v48 = vsel %vm516_vm1, %v1256_v62, 0.0  ;;  %v584_v55 = vsel %vm516_vm1, %v1233_v52, 0.0 }
 0x125   : > { %v920_v4 = vpop.f32.mrb[12].mxu0  ;;  %v1340_v8 = vpop.f32.mrb[12].mxu1  ;;  %v638_v53 = vmul.f32 %v1247_v57, %v1247_v57  ;;  %v684_v54 = vsel %vm516_vm1, %v636_v43, 0.0  ;;  %v639_v58 = vmul.f32 %v1277_v17, %v1277_v17  ;;  %v686_v61 = vsel %vm516_vm1, %v637_v47, 0.0 }
 0x126   : > { %v671_v5 = vadd.f32 %v670_v2, %v669_v1  ;;  %531 = vst.msk [vmem:[%s1229_s12 + $0x70] sm:$0xff] %vm516_vm1, %v920_v4  ;;  %v437_v6 = vpop.f32.mrb[13].mxu0  ;;  %v571_v7 = vadd.f32 %v570_v3, %v569_v0  ;;  %547 = vst.msk [vmem:[%s1229_s12 + $0xf0] sm:$0xff] %vm516_vm1, %v1340_v8  ;;  %v1349_v14 = vpop.f32.mrb[13].mxu1  ;;  %v633_v20 = vmul.f32 %v920_v4, %v920_v4  ;;  %v576_v29 = vsel %vm516_vm1, %v920_v4, 0.0 }
 0x127   : > { %529 = vst.msk [vmem:[%s1229_s12 + $0x60] sm:$0xff] %vm516_vm1, %v437_v6  ;;  %v572_v10 = vsel %vm516_vm1, %v437_v6, 0.0  ;;  %v631_v11 = vmul.f32 %v437_v6, %v437_v6  ;;  %v921_v13 = vpop.f32.mrb[14].mxu0  ;;  %545 = vst.msk [vmem:[%s1229_s12 + $0xe0] sm:$0xff] %vm516_vm1, %v1349_v14  ;;  %v1356_v19 = vpop.f32.mrb[14].mxu1  ;;  %v586_v62 = vsel %vm516_vm1, %v1247_v57, 0.0  ;;  %v640_v3 = vmul.f32 %v1293_v26, %v1293_v26 }
 0x128   : > { %v573_v15 = vadd.f32 %v572_v10, %v571_v7  ;;  %v673_v16 = vadd.f32 %v672_v9, %v671_v5  ;;  %532 = vst.msk [vmem:[%s1229_s12 + $0x78] sm:$0xff] %vm516_vm1, %v921_v13  ;;  %v440_v18 = vpop.f32.mrb[15].mxu0  ;;  %548 = vst.msk [vmem:[%s1229_s12 + $0xf8] sm:$0xff] %vm516_vm1, %v1356_v19  ;;  %v1365_v25 = vpop.f32.mrb[15].mxu1  ;;  %v634_v30 = vmul.f32 %v921_v13, %v921_v13  ;;  %v678_v35 = vsel %vm516_vm1, %v633_v20, 0.0 }
 0x129   : > { %v674_v22 = vsel %vm516_vm1, %v631_v11, 0.0  ;;  %530 = vst.msk [vmem:[%s1229_s12 + $0x68] sm:$0xff] %vm516_vm1, %v440_v18  ;;  %v574_v23 = vsel %vm516_vm1, %v440_v18, 0.0  ;;  %v632_v24 = vmul.f32 %v440_v18, %v440_v18  ;;  %546 = vst.msk [vmem:[%s1229_s12 + $0xe8] sm:$0xff] %vm516_vm1, %v1365_v25  ;;  %v578_v36 = vsel %vm516_vm1, %v921_v13, 0.0 }
 0x12a   : > { %v675_v27 = vadd.f32 %v674_v22, %v673_v16  ;;  %v575_v28 = vadd.f32 %v574_v23, %v573_v15  ;;  %v680_v41 = vsel %vm516_vm1, %v634_v30, 0.0  ;;  %v588_v63 = vsel %vm516_vm1, %v1277_v17, 0.0 }
 0x12b   : > { %v676_v31 = vsel %vm516_vm1, %v632_v24, 0.0  ;;  %v688_v1 = vsel %vm516_vm1, %v638_v53, 0.0  ;;  %v690_v2 = vsel %vm516_vm1, %v639_v58, 0.0  ;;  %v641_v6 = vmul.f32 %v1268_v12, %v1268_v12 }
 0x12c   : > { %v577_v33 = vadd.f32 %v576_v29, %v575_v28  ;;  %v677_v34 = vadd.f32 %v676_v31, %v675_v27  ;;  %v590_v57 = vsel %vm516_vm1, %v1293_v26, 0.0  ;;  %v592_v17 = vsel %vm516_vm1, %v1268_v12, 0.0 }
 0x12d   : > { %v642_v10 = vmul.f32 %v1284_v21, %v1284_v21  ;;  %v692_v11 = vsel %vm516_vm1, %v640_v3, 0.0  ;;  %v643_v13 = vmul.f32 %v1313_v45, %v1313_v45  ;;  %v694_v18 = vsel %vm516_vm1, %v641_v6, 0.0 }
 0x12e   : > { %v679_v38 = vadd.f32 %v678_v35, %v677_v34  ;;  %v579_v39 = vadd.f32 %v578_v36, %v577_v33  ;;  %v594_v26 = vsel %vm516_vm1, %v1284_v21, 0.0  ;;  %v596_v20 = vsel %vm516_vm1, %v1313_v45, 0.0 }
 0x12f   : > { %v696_v23 = vsel %vm516_vm1, %v642_v10, 0.0  ;;  %v698_v24 = vsel %vm516_vm1, %v643_v13, 0.0  ;;  %v644_v27 = vmul.f32 %v1329_v56, %v1329_v56  ;;  %v645_v30 = vmul.f32 %v1304_v40, %v1304_v40 }
 0x130   : > { %v581_v44 = vadd.f32 %v580_v37, %v579_v39  ;;  %v681_v46 = vadd.f32 %v680_v41, %v679_v38  ;;  %v598_v21 = vsel %vm516_vm1, %v1329_v56, 0.0  ;;  %v600_v45 = vsel %vm516_vm1, %v1304_v40, 0.0 }
 0x131   : > { %v646_v33 = vmul.f32 %v1320_v49, %v1320_v49  ;;  %v700_v34 = vsel %vm516_vm1, %v644_v27, 0.0  ;;  %v647_v35 = vmul.f32 %v1349_v14, %v1349_v14  ;;  %v702_v38 = vsel %vm516_vm1, %v645_v30, 0.0 }
 0x132   : > { %v683_v50 = vadd.f32 %v682_v42, %v681_v46  ;;  %v583_v51 = vadd.f32 %v582_v48, %v581_v44  ;;  %v602_v56 = vsel %vm516_vm1, %v1320_v49, 0.0  ;;  %v604_v39 = vsel %vm516_vm1, %v1349_v14, 0.0 }
 0x133   : > { %v704_v42 = vsel %vm516_vm1, %v646_v33, 0.0  ;;  %v706_v43 = vsel %vm516_vm1, %v647_v35, 0.0  ;;  %v648_v44 = vmul.f32 %v1365_v25, %v1365_v25  ;;  %v649_v48 = vmul.f32 %v1340_v8, %v1340_v8 }
 0x134   : > { %v585_v59 = vadd.f32 %v584_v55, %v583_v51  ;;  %v685_v60 = vadd.f32 %v684_v54, %v683_v50  ;;  %v606_v49 = vsel %vm516_vm1, %v1365_v25, 0.0  ;;  %v608_v51 = vsel %vm516_vm1, %v1340_v8, 0.0 }
 0x135   : > { %v650_v55 = vmul.f32 %v1356_v19, %v1356_v19  ;;  %v708_v53 = vsel %vm516_vm1, %v648_v44, 0.0 }
 0x136   : > { %v687_v0 = vadd.f32 %v686_v61, %v685_v60  ;;  %v587_v52 = vadd.f32 %v586_v62, %v585_v59  ;;  %v710_v59 = vsel %vm516_vm1, %v649_v48, 0.0  ;;  %v610_v60 = vsel %vm516_vm1, %v1356_v19, 0.0 }
 0x137   : > { %v712_v62 = vsel %vm516_vm1, %v650_v55, 0.0 }
 0x138   : > { %v589_v4 = vadd.f32 %v588_v63, %v587_v52  ;;  %v689_v5 = vadd.f32 %v688_v1, %v687_v0 }
 0x13a   : > { %v691_v7 = vadd.f32 %v690_v2, %v689_v5  ;;  %v591_v9 = vadd.f32 %v590_v57, %v589_v4 }
 0x13c   : > { %v593_v15 = vadd.f32 %v592_v17, %v591_v9  ;;  %v693_v16 = vadd.f32 %v692_v11, %v691_v7 }
 0x13e   : > { %v695_v22 = vadd.f32 %v694_v18, %v693_v16  ;;  %v595_v12 = vadd.f32 %v594_v26, %v593_v15 }
 0x140   : > { %v597_v28 = vadd.f32 %v596_v20, %v595_v12  ;;  %v697_v29 = vadd.f32 %v696_v23, %v695_v22 }
 0x142   : > { %v699_v31 = vadd.f32 %v698_v24, %v697_v29  ;;  %v599_v32 = vadd.f32 %v598_v21, %v597_v28 }
 0x144   : > { %v601_v36 = vadd.f32 %v600_v45, %v599_v32  ;;  %v701_v37 = vadd.f32 %v700_v34, %v699_v31 }
 0x146   : > { %v703_v41 = vadd.f32 %v702_v38, %v701_v37  ;;  %v603_v40 = vadd.f32 %v602_v56, %v601_v36 }
 0x148   : > { %v605_v46 = vadd.f32 %v604_v39, %v603_v40  ;;  %v705_v47 = vadd.f32 %v704_v42, %v703_v41 }
 0x14a   : > { %v707_v14 = vadd.f32 %v706_v43, %v705_v47  ;;  %v607_v50 = vadd.f32 %v606_v49, %v605_v46 }
 0x14c   : > { %v609_v54 = vadd.f32 %v608_v51, %v607_v50  ;;  %v709_v58 = vadd.f32 %v708_v53, %v707_v14 }
 0x14e   : > { %v611_v25 = vadd.f32 %v610_v60, %v609_v54  ;;  %v711_v61 = vadd.f32 %v710_v59, %v709_v58 }
 0x150   : > { %v612_v63 = vrot.slane %v611_v25, 4  ;;  %v713_v0 = vadd.f32 %v712_v62, %v711_v61 }
 0x152   : > { %v613_v8 = vadd.f32 %v612_v63, %v611_v25  ;;  %v714_v52 = vrot.slane %v713_v0, 4 }
 0x154   : > { %v614_v1 = vrot.slane %v613_v8, 2  ;;  %v715_v2 = vadd.f32 %v714_v52, %v713_v0 }
 0x156   : > { %v615_v3 = vadd.f32 %v614_v1, %v613_v8  ;;  %v716_v4 = vrot.slane %v715_v2, 2 }
 0x158   : > { %v616_v5 = vrot.slane %v615_v3, 1  ;;  %v717_v6 = vadd.f32 %v716_v4, %v715_v2 }
 0x15a   : > { %v617_v19 = vadd.f32 %v616_v5, %v615_v3  ;;  %v718_v57 = vrot.slane %v717_v6, 1 }
 0x15c   : > { %618 = vst.msk [vmem:[%s236_s21] sm:$0xff] %vm516_vm1, %v617_v19  ;;  %v719_v7 = vadd.f32 %v718_v57, %v717_v6 }
 0x15e   : > { %720 = vst.msk [vmem:[%s240_s26] sm:$0xff] %vm516_vm1, %v719_v7 }
 0x15f PF: > { %p15_p9 = scmp.ge.s32.totalorder %s1101_s20, 4   ;;  %s1486_s15 = smov %s1041_s16 }
 0x160   : > { %s1487_s16 = smov %s1045_s17  ;;  %s1488_s17 = smov %s1111_s23 }
 0x161   : > { %s1489_s18 = smov %s1101_s20  ;;  %17 = sbr.rel (!%p15_p9) target bundleno = 3 (0x3), region = 92 }
 0x168   :  { %771 = vsyncpa [#allocation3], 1 }
 0x169   :  { %773 = vsyncpa [#allocation3 + $0x1], 1 }

// kernel: bottleneck_forward.6
= control target key start
LH: loop header
LB: loop body
LE: loop exit
PB: predicated region body
PF: predicated region fallthrough
CT: control target
= control target key end

     0   :  { %s1110_s21 = smov 0   ;;  %s1479_s0 = inlined_call_operand.vmem [shape: f32[512,8], index: 0, kind: input, shape index: {}]   ;;  %s1480_s1 = inlined_call_operand.vmem [shape: f32[1,8], index: 1, kind: input, shape index: {}]   ;;  %s1481_s2 = inlined_call_operand.vmem [shape: f32[1,8], index: 2, kind: input, shape index: {}]   ;;  %s1482_s3 = inlined_call_operand.vmem [shape: bf16[8,32], index: 3, kind: input, shape index: {}]   ;;  %s1483_s4 = inlined_call_operand.vmem [shape: f32[512,32], index: 4, kind: output, shape index: {0}]   ;;  %s1484_s5 = inlined_call_operand.vmem [shape: f32[16,32], index: 5, kind: output, shape index: {1}]   ;;  %s1485_s6 = inlined_call_operand.vmem [shape: f32[16,32], index: 6, kind: output, shape index: {2}]  }
   0x1 LB: > { %s1116_s22 = sadd.s32 4294967295, %s1073_s21   ;;  %p977_p0 = scmp.ge.s32.totalorder %s1073_s21, 1  ;;  %s1073_s21 = sphi %s1110_s21, %s17_s21  }
   0x2   : > { %p218_p1 = scmp.lt.s32.totalorder %s1073_s21, 3 }
   0x4   : > { %p219_p2 = pnand %p977_p0, %p218_p1 }
   0x5   : > { %v435_v0 = vld [vmem:[%s1482_s3] sm:$0xf] (!%p219_p2)  ;;  %vm485_vm0 = vcmask (!%p219_p2), 1043456   ;;  %s978_s25 = sshll.u32 (!%p219_p2), %s1116_s22, 5  ;;  %vm436_vm1 = vcmask (!%p219_p2), 64512   ;;  %vm650_vm2 = vcmask (!%p219_p2), 261120  }
   0x6   : > { %222 = sbr.rel (%p219_p2) target bundleno = 319 (0x13f), region = 36  ;;  %1057 = vmatprep.subr.msk.bf16.mxu0 (!%p219_p2), %vm485_vm0, %v435_v0  ;;  %v487_v1 = vsel (!%p219_p2), %vm485_vm0, %v435_v0, 0  ;;  %p257_p3 = scmp.lt.s32.totalorder (!%p219_p2), %s978_s25, 63  ;;  %1058 = vmatprep.subr.msk.bf16.mxu1 (!%p219_p2), %vm485_vm0, %v435_v0  ;;  %v1130_v2 = vld [vmem:[%s1480_s1] ss:$0 sm:$0xff] (!%p219_p2) }
   0x7   : > { %1022 = vmatpush3.bf16.msra.mxu0 (!%p219_p2), %v487_v1  ;;  %1056 = vmatpush3.bf16.msra.mxu1 (!%p219_p2), %v487_v1  ;;  %v1142_v3 = vld [vmem:[%s1481_s2] ss:$0 sm:$0xff] (!%p219_p2)  ;;  %p268_p4 = scmp.lt.s32.totalorder (!%p219_p2), %s1116_s22, 1 }
   0xd   : > { %s1487_s25 = smov (!%p257_p3, %s978_s25), 63  ;;  %s1489_s22 = smov (!%p268_p4, %s1116_s22), 1 }
   0xe   : > { %s979_s26 = sshll.u32 %s1487_s25, 3  ;;  %s982_s13 = sshll.u32 %s1489_s22, 3 }
   0xf   : > { %s1137_s7 = scalar_lea.vmem %s1479_s0, %s979_s26  ;;  %s1264_s12 = scalar_lea.vmem %s1483_s4, %s979_s26 }
  0x10   : > { %v277_v4 = vld [vmem:[%s1137_s7] sm:$0xff]  ;;  %v278_v5 = vld [vmem:[%s1137_s7 + $0x8] sm:$0xff]  ;;  %v279_v6 = vld [vmem:[%s1137_s7 + $0x10] sm:$0xff]  ;;  %s271_s16 = scalar_lea.vmem %s1484_s5, %s982_s13  ;;  %s275_s19 = scalar_lea.vmem %s1485_s6, %s982_s13 }
  0x11   : > { %v316_v7 = vmul.f32 %v1130_v2, %v277_v4  ;;  %v317_v8 = vmul.f32 %v1130_v2, %v278_v5  ;;  %v280_v9 = vld [vmem:[%s1137_s7 + $0x18] sm:$0xff]  ;;  %v318_v10 = vmul.f32 %v1130_v2, %v279_v6  ;;  %v281_v11 = vld [vmem:[%s1137_s7 + $0x20] sm:$0xff]  ;;  %v282_v12 = vld [vmem:[%s1137_s7 + $0x28] sm:$0xff] }
  0x12   : > { %v319_v13 = vmul.f32 %v1130_v2, %v280_v9  ;;  %v320_v14 = vmul.f32 %v1130_v2, %v281_v11  ;;  %v321_v15 = vmul.f32 %v1130_v2, %v282_v12  ;;  %v283_v16 = vld [vmem:[%s1137_s7 + $0x30] sm:$0xff]  ;;  %v284_v17 = vld [vmem:[%s1137_s7 + $0x38] sm:$0xff]  ;;  %v285_v26 = vld [vmem:[%s1137_s7 + $0x40] sm:$0xff] }
  0x13   : > { %v355_v18 = vadd.f32 %v1142_v3, %v316_v7  ;;  %v356_v19 = vadd.f32 %v1142_v3, %v317_v8  ;;  %v357_v20 = vadd.f32 %v1142_v3, %v318_v10  ;;  %v322_v21 = vmul.f32 %v1130_v2, %v283_v16  ;;  %v286_v27 = vld [vmem:[%s1137_s7 + $0x48] sm:$0xff]  ;;  %v287_v32 = vld [vmem:[%s1137_s7 + $0x50] sm:$0xff]  ;;  %v288_v37 = vld [vmem:[%s1137_s7 + $0x58] sm:$0xff] }
  0x14   : > { %v358_v22 = vadd.f32 %v1142_v3, %v319_v13  ;;  %v359_v23 = vadd.f32 %v1142_v3, %v320_v14  ;;  %v360_v24 = vadd.f32 %v1142_v3, %v321_v15  ;;  %v323_v25 = vmul.f32 %v1130_v2, %v284_v17  ;;  %v289_v38 = vld [vmem:[%s1137_s7 + $0x60] sm:$0xff]  ;;  %v290_v43 = vld [vmem:[%s1137_s7 + $0x68] sm:$0xff]  ;;  %v291_v44 = vld [vmem:[%s1137_s7 + $0x70] sm:$0xff] }
  0x15   : > { %v387_v28 = vmax.f32 %v355_v18, 0.0  ;;  %v388_v29 = vmax.f32 %v356_v19, 0.0  ;;  %v389_v30 = vmax.f32 %v357_v20, 0.0  ;;  %v361_v31 = vadd.f32 %v1142_v3, %v322_v21  ;;  %v292_v53 = vld [vmem:[%s1137_s7 + $0x78] sm:$0xff]  ;;  %v293_v57 = vld [vmem:[%s1137_s7 + $0x80] sm:$0xff]  ;;  %v294_v62 = vld [vmem:[%s1137_s7 + $0x88] sm:$0xff] }
  0x16   : > { %v390_v33 = vmax.f32 %v358_v22, 0.0  ;;  %v391_v34 = vmax.f32 %v359_v23, 0.0  ;;  %v392_v35 = vmax.f32 %v360_v24, 0.0  ;;  %v362_v36 = vadd.f32 %v1142_v3, %v323_v25  ;;  %v295_v1 = vld [vmem:[%s1137_s7 + $0x90] sm:$0xff]  ;;  %v296_v4 = vld [vmem:[%s1137_s7 + $0x98] sm:$0xff]  ;;  %v297_v8 = vld [vmem:[%s1137_s7 + $0xa0] sm:$0xff] }
  0x17   : > { %v419_v39 = vpack.c.bf16 %v388_v29, %v387_v28  ;;  %v393_v40 = vmax.f32 %v361_v31, 0.0  ;;  %v324_v41 = vmul.f32 %v1130_v2, %v285_v26  ;;  %v325_v42 = vmul.f32 %v1130_v2, %v286_v27  ;;  %v298_v13 = vld [vmem:[%s1137_s7 + $0xa8] sm:$0xff]  ;;  %v299_v18 = vld [vmem:[%s1137_s7 + $0xb0] sm:$0xff]  ;;  %v300_v23 = vld [vmem:[%s1137_s7 + $0xb8] sm:$0xff] }
  0x18   : > { %v420_v45 = vpack.c.bf16 %v390_v33, %v389_v30  ;;  %v421_v46 = vpack.c.bf16 %v392_v35, %v391_v34  ;;  %v394_v47 = vmax.f32 %v362_v36, 0.0  ;;  %v326_v48 = vmul.f32 %v1130_v2, %v287_v32  ;;  %v301_v28 = vld [vmem:[%s1137_s7 + $0xc0] sm:$0xff]  ;;  %v302_v33 = vld [vmem:[%s1137_s7 + $0xc8] sm:$0xff] }
  0x19   : > { %1023 = vmatprep.mubr.msk.bf16.mxu0 %vm436_vm1, %v419_v39  ;;  %v363_v49 = vadd.f32 %v1142_v3, %v324_v41  ;;  %v364_v50 = vadd.f32 %v1142_v3, %v325_v42  ;;  %v327_v51 = vmul.f32 %v1130_v2, %v288_v37  ;;  %v328_v52 = vmul.f32 %v1130_v2, %v289_v38  ;;  %v303_v38 = vld [vmem:[%s1137_s7 + $0xd0] sm:$0xff] }
  0x1a   : > { %1024 = vmatmul.mubr.msk.bf16.vlgmr.msra.gmra.mrb[0].mxu0 %vm436_vm1, %v420_v45  ;;  %v365_v54 = vadd.f32 %v1142_v3, %v326_v48  ;;  %v329_v55 = vmul.f32 %v1130_v2, %v290_v43  ;;  %v330_v56 = vmul.f32 %v1130_v2, %v291_v44  ;;  %v331_v0 = vmul.f32 %v1130_v2, %v292_v53  ;;  %v304_v43 = vld [vmem:[%s1137_s7 + $0xd8] sm:$0xff]  ;;  %v305_v48 = vld [vmem:[%s1137_s7 + $0xe0] sm:$0xff] }
  0x1b   : > { %1027 = vmatprep.mubr.msk.bf16.mxu0 %vm436_vm1, %v421_v46  ;;  %v395_v58 = vmax.f32 %v363_v49, 0.0  ;;  %v396_v59 = vmax.f32 %v364_v50, 0.0  ;;  %v366_v60 = vadd.f32 %v1142_v3, %v327_v51  ;;  %v367_v61 = vadd.f32 %v1142_v3, %v328_v52  ;;  %v306_v49 = vld [vmem:[%s1137_s7 + $0xe8] sm:$0xff] }
  0x1c   : > { %v368_v63 = vadd.f32 %v1142_v3, %v329_v55  ;;  %v422_v5 = vpack.c.bf16 %v394_v47, %v393_v40  ;;  %v397_v6 = vmax.f32 %v365_v54, 0.0  ;;  %v332_v7 = vmul.f32 %v1130_v2, %v293_v57 }
  0x1d   : > { %v423_v9 = vpack.c.bf16 %v396_v59, %v395_v58  ;;  %v398_v10 = vmax.f32 %v366_v60, 0.0  ;;  %v1200_v11 = vadd.f32 %v1142_v3, %v330_v56  ;;  %v333_v12 = vmul.f32 %v1130_v2, %v294_v62 }
  0x1e   : > { %v399_v14 = vmax.f32 %v367_v61, 0.0  ;;  %v371_v15 = vadd.f32 %v1142_v3, %v332_v7  ;;  %v334_v16 = vmul.f32 %v1130_v2, %v295_v1  ;;  %v335_v17 = vmul.f32 %v1130_v2, %v296_v4 }
  0x1f   : > { %v400_v19 = vmax.f32 %v368_v63, 0.0  ;;  %v370_v20 = vadd.f32 %v1142_v3, %v331_v0  ;;  %v372_v21 = vadd.f32 %v1142_v3, %v333_v12  ;;  %v336_v22 = vmul.f32 %v1130_v2, %v297_v8  ;;  %v307_v8 = vld [vmem:[%s1137_s7 + $0xf0] sm:$0xff] }
  0x20   : > { %v403_v24 = vmax.f32 %v371_v15, 0.0  ;;  %v373_v25 = vadd.f32 %v1142_v3, %v334_v16  ;;  %v374_v26 = vadd.f32 %v1142_v3, %v335_v17  ;;  %v337_v27 = vmul.f32 %v1130_v2, %v298_v13 }
  0x21   : > { %v424_v29 = vpack.c.bf16 %v398_v10, %v397_v6  ;;  %v404_v30 = vmax.f32 %v372_v21, 0.0  ;;  %v375_v31 = vadd.f32 %v1142_v3, %v336_v22  ;;  %v338_v32 = vmul.f32 %v1130_v2, %v299_v18 }
  0x22   : > { %1028 = vmatmul.mubr.msk.bf16.gmra.mrb[4].mxu0 %vm436_vm1, %v422_v5  ;;  %v405_v34 = vmax.f32 %v373_v25, 0.0  ;;  %v406_v35 = vmax.f32 %v374_v26, 0.0  ;;  %v376_v36 = vadd.f32 %v1142_v3, %v337_v27  ;;  %v339_v37 = vmul.f32 %v1130_v2, %v300_v23 }
  0x23   : > { %1031 = vmatprep.mubr.msk.bf16.mxu0 %vm436_vm1, %v423_v9  ;;  %v427_v39 = vpack.c.bf16 %v404_v30, %v403_v24  ;;  %v407_v40 = vmax.f32 %v375_v31, 0.0  ;;  %v377_v41 = vadd.f32 %v1142_v3, %v338_v32  ;;  %v340_v42 = vmul.f32 %v1130_v2, %v301_v28  ;;  %v308_v9 = vld [vmem:[%s1137_s7 + $0xf8] sm:$0xff] }
  0x24   : > { %v428_v44 = vpack.c.bf16 %v406_v35, %v405_v34  ;;  %v408_v45 = vmax.f32 %v376_v36, 0.0  ;;  %v378_v46 = vadd.f32 %v1142_v3, %v339_v37  ;;  %v341_v47 = vmul.f32 %v1130_v2, %v302_v33 }
  0x25   : > { %v425_v50 = vpack.c.bf16 %v400_v19, %v399_v14  ;;  %1039 = vmatprep.mubr.msk.bf16.mxu1 %vm436_vm1, %v427_v39  ;;  %v409_v51 = vmax.f32 %v377_v41, 0.0  ;;  %v379_v52 = vadd.f32 %v1142_v3, %v340_v42  ;;  %v342_v53 = vmul.f32 %v1130_v2, %v303_v38 }
  0x26   : > { %1040 = vmatmul.mubr.msk.bf16.vlgmr.msra.gmra.mrb[0].mxu1 %vm436_vm1, %v428_v44  ;;  %v429_v54 = vpack.c.bf16 %v408_v45, %v407_v40  ;;  %v410_v55 = vmax.f32 %v378_v46, 0.0  ;;  %v380_v56 = vadd.f32 %v1142_v3, %v341_v47  ;;  %v343_v57 = vmul.f32 %v1130_v2, %v304_v43 }
  0x27   : > { %v411_v58 = vmax.f32 %v379_v52, 0.0  ;;  %v344_v59 = vmul.f32 %v1130_v2, %v305_v48  ;;  %v345_v60 = vmul.f32 %v1130_v2, %v306_v49  ;;  %v401_v62 = vmax.f32 %v1200_v11, 0.0 }
  0x28   : > { %1043 = vmatprep.mubr.msk.bf16.mxu1 %vm436_vm1, %v429_v54  ;;  %v412_v61 = vmax.f32 %v380_v56, 0.0  ;;  %v402_v63 = vmax.f32 %v370_v20, 0.0  ;;  %v430_v0 = vpack.c.bf16 %v410_v55, %v409_v51  ;;  %v381_v1 = vadd.f32 %v1142_v3, %v342_v53 }
  0x29   : > { %v382_v4 = vadd.f32 %v1142_v3, %v343_v57  ;;  %v383_v6 = vadd.f32 %v1142_v3, %v344_v59  ;;  %v384_v7 = vadd.f32 %v1142_v3, %v345_v60  ;;  %v346_v13 = vmul.f32 %v1130_v2, %v307_v8 }
  0x2a   : > { %1032 = vmatmul.mubr.msk.bf16.gmra.mrb[8].mxu0 %vm436_vm1, %v424_v29  ;;  %v431_v5 = vpack.c.bf16 %v412_v61, %v411_v58  ;;  %v426_v10 = vpack.c.bf16 %v402_v63, %v401_v62  ;;  %v413_v12 = vmax.f32 %v381_v1, 0.0  ;;  %v347_v14 = vmul.f32 %v1130_v2, %v308_v9 }
  0x2b   : > { %1035 = vmatprep.mubr.msk.bf16.mxu0 %vm436_vm1, %v425_v50  ;;  %v414_v11 = vmax.f32 %v382_v4, 0.0  ;;  %v415_v15 = vmax.f32 %v383_v6, 0.0  ;;  %v416_v16 = vmax.f32 %v384_v7, 0.0  ;;  %v385_v18 = vadd.f32 %v1142_v3, %v346_v13 }
  0x2c   : > { %v386_v19 = vadd.f32 %v1142_v3, %v347_v14 }
  0x2d   : > { %v432_v17 = vpack.c.bf16 %v414_v11, %v413_v12  ;;  %v433_v20 = vpack.c.bf16 %v416_v16, %v415_v15  ;;  %v417_v21 = vmax.f32 %v385_v18, 0.0 }
  0x2e   : > { %1044 = vmatmul.mubr.msk.bf16.gmra.mrb[4].mxu1 %vm436_vm1, %v430_v0  ;;  %v418_v22 = vmax.f32 %v386_v19, 0.0 }
  0x2f   : > { %1047 = vmatprep.mubr.msk.bf16.mxu1 %vm436_vm1, %v431_v5 }
  0x30   : > { %v434_v23 = vpack.c.bf16 %v418_v22, %v417_v21 }
  0x32   : > { %1036 = vmatmul.mubr.msk.bf16.gmra.mrb[12].mxu0 %vm436_vm1, %v426_v10 }
  0x36   : > { %1048 = vmatmul.mubr.msk.bf16.gmra.mrb[8].mxu1 %vm436_vm1, %v432_v17 }
  0x37   : > { %1051 = vmatprep.mubr.msk.bf16.mxu1 %vm436_vm1, %v433_v20 }
  0x3e   : > { %1052 = vmatmul.mubr.msk.bf16.gmra.mrb[12].mxu1 %vm436_vm1, %v434_v23 }
  0xed   : > { %v1025_v2 = vpop.f32.mrb[0].mxu0 }
  0xee   : > { %653 = vst.msk [vmem:[%s1264_s12 + $0x10] sm:$0xff] %vm650_vm2, %v1025_v2  ;;  %v523_v3 = vpop.f32.mrb[1].mxu0  ;;  %v755_v27 = vmul.f32 %v1025_v2, %v1025_v2  ;;  %v686_v32 = vsel %vm650_vm2, %v1025_v2, 0.0 }
  0xef   : > { %651 = vst.msk [vmem:[%s1264_s12] sm:$0xff] %vm650_vm2, %v523_v3  ;;  %v753_v24 = vmul.f32 %v523_v3, %v523_v3  ;;  %v1026_v25 = vpop.f32.mrb[2].mxu0  ;;  %v683_v28 = vsel %vm650_vm2, %v523_v3, 0.0 }
  0xf0   : > { %654 = vst.msk [vmem:[%s1264_s12 + $0x18] sm:$0xff] %vm650_vm2, %v1026_v25  ;;  %v526_v26 = vpop.f32.mrb[3].mxu0  ;;  %v756_v34 = vmul.f32 %v1026_v25, %v1026_v25  ;;  %v788_v38 = vsel %vm650_vm2, %v755_v27, 0.0  ;;  %v688_v39 = vsel %vm650_vm2, %v1026_v25, 0.0 }
  0xf1   : > { %652 = vst.msk [vmem:[%s1264_s12 + $0x8] sm:$0xff] %vm650_vm2, %v526_v26  ;;  %v684_v29 = vsel %vm650_vm2, %v526_v26, 0.0  ;;  %v754_v30 = vmul.f32 %v526_v26, %v526_v26  ;;  %v785_v33 = vsel %vm650_vm2, %v753_v24, 0.0 }
  0xf2   : > { %v685_v31 = vadd.f32 %v684_v29, %v683_v28  ;;  %v790_v44 = vsel %vm650_vm2, %v756_v34, 0.0 }
  0xf3   : > { %v786_v35 = vsel %vm650_vm2, %v754_v30, 0.0 }
  0xf4   : > { %v687_v36 = vadd.f32 %v686_v32, %v685_v31  ;;  %v787_v37 = vadd.f32 %v786_v35, %v785_v33 }
  0xf5   : > { %v1029_v40 = vpop.f32.mrb[4].mxu0 }
  0xf6   : > { %v789_v41 = vadd.f32 %v788_v38, %v787_v37  ;;  %657 = vst.msk [vmem:[%s1264_s12 + $0x30] sm:$0xff] %vm650_vm2, %v1029_v40  ;;  %v539_v42 = vpop.f32.mrb[5].mxu0  ;;  %v689_v43 = vadd.f32 %v688_v39, %v687_v36  ;;  %v759_v51 = vmul.f32 %v1029_v40, %v1029_v40  ;;  %v694_v58 = vsel %vm650_vm2, %v1029_v40, 0.0 }
  0xf7   : > { %655 = vst.msk [vmem:[%s1264_s12 + $0x20] sm:$0xff] %vm650_vm2, %v539_v42  ;;  %v690_v45 = vsel %vm650_vm2, %v539_v42, 0.0  ;;  %v757_v46 = vmul.f32 %v539_v42, %v539_v42  ;;  %v1030_v47 = vpop.f32.mrb[6].mxu0 }
  0xf8   : > { %v691_v48 = vadd.f32 %v690_v45, %v689_v43  ;;  %v791_v49 = vadd.f32 %v790_v44, %v789_v41  ;;  %658 = vst.msk [vmem:[%s1264_s12 + $0x38] sm:$0xff] %vm650_vm2, %v1030_v47  ;;  %v542_v50 = vpop.f32.mrb[7].mxu0  ;;  %v760_v59 = vmul.f32 %v1030_v47, %v1030_v47  ;;  %v796_v1 = vsel %vm650_vm2, %v759_v51, 0.0 }
  0xf9   : > { %v792_v52 = vsel %vm650_vm2, %v757_v46, 0.0  ;;  %656 = vst.msk [vmem:[%s1264_s12 + $0x28] sm:$0xff] %vm650_vm2, %v542_v50  ;;  %v692_v53 = vsel %vm650_vm2, %v542_v50, 0.0  ;;  %v758_v54 = vmul.f32 %v542_v50, %v542_v50  ;;  %v1293_v57 = vpop.f32.mrb[0].mxu1  ;;  %v696_v4 = vsel %vm650_vm2, %v1030_v47, 0.0 }
  0xfa   : > { %v793_v55 = vadd.f32 %v792_v52, %v791_v49  ;;  %v693_v56 = vadd.f32 %v692_v53, %v691_v48  ;;  %669 = vst.msk [vmem:[%s1264_s12 + $0x90] sm:$0xff] %vm650_vm2, %v1293_v57  ;;  %v1300_v61 = vpop.f32.mrb[1].mxu1  ;;  %v798_v10 = vsel %vm650_vm2, %v760_v59, 0.0 }
  0xfb   : > { %v794_v60 = vsel %vm650_vm2, %v758_v54, 0.0  ;;  %667 = vst.msk [vmem:[%s1264_s12 + $0x80] sm:$0xff] %vm650_vm2, %v1300_v61  ;;  %v1305_v0 = vpop.f32.mrb[2].mxu1  ;;  %v769_v53 = vmul.f32 %v1300_v61, %v1300_v61 }
  0xfc   : > { %v695_v62 = vadd.f32 %v694_v58, %v693_v56  ;;  %v795_v63 = vadd.f32 %v794_v60, %v793_v55  ;;  %670 = vst.msk [vmem:[%s1264_s12 + $0x98] sm:$0xff] %vm650_vm2, %v1305_v0  ;;  %v1312_v6 = vpop.f32.mrb[3].mxu1 }
  0xfd   : > { %v1033_v5 = vpop.f32.mrb[8].mxu0  ;;  %668 = vst.msk [vmem:[%s1264_s12 + $0x88] sm:$0xff] %vm650_vm2, %v1312_v6 }
  0xfe   : > { %v797_v7 = vadd.f32 %v796_v1, %v795_v63  ;;  %661 = vst.msk [vmem:[%s1264_s12 + $0x50] sm:$0xff] %vm650_vm2, %v1033_v5  ;;  %v555_v8 = vpop.f32.mrb[9].mxu0  ;;  %v697_v9 = vadd.f32 %v696_v4, %v695_v62  ;;  %v763_v17 = vmul.f32 %v1033_v5, %v1033_v5  ;;  %v702_v2 = vsel %vm650_vm2, %v1033_v5, 0.0 }
  0xff   : > { %659 = vst.msk [vmem:[%s1264_s12 + $0x40] sm:$0xff] %vm650_vm2, %v555_v8  ;;  %v698_v12 = vsel %vm650_vm2, %v555_v8, 0.0  ;;  %v761_v11 = vmul.f32 %v555_v8, %v555_v8  ;;  %v1034_v13 = vpop.f32.mrb[10].mxu0  ;;  %v714_v62 = vsel %vm650_vm2, %v1300_v61, 0.0  ;;  %v770_v8 = vmul.f32 %v1312_v6, %v1312_v6 }
 0x100   : > { %v699_v14 = vadd.f32 %v698_v12, %v697_v9  ;;  %v799_v15 = vadd.f32 %v798_v10, %v797_v7  ;;  %662 = vst.msk [vmem:[%s1264_s12 + $0x58] sm:$0xff] %vm650_vm2, %v1034_v13  ;;  %v558_v16 = vpop.f32.mrb[11].mxu0  ;;  %v764_v3 = vmul.f32 %v1034_v13, %v1034_v13  ;;  %v804_v29 = vsel %vm650_vm2, %v763_v17, 0.0 }
 0x101   : > { %v800_v18 = vsel %vm650_vm2, %v761_v11, 0.0  ;;  %660 = vst.msk [vmem:[%s1264_s12 + $0x48] sm:$0xff] %vm650_vm2, %v558_v16  ;;  %v700_v19 = vsel %vm650_vm2, %v558_v16, 0.0  ;;  %v762_v20 = vmul.f32 %v558_v16, %v558_v16  ;;  %v1329_v23 = vpop.f32.mrb[4].mxu1  ;;  %v704_v30 = vsel %vm650_vm2, %v1034_v13, 0.0 }
 0x102   : > { %v801_v21 = vadd.f32 %v800_v18, %v799_v15  ;;  %v701_v22 = vadd.f32 %v700_v19, %v699_v14  ;;  %673 = vst.msk [vmem:[%s1264_s12 + $0xb0] sm:$0xff] %vm650_vm2, %v1329_v23  ;;  %v1336_v25 = vpop.f32.mrb[5].mxu1  ;;  %v806_v36 = vsel %vm650_vm2, %v764_v3, 0.0  ;;  %v816_v7 = vsel %vm650_vm2, %v769_v53, 0.0 }
 0x103   : > { %v802_v24 = vsel %vm650_vm2, %v762_v20, 0.0  ;;  %671 = vst.msk [vmem:[%s1264_s12 + $0xa0] sm:$0xff] %vm650_vm2, %v1336_v25  ;;  %v1341_v28 = vpop.f32.mrb[6].mxu1  ;;  %v771_v61 = vmul.f32 %v1293_v57, %v1293_v57  ;;  %v716_v12 = vsel %vm650_vm2, %v1312_v6, 0.0  ;;  %v718_v15 = vsel %vm650_vm2, %v1293_v57, 0.0 }
 0x104   : > { %v703_v26 = vadd.f32 %v702_v2, %v701_v22  ;;  %v803_v27 = vadd.f32 %v802_v24, %v801_v21  ;;  %674 = vst.msk [vmem:[%s1264_s12 + $0xb8] sm:$0xff] %vm650_vm2, %v1341_v28  ;;  %v1348_v32 = vpop.f32.mrb[7].mxu1  ;;  %v772_v16 = vmul.f32 %v1305_v0, %v1305_v0  ;;  %v818_v17 = vsel %vm650_vm2, %v770_v8, 0.0 }
 0x105   : > { %v1037_v31 = vpop.f32.mrb[12].mxu0  ;;  %672 = vst.msk [vmem:[%s1264_s12 + $0xa8] sm:$0xff] %vm650_vm2, %v1348_v32  ;;  %v773_v18 = vmul.f32 %v1336_v25, %v1336_v25  ;;  %v820_v57 = vsel %vm650_vm2, %v771_v61, 0.0  ;;  %v720_v22 = vsel %vm650_vm2, %v1305_v0, 0.0  ;;  %v722_v2 = vsel %vm650_vm2, %v1336_v25, 0.0 }
 0x106   : > { %v805_v33 = vadd.f32 %v804_v29, %v803_v27  ;;  %665 = vst.msk [vmem:[%s1264_s12 + $0x70] sm:$0xff] %vm650_vm2, %v1037_v31  ;;  %v571_v34 = vpop.f32.mrb[13].mxu0  ;;  %v705_v35 = vadd.f32 %v704_v30, %v703_v26  ;;  %v767_v43 = vmul.f32 %v1037_v31, %v1037_v31  ;;  %v710_v50 = vsel %vm650_vm2, %v1037_v31, 0.0 }
 0x107   : > { %663 = vst.msk [vmem:[%s1264_s12 + $0x60] sm:$0xff] %vm650_vm2, %v571_v34  ;;  %v706_v37 = vsel %vm650_vm2, %v571_v34, 0.0  ;;  %v765_v38 = vmul.f32 %v571_v34, %v571_v34  ;;  %v1038_v39 = vpop.f32.mrb[14].mxu0  ;;  %v822_v27 = vsel %vm650_vm2, %v772_v16, 0.0  ;;  %v824_v29 = vsel %vm650_vm2, %v773_v18, 0.0 }
 0x108   : > { %v707_v40 = vadd.f32 %v706_v37, %v705_v35  ;;  %v807_v41 = vadd.f32 %v806_v36, %v805_v33  ;;  %666 = vst.msk [vmem:[%s1264_s12 + $0x78] sm:$0xff] %vm650_vm2, %v1038_v39  ;;  %v574_v42 = vpop.f32.mrb[15].mxu0  ;;  %v768_v51 = vmul.f32 %v1038_v39, %v1038_v39  ;;  %v812_v59 = vsel %vm650_vm2, %v767_v43, 0.0 }
 0x109   : > { %v808_v44 = vsel %vm650_vm2, %v765_v38, 0.0  ;;  %664 = vst.msk [vmem:[%s1264_s12 + $0x68] sm:$0xff] %vm650_vm2, %v574_v42  ;;  %v708_v45 = vsel %vm650_vm2, %v574_v42, 0.0  ;;  %v766_v46 = vmul.f32 %v574_v42, %v574_v42  ;;  %v1365_v49 = vpop.f32.mrb[8].mxu1  ;;  %v712_v60 = vsel %vm650_vm2, %v1038_v39, 0.0 }
 0x10a   : > { %v809_v47 = vadd.f32 %v808_v44, %v807_v41  ;;  %v709_v48 = vadd.f32 %v708_v45, %v707_v40  ;;  %677 = vst.msk [vmem:[%s1264_s12 + $0xd0] sm:$0xff] %vm650_vm2, %v1365_v49  ;;  %v619_v54 = vpop.f32.mrb[9].mxu1  ;;  %v814_v5 = vsel %vm650_vm2, %v768_v51, 0.0  ;;  %v774_v30 = vmul.f32 %v1348_v32, %v1348_v32 }
 0x10b   : > { %v810_v52 = vsel %vm650_vm2, %v766_v46, 0.0  ;;  %675 = vst.msk [vmem:[%s1264_s12 + $0xc0] sm:$0xff] %vm650_vm2, %v619_v54  ;;  %v1376_v58 = vpop.f32.mrb[10].mxu1  ;;  %v775_v25 = vmul.f32 %v1329_v23, %v1329_v23  ;;  %v724_v33 = vsel %vm650_vm2, %v1348_v32, 0.0  ;;  %v726_v36 = vsel %vm650_vm2, %v1329_v23, 0.0 }
 0x10c   : > { %v711_v55 = vadd.f32 %v710_v50, %v709_v48  ;;  %v811_v56 = vadd.f32 %v810_v52, %v809_v47  ;;  %678 = vst.msk [vmem:[%s1264_s12 + $0xd8] sm:$0xff] %vm650_vm2, %v1376_v58  ;;  %v622_v63 = vpop.f32.mrb[11].mxu1  ;;  %v776_v37 = vmul.f32 %v1341_v28, %v1341_v28  ;;  %v826_v38 = vsel %vm650_vm2, %v774_v30, 0.0 }
 0x10d   : > { %676 = vst.msk [vmem:[%s1264_s12 + $0xc8] sm:$0xff] %vm650_vm2, %v622_v63  ;;  %v777_v39 = vmul.f32 %v619_v54, %v619_v54  ;;  %v828_v42 = vsel %vm650_vm2, %v775_v25, 0.0  ;;  %v728_v43 = vsel %vm650_vm2, %v1341_v28, 0.0  ;;  %v730_v32 = vsel %vm650_vm2, %v619_v54, 0.0 }
 0x10e   : > { %v813_v1 = vadd.f32 %v812_v59, %v811_v56  ;;  %v713_v4 = vadd.f32 %v712_v60, %v711_v55  ;;  %v830_v46 = vsel %vm650_vm2, %v776_v37, 0.0  ;;  %v778_v47 = vmul.f32 %v622_v63, %v622_v63 }
 0x10f   : > { %v832_v23 = vsel %vm650_vm2, %v777_v39, 0.0  ;;  %v779_v51 = vmul.f32 %v1365_v49, %v1365_v49  ;;  %v732_v52 = vsel %vm650_vm2, %v622_v63, 0.0  ;;  %v734_v28 = vsel %vm650_vm2, %v1365_v49, 0.0 }
 0x110   : > { %v715_v9 = vadd.f32 %v714_v62, %v713_v4  ;;  %v815_v10 = vadd.f32 %v814_v5, %v813_v1  ;;  %v780_v54 = vmul.f32 %v1376_v58, %v1376_v58  ;;  %v834_v56 = vsel %vm650_vm2, %v778_v47, 0.0 }
 0x111   : > { %v1395_v14 = vpop.f32.mrb[12].mxu1  ;;  %v836_v1 = vsel %vm650_vm2, %v779_v51, 0.0  ;;  %v736_v4 = vsel %vm650_vm2, %v1376_v58, 0.0 }
 0x112   : > { %v817_v11 = vadd.f32 %v816_v7, %v815_v10  ;;  %v717_v13 = vadd.f32 %v716_v12, %v715_v9  ;;  %681 = vst.msk [vmem:[%s1264_s12 + $0xf0] sm:$0xff] %vm650_vm2, %v1395_v14  ;;  %v635_v6 = vpop.f32.mrb[13].mxu1  ;;  %v838_v8 = vsel %vm650_vm2, %v780_v54, 0.0  ;;  %v783_v12 = vmul.f32 %v1395_v14, %v1395_v14 }
 0x113   : > { %679 = vst.msk [vmem:[%s1264_s12 + $0xe0] sm:$0xff] %vm650_vm2, %v635_v6  ;;  %v1409_v21 = vpop.f32.mrb[14].mxu1  ;;  %v781_v59 = vmul.f32 %v635_v6, %v635_v6  ;;  %v738_v63 = vsel %vm650_vm2, %v635_v6, 0.0 }
 0x114   : > { %v719_v19 = vadd.f32 %v718_v15, %v717_v13  ;;  %v819_v20 = vadd.f32 %v818_v17, %v817_v11  ;;  %682 = vst.msk [vmem:[%s1264_s12 + $0xf8] sm:$0xff] %vm650_vm2, %v1409_v21  ;;  %v638_v3 = vpop.f32.mrb[15].mxu1  ;;  %v742_v15 = vsel %vm650_vm2, %v1395_v14, 0.0  ;;  %v784_v16 = vmul.f32 %v1409_v21, %v1409_v21 }
 0x115   : > { %680 = vst.msk [vmem:[%s1264_s12 + $0xe8] sm:$0xff] %vm650_vm2, %v638_v3  ;;  %v840_v49 = vsel %vm650_vm2, %v781_v59, 0.0  ;;  %v782_v9 = vmul.f32 %v638_v3, %v638_v3  ;;  %v740_v11 = vsel %vm650_vm2, %v638_v3, 0.0 }
 0x116   : > { %v821_v24 = vadd.f32 %v820_v57, %v819_v20  ;;  %v721_v26 = vadd.f32 %v720_v22, %v719_v19  ;;  %v844_v19 = vsel %vm650_vm2, %v783_v12, 0.0  ;;  %v744_v20 = vsel %vm650_vm2, %v1409_v21, 0.0 }
 0x117   : > { %v842_v17 = vsel %vm650_vm2, %v782_v9, 0.0 }
 0x118   : > { %v723_v31 = vadd.f32 %v722_v2, %v721_v26  ;;  %v823_v0 = vadd.f32 %v822_v27, %v821_v24  ;;  %v846_v2 = vsel %vm650_vm2, %v784_v16, 0.0 }
 0x11a   : > { %v825_v34 = vadd.f32 %v824_v29, %v823_v0  ;;  %v725_v35 = vadd.f32 %v724_v33, %v723_v31 }
 0x11c   : > { %v727_v40 = vadd.f32 %v726_v36, %v725_v35  ;;  %v827_v41 = vadd.f32 %v826_v38, %v825_v34 }
 0x11e   : > { %v829_v44 = vadd.f32 %v828_v42, %v827_v41  ;;  %v729_v45 = vadd.f32 %v728_v43, %v727_v40 }
 0x120   : > { %v731_v48 = vadd.f32 %v730_v32, %v729_v45  ;;  %v831_v50 = vadd.f32 %v830_v46, %v829_v44 }
 0x122   : > { %v833_v53 = vadd.f32 %v832_v23, %v831_v50  ;;  %v733_v55 = vadd.f32 %v732_v52, %v731_v48 }
 0x124   : > { %v735_v60 = vadd.f32 %v734_v28, %v733_v55  ;;  %v835_v62 = vadd.f32 %v834_v56, %v833_v53 }
 0x126   : > { %v837_v5 = vadd.f32 %v836_v1, %v835_v62  ;;  %v737_v7 = vadd.f32 %v736_v4, %v735_v60 }
 0x128   : > { %v739_v10 = vadd.f32 %v738_v63, %v737_v7  ;;  %v839_v61 = vadd.f32 %v838_v8, %v837_v5 }
 0x12a   : > { %v841_v13 = vadd.f32 %v840_v49, %v839_v61  ;;  %v741_v58 = vadd.f32 %v740_v11, %v739_v10 }
 0x12c   : > { %v743_v18 = vadd.f32 %v742_v15, %v741_v58  ;;  %v843_v6 = vadd.f32 %v842_v17, %v841_v13 }
 0x12e   : > { %v745_v57 = vadd.f32 %v744_v20, %v743_v18  ;;  %v845_v22 = vadd.f32 %v844_v19, %v843_v6 }
 0x130   : > { %v746_v3 = vrot.slane %v745_v57, 4  ;;  %v847_v24 = vadd.f32 %v846_v2, %v845_v22 }
 0x132   : > { %v747_v14 = vadd.f32 %v746_v3, %v745_v57  ;;  %v848_v26 = vrot.slane %v847_v24, 4 }
 0x134   : > { %v748_v27 = vrot.slane %v747_v14, 2  ;;  %v849_v29 = vadd.f32 %v848_v26, %v847_v24 }
 0x136   : > { %v749_v30 = vadd.f32 %v748_v27, %v747_v14  ;;  %v850_v31 = vrot.slane %v849_v29, 2 }
 0x138   : > { %v750_v0 = vrot.slane %v749_v30, 1  ;;  %v851_v25 = vadd.f32 %v850_v31, %v849_v29 }
 0x13a   : > { %v751_v21 = vadd.f32 %v750_v0, %v749_v30  ;;  %v852_v33 = vrot.slane %v851_v25, 1 }
 0x13c   : > { %752 = vst.msk [vmem:[%s271_s16] sm:$0xff] %vm650_vm2, %v751_v21  ;;  %v853_v34 = vadd.f32 %v852_v33, %v851_v25 }
 0x13e   : > { %854 = vst.msk [vmem:[%s275_s19] sm:$0xff] %vm650_vm2, %v853_v34 }
 0x13f PF: > { %s17_s21 = sadd.s32 1, %s1073_s21  }
 0x140   : > { %p14_p5 = scmp.ge.s32.totalorder %s17_s21, 4  }
 0x142   :  { %16 = sbr.rel (!%p14_p5) target bundleno = 1 (0x1), region = 90 }

// kernel: bottleneck_forward.7
= control target key start
LH: loop header
LB: loop body
LE: loop exit
PB: predicated region body
PF: predicated region fallthrough
CT: control target
= control target key end

     0   :  { %s414_s15 = smov 0   ;;  %s445_s0 = inlined_call_operand.vmem [shape: f32[32,512], index: 0, kind: input, shape index: {}]   ;;  %s446_s1 = inlined_call_operand.vmem [shape: f32[32,512], index: 1, kind: input, shape index: {}]   ;;  %s447_s2 = inlined_call_operand.vmem [shape: f32[1,512], index: 2, kind: input, shape index: {}]   ;;  %s448_s3 = inlined_call_operand.vmem [shape: f32[1,512], index: 3, kind: input, shape index: {}]   ;;  %s449_s4 = inlined_call_operand.vmem [shape: f32[32,512], index: 4, kind: output, shape index: {}]  }
   0x1 LB: > { %s357_s16 = sadd.s32 4294967295, %s387_s15   ;;  %p361_p0 = scmp.ge.s32.totalorder %s387_s15, 1  ;;  %s387_s15 = sphi %s414_s15, %s14_s15  }
   0x2   : > { %p172_p1 = scmp.lt.s32.totalorder %s387_s15, 5 }
   0x4   : > { %p173_p2 = pnand %p361_p0, %p172_p1 }
   0x5   : > { %p203_p3 = scmp.lt.s32.totalorder (!%p173_p2), %s357_s16, 3  ;;  %v224_v0 = vlaneseq (!%p173_p2)  ;;  %v222_v2 = vld [vmem:[%s447_s2] sm:$0xf] (!%p173_p2) }
   0x6   : > { %176 = sbr.rel (%p173_p2) target bundleno = 27 (0x1b), region = 36  ;;  %v248_v3 = vld [vmem:[%s448_s3] sm:$0xf] (!%p173_p2) }
   0x7   : > { %v225_v1 = vshrl.u32 (!%p173_p2), %v224_v0, 7 }
   0x9   : > { %v226_v4 = vsub.s32 (!%p173_p2), 0, %v225_v1  ;;  %v230_v5 = vsub.s32 (!%p173_p2), 1, %v225_v1  ;;  %v234_v6 = vsub.s32 (!%p173_p2), 2, %v225_v1  ;;  %v238_v7 = vsub.s32 (!%p173_p2), 3, %v225_v1 }
   0xb   : > { %v227_v9 = vrot.slane (!%p173_p2), %v222_v2, %v226_v4  ;;  %v253_v10 = vrot.slane (!%p173_p2), %v248_v3, %v226_v4  ;;  %v231_v12 = vrot.slane (!%p173_p2), %v222_v2, %v230_v5  ;;  %v257_v13 = vrot.slane (!%p173_p2), %v248_v3, %v230_v5 }
   0xc   : > { %v235_v15 = vrot.slane (!%p173_p2), %v222_v2, %v234_v6  ;;  %v261_v16 = vrot.slane (!%p173_p2), %v248_v3, %v234_v6  ;;  %v239_v17 = vrot.slane (!%p173_p2), %v222_v2, %v238_v7  ;;  %v265_v18 = vrot.slane (!%p173_p2), %v248_v3, %v238_v7 }
   0xd   : > { %s451_s16 = smov (!%p203_p3, %s357_s16), 3 }
   0xe   : > { %s428_s21 = sshll.u32 %s451_s16, 5 }
   0xf   : > { %s207_s24 = scalar_lea.vmem %s445_s0, %s428_s21  ;;  %s212_s27 = scalar_lea.vmem %s446_s1, %s428_s21 }
  0x10   : > { %v218_v8 = vld [vmem:[%s207_s24] sm:$0xff]  ;;  %v219_v11 = vld [vmem:[%s207_s24 + $0x8] sm:$0xff]  ;;  %v220_v14 = vld [vmem:[%s207_s24 + $0x10] sm:$0xff]  ;;  %s217_s30 = scalar_lea.vmem %s449_s4, %s428_s21 }
  0x11   : > { %v244_v19 = vmul.f32 %v227_v9, %v218_v8  ;;  %v245_v20 = vmul.f32 %v231_v12, %v219_v11  ;;  %v221_v21 = vld [vmem:[%s207_s24 + $0x18] sm:$0xff]  ;;  %v274_v22 = vld [vmem:[%s212_s27] sm:$0xff]  ;;  %v275_v23 = vld [vmem:[%s212_s27 + $0x8] sm:$0xff]  ;;  %v246_v24 = vmul.f32 %v235_v15, %v220_v14 }
  0x12   : > { %v247_v25 = vmul.f32 %v239_v17, %v221_v21  ;;  %v276_v28 = vld [vmem:[%s212_s27 + $0x10] sm:$0xff]  ;;  %v277_v29 = vld [vmem:[%s212_s27 + $0x18] sm:$0xff] }
  0x13   : > { %v270_v26 = vadd.f32 %v253_v10, %v244_v19  ;;  %v271_v27 = vadd.f32 %v257_v13, %v245_v20  ;;  %v272_v30 = vadd.f32 %v261_v16, %v246_v24 }
  0x14   : > { %v273_v31 = vadd.f32 %v265_v18, %v247_v25 }
  0x15   : > { %v278_v32 = vadd.f32 %v274_v22, %v270_v26  ;;  %v279_v33 = vadd.f32 %v275_v23, %v271_v27  ;;  %v280_v34 = vadd.f32 %v276_v28, %v272_v30 }
  0x16   : > { %v281_v35 = vadd.f32 %v277_v29, %v273_v31 }
  0x17   : > { %v282_v36 = vmax.f32 %v278_v32, 0.0  ;;  %v283_v37 = vmax.f32 %v279_v33, 0.0  ;;  %v284_v38 = vmax.f32 %v280_v34, 0.0 }
  0x18   : > { %v285_v39 = vmax.f32 %v281_v35, 0.0 }
  0x19   : > { %286 = vst [vmem:[%s217_s30] sm:$0xff] %v282_v36  ;;  %287 = vst [vmem:[%s217_s30 + $0x8] sm:$0xff] %v283_v37 }
  0x1a   : > { %288 = vst [vmem:[%s217_s30 + $0x10] sm:$0xff] %v284_v38  ;;  %289 = vst [vmem:[%s217_s30 + $0x18] sm:$0xff] %v285_v39 }
  0x1b PF: > { %s14_s15 = sadd.s32 1, %s387_s15  }
  0x1c   : > { %p11_p4 = scmp.ge.s32.totalorder %s14_s15, 6  }
  0x1e   :  { %13 = sbr.rel (!%p11_p4) target bundleno = 1 (0x1), region = 69 }

// kernel: bottleneck_forward.5
= control target key start
LH: loop header
LB: loop body
LE: loop exit
PB: predicated region body
PF: predicated region fallthrough
CT: control target
= control target key end

     0   :  { %s2912_s21 = smov 0   ;;  %s4092_s0 = inlined_call_operand.vmem [shape: f32[2,16,16,8], index: 0, kind: input, shape index: {}]   ;;  %s4093_s1 = inlined_call_operand.vmem [shape: f32[1,8], index: 1, kind: input, shape index: {}]   ;;  %s4094_s2 = inlined_call_operand.vmem [shape: f32[1,8], index: 2, kind: input, shape index: {}]   ;;  %s4095_s3 = inlined_call_operand.vmem [shape: bf16[72,8], index: 3, kind: input, shape index: {}]   ;;  %s4096_s4 = inlined_call_operand.vmem [shape: f32[2,16,16,8], index: 4, kind: output, shape index: {0}]   ;;  %s4097_s5 = inlined_call_operand.vmem [shape: f32[16,8], index: 5, kind: output, shape index: {1}]   ;;  %s4098_s6 = inlined_call_operand.vmem [shape: f32[16,8], index: 6, kind: output, shape index: {2}]  }
   0x1 LB: > { %s2723_s22 = sadd.s32 4294967295, %s2866_s21   ;;  %p2727_p0 = scmp.ge.s32.totalorder %s2866_s21, 1  ;;  %s2866_s21 = sphi %s2912_s21, %s17_s21  }
   0x2   : > { %p217_p1 = scmp.lt.s32.totalorder %s2866_s21, 3 }
   0x4   : > { %p218_p2 = pnand %p2727_p0, %p217_p1 }
   0x5   : > { %vm416_vm0 = vcmask (!%p218_p2), 64512   ;;  %vm425_vm1 = vcmask (!%p218_p2), 57344   ;;  %p2922_p3 = scmp.lt.s32.totalorder (!%p218_p2), %s2723_s22, 1  ;;  %vm419_vm2 = vcmask (!%p218_p2), 58368   ;;  %v2868_v0 = vmov (!%p218_p2), 0.0   ;;  %s2869_s8 = smov (!%p218_p2), 8  }
   0x6   : > { %221 = sbr.rel (%p218_p2) target bundleno = 905 (0x389), region = 36  ;;  %417 = vst.msk [vmem:[#allocation2] sm:$0xff] (!%p218_p2), %vm416_vm0, %v2868_v0  ;;  %418 = vst.msk [vmem:[#allocation2 + $0x8] sm:$0xff] (!%p218_p2), %vm416_vm0, %v2868_v0  ;;  %v2974_v1 = vld [vmem:[%s4093_s1] ss:$0 sm:$0xff] (!%p218_p2)  ;;  %s2870_s9 = smov (!%p218_p2), 16  }
   0x7   : > { %422 = vst.msk [vmem:[#allocation2 + $0x198] sm:$0xff] (!%p218_p2), %vm416_vm0, %v2868_v0  ;;  %423 = vst.msk [vmem:[#allocation2 + $0x1a0] sm:$0xff] (!%p218_p2), %vm416_vm0, %v2868_v0  ;;  %v2990_v2 = vld [vmem:[%s4094_s2] ss:$0 sm:$0xff] (!%p218_p2)  ;;  %vm719_vm3 = vcmask (!%p218_p2), 130112   ;;  %s2871_s10 = smov (!%p218_p2), 24  }
   0x8   : > { %427 = vst.msk [vmem:[#allocation2 + $0x18] sm:$0x1] (!%p218_p2), %vm425_vm1, %v2868_v0  ;;  %428 = vst.msk [vmem:[#allocation2 + $0x30] sm:$0x1] (!%p218_p2), %vm425_vm1, %v2868_v0  ;;  %s2872_s11 = smov (!%p218_p2), 32   ;;  %s2873_s12 = smov (!%p218_p2), 40  }
   0x9   : > { %429 = vst.msk [vmem:[#allocation2 + $0x48] sm:$0x1] (!%p218_p2), %vm425_vm1, %v2868_v0  ;;  %430 = vst.msk [vmem:[#allocation2 + $0x60] sm:$0x1] (!%p218_p2), %vm425_vm1, %v2868_v0  ;;  %s2874_s13 = smov (!%p218_p2), 48   ;;  %s2875_s18 = smov (!%p218_p2), 56  }
   0xa   : > { %431 = vst.msk [vmem:[#allocation2 + $0x78] sm:$0x1] (!%p218_p2), %vm425_vm1, %v2868_v0  ;;  %432 = vst.msk [vmem:[#allocation2 + $0x90] sm:$0x1] (!%p218_p2), %vm425_vm1, %v2868_v0  ;;  %vm912_vm4 = vcmask (!%p218_p2), 195712   ;;  %s2876_s25 = smov (!%p218_p2), 64  }
   0xb   : > { %433 = vst.msk [vmem:[#allocation2 + $0xa8] sm:$0x1] (!%p218_p2), %vm425_vm1, %v2868_v0  ;;  %434 = vst.msk [vmem:[#allocation2 + $0xc0] sm:$0x1] (!%p218_p2), %vm425_vm1, %v2868_v0  ;;  %vm2237_vm5 = vcmask (!%p218_p2), 1043456   ;;  %vm1105_vm6 = vcmask (!%p218_p2), 261312  }
   0xc   : > { %435 = vst.msk [vmem:[#allocation2 + $0xd8] sm:$0x1] (!%p218_p2), %vm425_vm1, %v2868_v0  ;;  %436 = vst.msk [vmem:[#allocation2 + $0xf0] sm:$0x1] (!%p218_p2), %vm425_vm1, %v2868_v0  ;;  %vm1298_vm7 = vcmask (!%p218_p2), 326912   ;;  %vm1491_vm8 = vcmask (!%p218_p2), 392512  }
   0xd   : > { %437 = vst.msk [vmem:[#allocation2 + $0x108] sm:$0x1] %vm425_vm1, %v2868_v0  ;;  %438 = vst.msk [vmem:[#allocation2 + $0x120] sm:$0x1] %vm425_vm1, %v2868_v0  ;;  %s4101_s22 = smov (!%p2922_p3, %s2723_s22), 1  ;;  %v559_v12 = vld [vmem:[#allocation2 + $0x1] sm:$0xff] }
   0xe   : > { %439 = vst.msk [vmem:[#allocation2 + $0x138] sm:$0x1] %vm425_vm1, %v2868_v0  ;;  %440 = vst.msk [vmem:[#allocation2 + $0x150] sm:$0x1] %vm425_vm1, %v2868_v0  ;;  %s2759_s26 = sshll.u32 %s4101_s22, 8  ;;  %623 = vrot.lane.b32.xlu0 %v559_v12, %s2869_s8  ;;  %vm1685_vm9 = vcmask 458112  }
   0xf   : > { %441 = vst.msk [vmem:[#allocation2 + $0x168] sm:$0x1] %vm425_vm1, %v2868_v0  ;;  %442 = vst.msk [vmem:[#allocation2 + $0x180] sm:$0x1] %vm425_vm1, %v2868_v0  ;;  %s2985_s29 = scalar_lea.vmem %s4092_s0, %s2759_s26  ;;  %vm1878_vm10 = vcmask 523712   ;;  %vm2071_vm11 = vcmask 589312  }
  0x10   : > { %445 = vst.msk [vmem:[#allocation2 + $0x29] sm:$0x1] %vm425_vm1, %v2868_v0  ;;  %446 = vst.msk [vmem:[#allocation2 + $0x41] sm:$0x1] %vm425_vm1, %v2868_v0  ;;  %v274_v3 = vld [vmem:[%s2985_s29] sm:$0xff]  ;;  %v275_v4 = vld [vmem:[%s2985_s29 + $0x8] sm:$0xff] }
  0x11   : > { %447 = vst.msk [vmem:[#allocation2 + $0x59] sm:$0x1] %vm425_vm1, %v2868_v0  ;;  %448 = vst.msk [vmem:[#allocation2 + $0x71] sm:$0x1] %vm425_vm1, %v2868_v0  ;;  %v276_v5 = vld [vmem:[%s2985_s29 + $0x10] sm:$0xff]  ;;  %v313_v6 = vmul.f32 %v2974_v1, %v274_v3  ;;  %v314_v7 = vmul.f32 %v2974_v1, %v275_v4  ;;  %v277_v9 = vld [vmem:[%s2985_s29 + $0x18] sm:$0xff] }
  0x12   : > { %449 = vst.msk [vmem:[#allocation2 + $0x89] sm:$0x1] %vm425_vm1, %v2868_v0  ;;  %450 = vst.msk [vmem:[#allocation2 + $0xa1] sm:$0x1] %vm425_vm1, %v2868_v0  ;;  %v315_v8 = vmul.f32 %v2974_v1, %v276_v5  ;;  %v278_v10 = vld [vmem:[%s2985_s29 + $0x20] sm:$0xff]  ;;  %v279_v11 = vld [vmem:[%s2985_s29 + $0x28] sm:$0xff]  ;;  %v316_v13 = vmul.f32 %v2974_v1, %v277_v9 }
  0x13   : > { %451 = vst.msk [vmem:[#allocation2 + $0xb9] sm:$0x1] %vm425_vm1, %v2868_v0  ;;  %452 = vst.msk [vmem:[#allocation2 + $0xd1] sm:$0x1] %vm425_vm1, %v2868_v0  ;;  %v317_v14 = vmul.f32 %v2974_v1, %v278_v10  ;;  %v318_v15 = vmul.f32 %v2974_v1, %v279_v11  ;;  %v280_v16 = vld [vmem:[%s2985_s29 + $0x30] sm:$0xff]  ;;  %v352_v17 = vadd.f32 %v2990_v2, %v313_v6  ;;  %v281_v22 = vld [vmem:[%s2985_s29 + $0x38] sm:$0xff] }
  0x14   : > { %453 = vst.msk [vmem:[#allocation2 + $0xe9] sm:$0x1] %vm425_vm1, %v2868_v0  ;;  %454 = vst.msk [vmem:[#allocation2 + $0x101] sm:$0x1] %vm425_vm1, %v2868_v0  ;;  %v353_v19 = vadd.f32 %v2990_v2, %v314_v7  ;;  %v354_v20 = vadd.f32 %v2990_v2, %v315_v8  ;;  %v319_v21 = vmul.f32 %v2974_v1, %v280_v16  ;;  %v282_v27 = vld [vmem:[%s2985_s29 + $0x40] sm:$0xff]  ;;  %v283_v28 = vld [vmem:[%s2985_s29 + $0x48] sm:$0xff] }
  0x15   : > { %455 = vst.msk [vmem:[#allocation2 + $0x119] sm:$0x1] %vm425_vm1, %v2868_v0  ;;  %456 = vst.msk [vmem:[#allocation2 + $0x131] sm:$0x1] %vm425_vm1, %v2868_v0  ;;  %v355_v23 = vadd.f32 %v2990_v2, %v316_v13  ;;  %v356_v24 = vadd.f32 %v2990_v2, %v317_v14  ;;  %v357_v25 = vadd.f32 %v2990_v2, %v318_v15  ;;  %v284_v29 = vld [vmem:[%s2985_s29 + $0x50] sm:$0xff]  ;;  %v384_v30 = vmax.f32 %v352_v17, 0.0 }
  0x16   : > { %457 = vst.msk [vmem:[#allocation2 + $0x149] sm:$0x1] %vm425_vm1, %v2868_v0  ;;  %458 = vst.msk [vmem:[#allocation2 + $0x161] sm:$0x1] %vm425_vm1, %v2868_v0  ;;  %v320_v26 = vmul.f32 %v2974_v1, %v281_v22  ;;  %v385_v31 = vmax.f32 %v353_v19, 0.0  ;;  %v386_v32 = vmax.f32 %v354_v20, 0.0  ;;  %v358_v33 = vadd.f32 %v2990_v2, %v319_v21 }
  0x17   : > { %459 = vst.msk [vmem:[#allocation2 + $0x179] sm:$0x1] %vm425_vm1, %v2868_v0  ;;  %460 = vst.msk [vmem:[#allocation2 + $0x191] sm:$0x1] %vm425_vm1, %v2868_v0  ;;  %v285_v34 = vld [vmem:[%s2985_s29 + $0x58] sm:$0xff]  ;;  %v286_v35 = vld [vmem:[%s2985_s29 + $0x60] sm:$0xff]  ;;  %v321_v43 = vmul.f32 %v2974_v1, %v282_v27  ;;  %v322_v44 = vmul.f32 %v2974_v1, %v283_v28  ;;  %v323_v45 = vmul.f32 %v2974_v1, %v284_v29 }
  0x18   : > { %420 = vst.msk [vmem:[#allocation2 + $0x10] sm:$0x3] %vm419_vm2, %v2868_v0  ;;  %424 = vst.msk [vmem:[#allocation2 + $0x1a8] sm:$0x3] %vm419_vm2, %v2868_v0  ;;  %v287_v36 = vld [vmem:[%s2985_s29 + $0x68] sm:$0xff]  ;;  %v387_v37 = vmax.f32 %v355_v23, 0.0  ;;  %v359_v40 = vadd.f32 %v2990_v2, %v320_v26  ;;  %v324_v48 = vmul.f32 %v2974_v1, %v285_v34  ;;  %v325_v49 = vmul.f32 %v2974_v1, %v286_v35 }
  0x19   : > { %426 = vst.msk [vmem:[#allocation2] sm:$0x1] %vm425_vm1, %v2868_v0  ;;  %443 = vst.msk [vmem:[#allocation2 + $0x198] sm:$0x1] %vm425_vm1, %v2868_v0  ;;  %v388_v38 = vmax.f32 %v356_v24, 0.0  ;;  %v389_v39 = vmax.f32 %v357_v25, 0.0  ;;  %v326_v50 = vmul.f32 %v2974_v1, %v287_v36  ;;  %v360_v51 = vadd.f32 %v2990_v2, %v321_v43 }
  0x1a   : > { %444 = vst.msk [vmem:[#allocation2 + $0x11] sm:$0x1] %vm425_vm1, %v2868_v0  ;;  %461 = vst.msk [vmem:[#allocation2 + $0x1a9] sm:$0x1] %vm425_vm1, %v2868_v0  ;;  %v288_v41 = vld [vmem:[%s2985_s29 + $0x70] sm:$0xff]  ;;  %v390_v42 = vmax.f32 %v358_v33, 0.0  ;;  %v361_v52 = vadd.f32 %v2990_v2, %v322_v44  ;;  %v362_v53 = vadd.f32 %v2990_v2, %v323_v45  ;;  %v363_v57 = vadd.f32 %v2990_v2, %v324_v48 }
  0x1b   : > { %463 = vst.msk [vmem:[#allocation2 + $0x19] sm:$0xff] %vm416_vm0, %v384_v30  ;;  %464 = vst.msk [vmem:[#allocation2 + $0x21] sm:$0xff] %vm416_vm0, %v385_v31  ;;  %v289_v46 = vld [vmem:[%s2985_s29 + $0x78] sm:$0xff]  ;;  %v391_v47 = vmax.f32 %v359_v40, 0.0  ;;  %v327_v54 = vmul.f32 %v2974_v1, %v288_v41  ;;  %v290_v55 = vld [vmem:[%s2985_s29 + $0x80] sm:$0xff]  ;;  %v364_v58 = vadd.f32 %v2990_v2, %v325_v49  ;;  %v365_v59 = vadd.f32 %v2990_v2, %v326_v50 }
  0x1c   : > { %465 = vst.msk [vmem:[#allocation2 + $0x31] sm:$0xff] %vm416_vm0, %v386_v32  ;;  %466 = vst.msk [vmem:[#allocation2 + $0x39] sm:$0xff] %vm416_vm0, %v387_v37  ;;  %v291_v56 = vld [vmem:[%s2985_s29 + $0x88] sm:$0xff]  ;;  %v328_v60 = vmul.f32 %v2974_v1, %v289_v46  ;;  %v292_v61 = vld [vmem:[%s2985_s29 + $0x90] sm:$0xff]  ;;  %v392_v0 = vmax.f32 %v360_v51, 0.0  ;;  %v393_v3 = vmax.f32 %v361_v52, 0.0  ;;  %v329_v14 = vmul.f32 %v2974_v1, %v290_v55 }
  0x1d   : > { %467 = vst.msk [vmem:[#allocation2 + $0x49] sm:$0xff] %vm416_vm0, %v388_v38  ;;  %468 = vst.msk [vmem:[#allocation2 + $0x51] sm:$0xff] %vm416_vm0, %v389_v39  ;;  %v293_v62 = vld [vmem:[%s2985_s29 + $0x98] sm:$0xff]  ;;  %v294_v63 = vld [vmem:[%s2985_s29 + $0xa0] sm:$0xff]  ;;  %v394_v4 = vmax.f32 %v362_v53, 0.0  ;;  %v366_v5 = vadd.f32 %v2990_v2, %v327_v54  ;;  %v395_v9 = vmax.f32 %v363_v57, 0.0  ;;  %v330_v15 = vmul.f32 %v2974_v1, %v291_v56 }
  0x1e   : > { %469 = vst.msk [vmem:[#allocation2 + $0x61] sm:$0xff] %vm416_vm0, %v390_v42  ;;  %470 = vst.msk [vmem:[#allocation2 + $0x69] sm:$0xff] %vm416_vm0, %v391_v47  ;;  %v295_v6 = vld [vmem:[%s2985_s29 + $0xa8] sm:$0xff]  ;;  %v396_v10 = vmax.f32 %v364_v58, 0.0  ;;  %v397_v11 = vmax.f32 %v365_v59, 0.0  ;;  %v367_v12 = vadd.f32 %v2990_v2, %v328_v60  ;;  %v331_v16 = vmul.f32 %v2974_v1, %v292_v61  ;;  %v296_v17 = vld [vmem:[%s2985_s29 + $0xb0] sm:$0xff] }
  0x1f   : > { %v560_v18 = vld [vmem:[#allocation2 + $0x9] sm:$0xff]  ;;  %471 = vst.msk [vmem:[#allocation2 + $0x79] sm:$0xff] %vm416_vm0, %v392_v0  ;;  %472 = vst.msk [vmem:[#allocation2 + $0x81] sm:$0xff] %vm416_vm0, %v393_v3  ;;  %v398_v13 = vmax.f32 %v366_v5, 0.0  ;;  %v332_v21 = vmul.f32 %v2974_v1, %v293_v62  ;;  %v333_v22 = vmul.f32 %v2974_v1, %v294_v63  ;;  %v334_v23 = vmul.f32 %v2974_v1, %v295_v6  ;;  %v297_v24 = vld [vmem:[%s2985_s29 + $0xb8] sm:$0xff] }
  0x20   : > { %625 = vrot.lane.b32.xlu0 %v560_v18, %s2869_s8  ;;  %v495_v7 = vld [vmem:[#allocation2] sm:$0xff]  ;;  %v496_v8 = vld [vmem:[#allocation2 + $0x8] sm:$0xff]  ;;  %473 = vst.msk [vmem:[#allocation2 + $0x91] sm:$0xff] %vm416_vm0, %v394_v4  ;;  %474 = vst.msk [vmem:[#allocation2 + $0x99] sm:$0xff] %vm416_vm0, %v395_v9  ;;  %v399_v20 = vmax.f32 %v367_v12, 0.0  ;;  %v368_v25 = vadd.f32 %v2990_v2, %v329_v14  ;;  %v369_v26 = vadd.f32 %v2990_v2, %v330_v15  ;;  %vm2188_vm12 = vcmask 588800  }
  0x21   : > { %527 = vst.msk [vmem:[#allocation3] sm:$0xff] %vm416_vm0, %v495_v7  ;;  %528 = vst.msk [vmem:[#allocation3 + $0x8] sm:$0xff] %vm416_vm0, %v496_v8  ;;  %v370_v27 = vadd.f32 %v2990_v2, %v331_v16  ;;  %v298_v28 = vld [vmem:[%s2985_s29 + $0xc0] sm:$0xff]  ;;  %v371_v31 = vadd.f32 %v2990_v2, %v332_v21  ;;  %v372_v32 = vadd.f32 %v2990_v2, %v333_v22  ;;  %v299_v35 = vld [vmem:[%s2985_s29 + $0xc8] sm:$0xff] }
  0x22   : > { %v3065_v18 = vld [vmem:[#allocation2 + $0x19] sm:$0xff]  ;;  %475 = vst.msk [vmem:[#allocation2 + $0xa9] sm:$0xff] %vm416_vm0, %v396_v10  ;;  %476 = vst.msk [vmem:[#allocation2 + $0xb1] sm:$0xff] %vm416_vm0, %v397_v11  ;;  %v3085_v29 = vld [vmem:[#allocation2 + $0x21] sm:$0xff]  ;;  %v373_v33 = vadd.f32 %v2990_v2, %v334_v23  ;;  %v335_v34 = vmul.f32 %v2974_v1, %v296_v17  ;;  %v400_v36 = vmax.f32 %v368_v25, 0.0  ;;  %v401_v37 = vmax.f32 %v369_v26, 0.0 }
  0x23   : > { %v3067_v19 = vld [vmem:[#allocation2 + $0x31] sm:$0xff]  ;;  %627 = vrot.lane.b32.xlu1 %v3065_v18, %s2869_s8  ;;  %477 = vst.msk [vmem:[#allocation2 + $0xc1] sm:$0xff] %vm416_vm0, %v398_v13  ;;  %478 = vst.msk [vmem:[#allocation2 + $0xc9] sm:$0xff] %vm416_vm0, %v399_v20  ;;  %v402_v38 = vmax.f32 %v370_v27, 0.0  ;;  %v336_v39 = vmul.f32 %v2974_v1, %v297_v24  ;;  %v302_v42 = vld [vmem:[%s2985_s29 + $0xe0] sm:$0xff]  ;;  %v403_v43 = vmax.f32 %v371_v31, 0.0  ;;  %v337_v49 = vmul.f32 %v2974_v1, %v298_v28 }
  0x24   : > { %631 = vrot.lane.b32.xlu0 %v3067_v19, %s2869_s8  ;;  %v3087_v30 = vld [vmem:[#allocation2 + $0x49] sm:$0xff]  ;;  %v301_v41 = vld [vmem:[%s2985_s29 + $0xd8] sm:$0xff]  ;;  %v404_v44 = vmax.f32 %v372_v32, 0.0  ;;  %v405_v45 = vmax.f32 %v373_v33, 0.0  ;;  %v374_v46 = vadd.f32 %v2990_v2, %v335_v34  ;;  %479 = vst.msk [vmem:[#allocation2 + $0xd9] sm:$0xff] %vm416_vm0, %v400_v36  ;;  %480 = vst.msk [vmem:[#allocation2 + $0xe1] sm:$0xff] %vm416_vm0, %v401_v37  ;;  %v338_v50 = vmul.f32 %v2974_v1, %v299_v35 }
  0x25   : > { %v300_v40 = vld [vmem:[%s2985_s29 + $0xd0] sm:$0xff]  ;;  %v303_v47 = vld [vmem:[%s2985_s29 + $0xe8] sm:$0xff]  ;;  %481 = vst.msk [vmem:[#allocation2 + $0xf1] sm:$0xff] %vm416_vm0, %v402_v38  ;;  %v375_v48 = vadd.f32 %v2990_v2, %v336_v39  ;;  %v3111_v51 = vld [vmem:[#allocation2 + $0x18] sm:$0xff]  ;;  %v340_v57 = vmul.f32 %v2974_v1, %v301_v41  ;;  %v341_v58 = vmul.f32 %v2974_v1, %v302_v42  ;;  %v376_v60 = vadd.f32 %v2990_v2, %v337_v49 }
  0x26   : > { %v3113_v52 = vld [vmem:[#allocation2 + $0x20] sm:$0xff]  ;;  %482 = vst.msk [vmem:[#allocation2 + $0xf9] sm:$0xff] %vm416_vm0, %v403_v43  ;;  %483 = vst.msk [vmem:[#allocation2 + $0x109] sm:$0xff] %vm416_vm0, %v404_v44  ;;  %v406_v55 = vmax.f32 %v374_v46, 0.0  ;;  %v339_v56 = vmul.f32 %v2974_v1, %v300_v40  ;;  %v377_v61 = vadd.f32 %v2990_v2, %v338_v50  ;;  %v342_v62 = vmul.f32 %v2974_v1, %v303_v47  ;;  %v3142_v6 = vld [vmem:[#allocation2 + $0x51] sm:$0xff] }
  0x27   : > { %629 = vrot.lane.b32.xlu1 %v3085_v29, %s2869_s8  ;;  %v3115_v53 = vld [vmem:[#allocation2 + $0x39] sm:$0xff]  ;;  %v3117_v54 = vld [vmem:[#allocation2 + $0x61] sm:$0xff]  ;;  %484 = vst.msk [vmem:[#allocation2 + $0x111] sm:$0xff] %vm416_vm0, %v405_v45  ;;  %529 = vst.msk [vmem:[#allocation3 + $0x10] sm:$0xff] %vm416_vm0, %v3111_v51  ;;  %v407_v59 = vmax.f32 %v375_v48, 0.0  ;;  %v379_v0 = vadd.f32 %v2990_v2, %v340_v57  ;;  %v380_v3 = vadd.f32 %v2990_v2, %v341_v58  ;;  %v408_v4 = vmax.f32 %v376_v60, 0.0 }
  0x28   : > { %635 = vrot.lane.b32.xlu0 %v3087_v30, %s2869_s8  ;;  %530 = vst.msk [vmem:[#allocation3 + $0x18] sm:$0xff] %vm416_vm0, %v3113_v52  ;;  %485 = vst.msk [vmem:[#allocation2 + $0x121] sm:$0xff] %vm416_vm0, %v406_v55  ;;  %v378_v63 = vadd.f32 %v2990_v2, %v339_v56  ;;  %v409_v5 = vmax.f32 %v377_v61, 0.0  ;;  %v381_v1 = vadd.f32 %v2990_v2, %v342_v62  ;;  %v3144_v7 = vld [vmem:[#allocation2 + $0x79] sm:$0xff]  ;;  %v3148_v12 = vld [vmem:[#allocation2 + $0x30] sm:$0xff] }
  0x29   : > { %486 = vst.msk [vmem:[#allocation2 + $0x129] sm:$0xff] %vm416_vm0, %v407_v59  ;;  %v411_v9 = vmax.f32 %v379_v0, 0.0  ;;  %v412_v10 = vmax.f32 %v380_v3, 0.0  ;;  %487 = vst.msk [vmem:[#allocation2 + $0x139] sm:$0xff] %vm416_vm0, %v408_v4  ;;  %v3150_v13 = vld [vmem:[#allocation2 + $0x38] sm:$0xff]  ;;  %v3164_v2 = vld [vmem:[#allocation2 + $0x69] sm:$0xff] }
  0x2a   : > { %v410_v8 = vmax.f32 %v378_v63, 0.0  ;;  %488 = vst.msk [vmem:[#allocation2 + $0x141] sm:$0xff] %vm416_vm0, %v409_v5  ;;  %v413_v11 = vmax.f32 %v381_v1, 0.0  ;;  %531 = vst.msk [vmem:[#allocation3 + $0x20] sm:$0xff] %vm416_vm0, %v3148_v12  ;;  %v3166_v14 = vld [vmem:[#allocation2 + $0x91] sm:$0xff]  ;;  %v3172_v15 = vld [vmem:[#allocation2 + $0x48] sm:$0xff] }
  0x2b   : > { %633 = vrot.lane.b32.xlu1 %v3115_v53, %s2869_s8  ;;  %490 = vst.msk [vmem:[#allocation2 + $0x159] sm:$0xff] %vm416_vm0, %v411_v9  ;;  %491 = vst.msk [vmem:[#allocation2 + $0x169] sm:$0xff] %vm416_vm0, %v412_v10  ;;  %v3174_v16 = vld [vmem:[#allocation2 + $0x50] sm:$0xff]  ;;  %v3176_v17 = vld [vmem:[#allocation2 + $0x81] sm:$0xff] }
  0x2c   : > { %639 = vrot.lane.b32.xlu0 %v3117_v54, %s2869_s8  ;;  %489 = vst.msk [vmem:[#allocation2 + $0x151] sm:$0xff] %vm416_vm0, %v410_v8  ;;  %532 = vst.msk [vmem:[#allocation3 + $0x28] sm:$0xff] %vm416_vm0, %v3150_v13  ;;  %v573_v20 = vld [vmem:[#allocation2 + $0xa9] sm:$0xff]  ;;  %v3184_v21 = vld [vmem:[#allocation2 + $0x99] sm:$0xff] }
  0x2d   : > { %492 = vst.msk [vmem:[#allocation2 + $0x171] sm:$0xff] %vm416_vm0, %v413_v11  ;;  %533 = vst.msk [vmem:[#allocation3 + $0x30] sm:$0xff] %vm416_vm0, %v3172_v15  ;;  %v575_v22 = vld [vmem:[#allocation2 + $0xc1] sm:$0xff]  ;;  %v3191_v25 = vld [vmem:[#allocation2 + $0x78] sm:$0xff] }
  0x2e   : > { %534 = vst.msk [vmem:[#allocation3 + $0x38] sm:$0xff] %vm416_vm0, %v3174_v16  ;;  %v3187_v23 = vld [vmem:[#allocation2 + $0x60] sm:$0xff]  ;;  %v3189_v24 = vld [vmem:[#allocation2 + $0x68] sm:$0xff]  ;;  %537 = vst.msk [vmem:[#allocation3 + $0x50] sm:$0xff] %vm416_vm0, %v3191_v25 }
  0x2f   : > { %637 = vrot.lane.b32.xlu1 %v3142_v6, %s2869_s8  ;;  %535 = vst.msk [vmem:[#allocation3 + $0x40] sm:$0xff] %vm416_vm0, %v3187_v23  ;;  %536 = vst.msk [vmem:[#allocation3 + $0x48] sm:$0xff] %vm416_vm0, %v3189_v24  ;;  %v3199_v26 = vld [vmem:[#allocation2 + $0x80] sm:$0xff]  ;;  %v3201_v27 = vld [vmem:[#allocation2 + $0x90] sm:$0xff] }
  0x30   : > { %643 = vrot.lane.b32.xlu0 %v3144_v7, %s2869_s8  ;;  %v3203_v28 = vld [vmem:[#allocation2 + $0x98] sm:$0xff]  ;;  %538 = vst.msk [vmem:[#allocation3 + $0x58] sm:$0xff] %vm416_vm0, %v3199_v26  ;;  %539 = vst.msk [vmem:[#allocation3 + $0x60] sm:$0xff] %vm416_vm0, %v3201_v27  ;;  %v3211_v32 = vld [vmem:[#allocation2 + $0xa8] sm:$0xff] }
  0x31   : > { %v574_v31 = vld [vmem:[#allocation2 + $0xb1] sm:$0xff]  ;;  %540 = vst.msk [vmem:[#allocation3 + $0x68] sm:$0xff] %vm416_vm0, %v3203_v28  ;;  %v3215_v34 = vld [vmem:[#allocation2 + $0xc0] sm:$0xff]  ;;  %541 = vst.msk [vmem:[#allocation3 + $0x70] sm:$0xff] %vm416_vm0, %v3211_v32 }
  0x32   : > { %v3213_v33 = vld [vmem:[#allocation2 + $0xb0] sm:$0xff]  ;;  %543 = vst.msk [vmem:[#allocation3 + $0x80] sm:$0xff] %vm416_vm0, %v3215_v34  ;;  %v3226_v35 = vld [vmem:[#allocation2 + $0xc8] sm:$0xff]  ;;  %v3228_v36 = vld [vmem:[#allocation2 + $0xd8] sm:$0xff] }
  0x33   : > { %641 = vrot.lane.b32.xlu1 %v3164_v2, %s2869_s8  ;;  %542 = vst.msk [vmem:[#allocation3 + $0x78] sm:$0xff] %vm416_vm0, %v3213_v33  ;;  %v3230_v37 = vld [vmem:[#allocation2 + $0xe0] sm:$0xff]  ;;  %544 = vst.msk [vmem:[#allocation3 + $0x88] sm:$0xff] %vm416_vm0, %v3226_v35  ;;  %v3238_v39 = vld [vmem:[#allocation2 + $0xf0] sm:$0xff] }
  0x34   : > { %647 = vrot.lane.b32.xlu0 %v3166_v14, %s2869_s8  ;;  %v577_v38 = vld [vmem:[#allocation2 + $0xd9] sm:$0xff]  ;;  %545 = vst.msk [vmem:[#allocation3 + $0x90] sm:$0xff] %vm416_vm0, %v3228_v36  ;;  %546 = vst.msk [vmem:[#allocation3 + $0x98] sm:$0xff] %vm416_vm0, %v3230_v37  ;;  %v3248_v41 = vld [vmem:[#allocation2 + $0x108] sm:$0xff] }
  0x35   : > { %v3240_v40 = vld [vmem:[#allocation2 + $0xf8] sm:$0xff]  ;;  %547 = vst.msk [vmem:[#allocation3 + $0xa0] sm:$0xff] %vm416_vm0, %v3238_v39  ;;  %v3250_v42 = vld [vmem:[#allocation2 + $0x110] sm:$0xff]  ;;  %549 = vst.msk [vmem:[#allocation3 + $0xb0] sm:$0xff] %vm416_vm0, %v3248_v41 }
  0x36   : > { %548 = vst.msk [vmem:[#allocation3 + $0xa8] sm:$0xff] %vm416_vm0, %v3240_v40  ;;  %v576_v43 = vld [vmem:[#allocation2 + $0xc9] sm:$0xff]  ;;  %v579_v44 = vld [vmem:[#allocation2 + $0xf1] sm:$0xff]  ;;  %550 = vst.msk [vmem:[#allocation3 + $0xb8] sm:$0xff] %vm416_vm0, %v3250_v42 }
  0x37   : > { %645 = vrot.lane.b32.xlu1 %v3176_v17, %s2869_s8  ;;  %v3258_v45 = vld [vmem:[#allocation2 + $0x120] sm:$0xff]  ;;  %v3260_v46 = vld [vmem:[#allocation2 + $0x128] sm:$0xff]  ;;  %v521_v49 = vld [vmem:[#allocation2 + $0x138] sm:$0xff] }
  0x38   : > { %651 = vrot.lane.b32.xlu0 %v573_v20, %s2869_s8  ;;  %v578_v47 = vld [vmem:[#allocation2 + $0xe1] sm:$0xff]  ;;  %v581_v48 = vld [vmem:[#allocation2 + $0x109] sm:$0xff]  ;;  %551 = vst.msk [vmem:[#allocation3 + $0xc0] sm:$0xff] %vm416_vm0, %v3258_v45  ;;  %552 = vst.msk [vmem:[#allocation3 + $0xc8] sm:$0xff] %vm416_vm0, %v3260_v46 }
  0x39   : > { %v522_v50 = vld [vmem:[#allocation2 + $0x140] sm:$0xff]  ;;  %553 = vst.msk [vmem:[#allocation3 + $0xd0] sm:$0xff] %vm416_vm0, %v521_v49  ;;  %v523_v57 = vld [vmem:[#allocation2 + $0x150] sm:$0xff]  ;;  %v524_v58 = vld [vmem:[#allocation2 + $0x158] sm:$0xff] }
  0x3a   : > { %v580_v55 = vld [vmem:[#allocation2 + $0xf9] sm:$0xff]  ;;  %v583_v56 = vld [vmem:[#allocation2 + $0x121] sm:$0xff]  ;;  %554 = vst.msk [vmem:[#allocation3 + $0xd8] sm:$0xff] %vm416_vm0, %v522_v50  ;;  %v582_v59 = vld [vmem:[#allocation2 + $0x111] sm:$0xff] }
  0x3b   : > { %649 = vrot.lane.b32.xlu1 %v3184_v21, %s2869_s8  ;;  %v585_v60 = vld [vmem:[#allocation2 + $0x139] sm:$0xff]  ;;  %555 = vst.msk [vmem:[#allocation3 + $0xe0] sm:$0xff] %vm416_vm0, %v523_v57  ;;  %556 = vst.msk [vmem:[#allocation3 + $0xe8] sm:$0xff] %vm416_vm0, %v524_v58  ;;  %v525_v61 = vld [vmem:[#allocation2 + $0x168] sm:$0xff] }
  0x3c   : > { %655 = vrot.lane.b32.xlu0 %v575_v22, %s2869_s8  ;;  %v526_v62 = vld [vmem:[#allocation2 + $0x170] sm:$0xff]  ;;  %557 = vst.msk [vmem:[#allocation3 + $0xf0] sm:$0xff] %vm416_vm0, %v525_v61  ;;  %v586_v3 = vld [vmem:[#allocation2 + $0x141] sm:$0xff]  ;;  %v588_v5 = vld [vmem:[#allocation2 + $0x159] sm:$0xff] }
  0x3d   : > { %v584_v63 = vld [vmem:[#allocation2 + $0x129] sm:$0xff]  ;;  %v587_v0 = vld [vmem:[#allocation2 + $0x151] sm:$0xff]  ;;  %558 = vst.msk [vmem:[#allocation3 + $0xf8] sm:$0xff] %vm416_vm0, %v526_v62  ;;  %v3284_v9 = vld [vmem:[#allocation2 + $0x1a] sm:$0xff] }
  0x3e   : > { %v589_v4 = vld [vmem:[#allocation2 + $0x169] sm:$0xff]  ;;  %v590_v8 = vld [vmem:[#allocation2 + $0x171] sm:$0xff]  ;;  %v770_v58 = vld [vmem:[#allocation2 + $0xda] sm:$0xff] }
  0x3f   : > { %653 = vrot.lane.b32.xlu1 %v574_v31, %s2869_s8  ;;  %v752_v1 = vld [vmem:[#allocation2 + $0x2] sm:$0xff]  ;;  %v753_v10 = vld [vmem:[#allocation2 + $0xa] sm:$0xff]  ;;  %v3289_v11 = vld [vmem:[#allocation2 + $0x32] sm:$0xff] }
  0x40   : > { %659 = vrot.lane.b32.xlu0 %v577_v38, %s2869_s8  ;;  %v3294_v20 = vld [vmem:[#allocation2 + $0x22] sm:$0xff]  ;;  %v3296_v22 = vld [vmem:[#allocation2 + $0x4a] sm:$0xff]  ;;  %v3302_v31 = vld [vmem:[#allocation2 + $0x3a] sm:$0xff] }
  0x41   : > { %v3304_v38 = vld [vmem:[#allocation2 + $0x62] sm:$0xff]  ;;  %v3328_v50 = vld [vmem:[#allocation2 + $0xaa] sm:$0xff]  ;;  %v3342_v57 = vld [vmem:[#allocation2 + $0xb2] sm:$0xff] }
  0x42   : > { %v3326_v49 = vld [vmem:[#allocation2 + $0x82] sm:$0xff]  ;;  %v774_v62 = vld [vmem:[#allocation2 + $0x10a] sm:$0xff] }
  0x43   : > { %657 = vrot.lane.b32.xlu1 %v576_v43, %s2869_s8  ;;  %v3310_v43 = vld [vmem:[#allocation2 + $0x52] sm:$0xff]  ;;  %v771_v61 = vld [vmem:[#allocation2 + $0xe2] sm:$0xff] }
  0x44   : > { %663 = vrot.lane.b32.xlu0 %v579_v44, %s2869_s8  ;;  %v3312_v44 = vld [vmem:[#allocation2 + $0x7a] sm:$0xff] }
  0x47   : > { %661 = vrot.lane.b32.xlu1 %v578_v47, %s2869_s8  ;;  %v3318_v47 = vld [vmem:[#allocation2 + $0x6a] sm:$0xff] }
  0x48   : > { %667 = vrot.lane.b32.xlu0 %v581_v48, %s2869_s8  ;;  %v3320_v48 = vld [vmem:[#allocation2 + $0x92] sm:$0xff] }
  0x4b   : > { %665 = vrot.lane.b32.xlu1 %v580_v55, %s2869_s8  ;;  %v3334_v55 = vld [vmem:[#allocation2 + $0x9a] sm:$0xff] }
  0x4c   : > { %671 = vrot.lane.b32.xlu0 %v583_v56, %s2869_s8  ;;  %v3336_v56 = vld [vmem:[#allocation2 + $0xc2] sm:$0xff] }
  0x4f   : > { %669 = vrot.lane.b32.xlu1 %v582_v59, %s2869_s8  ;;  %v3347_v59 = vld [vmem:[#allocation2 + $0xca] sm:$0xff] }
  0x50   : > { %675 = vrot.lane.b32.xlu0 %v585_v60, %s2869_s8  ;;  %v772_v60 = vld [vmem:[#allocation2 + $0xf2] sm:$0xff] }
  0x53   : > { %673 = vrot.lane.b32.xlu1 %v584_v63, %s2869_s8  ;;  %v773_v63 = vld [vmem:[#allocation2 + $0xfa] sm:$0xff] }
  0x54   : > { %679 = vrot.lane.b32.xlu0 %v587_v0, %s2869_s8  ;;  %v776_v0 = vld [vmem:[#allocation2 + $0x122] sm:$0xff] }
  0x57   : > { %677 = vrot.lane.b32.xlu1 %v586_v3, %s2869_s8 }
  0x58   : > { %683 = vrot.lane.b32.xlu0 %v589_v4, %s2869_s8  ;;  %v775_v4 = vld [vmem:[#allocation2 + $0x112] sm:$0xff] }
  0x5b   : > { %681 = vrot.lane.b32.xlu1 %v588_v5, %s2869_s8  ;;  %v778_v5 = vld [vmem:[#allocation2 + $0x13a] sm:$0xff] }
  0x5c   : > { %816 = vrot.lane.b32.xlu0 %v752_v1, %s2870_s9 }
  0x5f   : > { %685 = vrot.lane.b32.xlu1 %v590_v8, %s2869_s8  ;;  %v777_v8 = vld [vmem:[#allocation2 + $0x12a] sm:$0xff] }
  0x60   : > { %820 = vrot.lane.b32.xlu0 %v3284_v9, %s2870_s9 }
  0x63   : > { %818 = vrot.lane.b32.xlu1 %v753_v10, %s2870_s9  ;;  %v780_v10 = vld [vmem:[#allocation2 + $0x152] sm:$0xff] }
  0x64   : > { %824 = vrot.lane.b32.xlu0 %v3289_v11, %s2870_s9 }
  0x67   : > { %822 = vrot.lane.b32.xlu1 %v3294_v20, %s2870_s9 }
  0x68   : > { %828 = vrot.lane.b32.xlu0 %v3296_v22, %s2870_s9 }
  0x6b   : > { %826 = vrot.lane.b32.xlu1 %v3302_v31, %s2870_s9 }
  0x6c   : > { %832 = vrot.lane.b32.xlu0 %v3304_v38, %s2870_s9 }
  0x6f   : > { %830 = vrot.lane.b32.xlu1 %v3310_v43, %s2870_s9 }
  0x70   : > { %836 = vrot.lane.b32.xlu0 %v3312_v44, %s2870_s9 }
  0x73   : > { %834 = vrot.lane.b32.xlu1 %v3318_v47, %s2870_s9 }
  0x74   : > { %840 = vrot.lane.b32.xlu0 %v3320_v48, %s2870_s9 }
  0x77   : > { %838 = vrot.lane.b32.xlu1 %v3326_v49, %s2870_s9 }
  0x78   : > { %844 = vrot.lane.b32.xlu0 %v3328_v50, %s2870_s9 }
  0x7b   : > { %842 = vrot.lane.b32.xlu1 %v3334_v55, %s2870_s9 }
  0x7c   : > { %848 = vrot.lane.b32.xlu0 %v3336_v56, %s2870_s9 }
  0x7f   : > { %846 = vrot.lane.b32.xlu1 %v3342_v57, %s2870_s9 }
  0x80   : > { %852 = vrot.lane.b32.xlu0 %v770_v58, %s2870_s9  ;;  %v624_v3 = vpop.permute.xlu0 %623  ;;  %v779_v58 = vld [vmem:[#allocation2 + $0x142] sm:$0xff] }
  0x81   : > { %720 = vst.msk [vmem:[#allocation3] sm:$0xff] %vm719_vm3, %v624_v3 }
  0x83   : > { %850 = vrot.lane.b32.xlu1 %v3347_v59, %s2870_s9 }
  0x84   : > { %856 = vrot.lane.b32.xlu0 %v772_v60, %s2870_s9  ;;  %v782_v60 = vld [vmem:[#allocation2 + $0x16a] sm:$0xff] }
  0x87   : > { %854 = vrot.lane.b32.xlu1 %v771_v61, %s2870_s9 }
  0x88   : > { %860 = vrot.lane.b32.xlu0 %v774_v62, %s2870_s9 }
  0x8b   : > { %858 = vrot.lane.b32.xlu1 %v773_v63, %s2870_s9  ;;  %v781_v63 = vld [vmem:[#allocation2 + $0x15a] sm:$0xff] }
  0x8c   : > { %864 = vrot.lane.b32.xlu0 %v776_v0, %s2870_s9 }
  0x8f   : > { %862 = vrot.lane.b32.xlu1 %v775_v4, %s2870_s9  ;;  %v783_v4 = vld [vmem:[#allocation2 + $0x172] sm:$0xff] }
  0x90   : > { %868 = vrot.lane.b32.xlu0 %v778_v5, %s2870_s9 }
  0x92   : > { %v626_v1 = vpop.permute.xlu0 %625 }
  0x93   : > { %721 = vst.msk [vmem:[#allocation3 + $0x8] sm:$0xff] %vm719_vm3, %v626_v1  ;;  %866 = vrot.lane.b32.xlu1 %v777_v8, %s2870_s9 }
  0x94   : > { %872 = vrot.lane.b32.xlu0 %v780_v10, %s2870_s9 }
  0x95   : > { %v628_v61 = vpop.permute.xlu1 %627 }
  0x96   : > { %v632_v62 = vpop.permute.xlu0 %631  ;;  %722 = vst.msk [vmem:[#allocation3 + $0x10] sm:$0xff] %vm719_vm3, %v628_v61 }
  0x97   : > { %724 = vst.msk [vmem:[#allocation3 + $0x20] sm:$0xff] %vm719_vm3, %v632_v62  ;;  %870 = vrot.lane.b32.xlu1 %v779_v58, %s2870_s9 }
  0x98   : > { %876 = vrot.lane.b32.xlu0 %v782_v60, %s2870_s9 }
  0x99   : > { %v630_v0 = vpop.permute.xlu1 %629 }
  0x9a   : > { %v636_v3 = vpop.permute.xlu0 %635  ;;  %723 = vst.msk [vmem:[#allocation3 + $0x18] sm:$0xff] %vm719_vm3, %v630_v0 }
  0x9b   : > { %726 = vst.msk [vmem:[#allocation3 + $0x30] sm:$0xff] %vm719_vm3, %v636_v3  ;;  %874 = vrot.lane.b32.xlu1 %v781_v63, %s2870_s9 }
  0x9c   : > { %1009 = vrot.lane.b32.xlu0 %v3111_v51, %s2871_s10 }
  0x9d   : > { %v634_v5 = vpop.permute.xlu1 %633 }
  0x9e   : > { %v640_v1 = vpop.permute.xlu0 %639  ;;  %725 = vst.msk [vmem:[#allocation3 + $0x28] sm:$0xff] %vm719_vm3, %v634_v5 }
  0x9f   : > { %728 = vst.msk [vmem:[#allocation3 + $0x40] sm:$0xff] %vm719_vm3, %v640_v1  ;;  %878 = vrot.lane.b32.xlu1 %v783_v4, %s2870_s9 }
  0xa0   : > { %1013 = vrot.lane.b32.xlu0 %v3148_v12, %s2871_s10 }
  0xa1   : > { %v638_v8 = vpop.permute.xlu1 %637 }
  0xa2   : > { %v644_v10 = vpop.permute.xlu0 %643  ;;  %727 = vst.msk [vmem:[#allocation3 + $0x38] sm:$0xff] %vm719_vm3, %v638_v8 }
  0xa3   : > { %730 = vst.msk [vmem:[#allocation3 + $0x50] sm:$0xff] %vm719_vm3, %v644_v10  ;;  %1011 = vrot.lane.b32.xlu1 %v3113_v52, %s2871_s10  ;;  %v2853_v10 = vld [vmem:[%s4095_s3] sm:$0xff]  }
  0xa4   : > { %1017 = vrot.lane.b32.xlu0 %v3172_v15, %s2871_s10  ;;  %2782 = vmatprep.subr.bf16.mxu0 %v2853_v10 }
  0xa5   : > { %v642_v51 = vpop.permute.xlu1 %641  ;;  %2824 = vmatprep.subr.bf16.mxu1 %v2853_v10  ;;  %2783 = vmatpush3.bf16.msra.mxu0 %v2853_v10 }
  0xa6   : > { %v648_v58 = vpop.permute.xlu0 %647  ;;  %729 = vst.msk [vmem:[#allocation3 + $0x48] sm:$0xff] %vm719_vm3, %v642_v51  ;;  %2829 = vmatpush3.bf16.msra.mxu1 %v2853_v10  ;;  %v2854_v51 = vld [vmem:[%s4095_s3 + $0x8] sm:$0xff]  }
  0xa7   : > { %732 = vst.msk [vmem:[#allocation3 + $0x60] sm:$0xff] %vm719_vm3, %v648_v58  ;;  %1015 = vrot.lane.b32.xlu1 %v3150_v13, %s2871_s10  ;;  %2784 = vmatprep.subr.bf16.mxu0 %v2854_v51 }
  0xa8   : > { %1021 = vrot.lane.b32.xlu0 %v3187_v23, %s2871_s10  ;;  %2825 = vmatprep.subr.bf16.mxu1 %v2854_v51 }
  0xa9   : > { %v646_v60 = vpop.permute.xlu1 %645  ;;  %2785 = vmatpush3.bf16.msra.mxu0 %v2854_v51 }
  0xaa   : > { %v652_v61 = vpop.permute.xlu0 %651  ;;  %731 = vst.msk [vmem:[#allocation3 + $0x58] sm:$0xff] %vm719_vm3, %v646_v60  ;;  %2830 = vmatpush3.bf16.msra.mxu1 %v2854_v51  ;;  %v2855_v60 = vld [vmem:[%s4095_s3 + $0x10] sm:$0xff]  }
  0xab   : > { %734 = vst.msk [vmem:[#allocation3 + $0x70] sm:$0xff] %vm719_vm3, %v652_v61  ;;  %1019 = vrot.lane.b32.xlu1 %v3174_v16, %s2871_s10  ;;  %2786 = vmatprep.subr.bf16.mxu0 %v2855_v60  ;;  %v2856_v61 = vld [vmem:[%s4095_s3 + $0x18] sm:$0xff]  }
  0xac   : > { %1025 = vrot.lane.b32.xlu0 %v3191_v25, %s2871_s10  ;;  %2826 = vmatprep.subr.bf16.mxu1 %v2855_v60 }
  0xad   : > { %v650_v52 = vpop.permute.xlu1 %649  ;;  %2787 = vmatpush3.bf16.msra.mxu0 %v2855_v60 }
  0xae   : > { %v656_v62 = vpop.permute.xlu0 %655  ;;  %733 = vst.msk [vmem:[#allocation3 + $0x68] sm:$0xff] %vm719_vm3, %v650_v52  ;;  %2831 = vmatpush3.bf16.msra.mxu1 %v2855_v60  ;;  %2788 = vmatprep.subr.bf16.mxu0 %v2856_v61 }
  0xaf   : > { %736 = vst.msk [vmem:[#allocation3 + $0x80] sm:$0xff] %vm719_vm3, %v656_v62  ;;  %1023 = vrot.lane.b32.xlu1 %v3189_v24, %s2871_s10  ;;  %2827 = vmatprep.subr.bf16.mxu1 %v2856_v61  ;;  %v2857_v62 = vld [vmem:[%s4095_s3 + $0x20] ss:$0 sps:$4 sm:$0xff]  }
  0xb0   : > { %1202 = vrot.lane.b32.xlu0 %v3065_v18, %s2872_s11 }
  0xb1   : > { %v654_v63 = vpop.permute.xlu1 %653  ;;  %2789 = vmatpush3.bf16.msra.mxu0 %v2856_v61 }
  0xb2   : > { %v660_v0 = vpop.permute.xlu0 %659  ;;  %735 = vst.msk [vmem:[#allocation3 + $0x78] sm:$0xff] %vm719_vm3, %v654_v63  ;;  %2832 = vmatpush3.bf16.msra.mxu1 %v2856_v61  ;;  %2834 = vmatprep.subr.msk.bf16.mxu0 %vm2237_vm5, %v2857_v62  ;;  %v1727_v61 = vld [vmem:[#allocation2 + $0x99] sm:$0xff] }
  0xb3   : > { %738 = vst.msk [vmem:[#allocation3 + $0x90] sm:$0xff] %vm719_vm3, %v660_v0  ;;  %1027 = vrot.lane.b32.xlu1 %v3199_v26, %s2871_s10  ;;  %2835 = vmatprep.subr.msk.bf16.mxu1 %vm2237_vm5, %v2857_v62 }
  0xb4   : > { %1206 = vrot.lane.b32.xlu0 %v3067_v19, %s2872_s11 }
  0xb5   : > { %v658_v3 = vpop.permute.xlu1 %657 }
  0xb6   : > { %v664_v4 = vpop.permute.xlu0 %663  ;;  %737 = vst.msk [vmem:[#allocation3 + $0x88] sm:$0xff] %vm719_vm3, %v658_v3 }
  0xb7   : > { %740 = vst.msk [vmem:[#allocation3 + $0xa0] sm:$0xff] %vm719_vm3, %v664_v4  ;;  %1204 = vrot.lane.b32.xlu1 %v3085_v29, %s2872_s11 }
  0xb8   : > { %1395 = vrot.lane.b32.xlu0 %v3284_v9, %s2873_s12 }
  0xb9   : > { %v662_v18 = vpop.permute.xlu1 %661 }
  0xba   : > { %v668_v5 = vpop.permute.xlu0 %667  ;;  %739 = vst.msk [vmem:[#allocation3 + $0x98] sm:$0xff] %vm719_vm3, %v662_v18 }
  0xbb   : > { %742 = vst.msk [vmem:[#allocation3 + $0xb0] sm:$0xff] %vm719_vm3, %v668_v5  ;;  %1208 = vrot.lane.b32.xlu1 %v3115_v53, %s2872_s11 }
  0xbc   : > { %1399 = vrot.lane.b32.xlu0 %v3289_v11, %s2873_s12 }
  0xbd   : > { %v666_v1 = vpop.permute.xlu1 %665 }
  0xbe   : > { %v672_v8 = vpop.permute.xlu0 %671  ;;  %741 = vst.msk [vmem:[#allocation3 + $0xa8] sm:$0xff] %vm719_vm3, %v666_v1 }
  0xbf   : > { %744 = vst.msk [vmem:[#allocation3 + $0xc0] sm:$0xff] %vm719_vm3, %v672_v8  ;;  %1397 = vrot.lane.b32.xlu1 %v3294_v20, %s2873_s12 }
  0xc0   : > { %1589 = vrot.lane.b32.xlu0 %v3148_v12, %s2874_s13 }
  0xc1   : > { %v670_v29 = vpop.permute.xlu1 %669 }
  0xc2   : > { %v676_v9 = vpop.permute.xlu0 %675  ;;  %743 = vst.msk [vmem:[#allocation3 + $0xb8] sm:$0xff] %vm719_vm3, %v670_v29 }
  0xc3   : > { %746 = vst.msk [vmem:[#allocation3 + $0xd0] sm:$0xff] %vm719_vm3, %v676_v9  ;;  %1401 = vrot.lane.b32.xlu1 %v3302_v31, %s2873_s12 }
  0xc4   : > { %1593 = vrot.lane.b32.xlu0 %v3172_v15, %s2874_s13 }
  0xc5   : > { %v674_v20 = vpop.permute.xlu1 %673 }
  0xc6   : > { %v680_v12 = vpop.permute.xlu0 %679  ;;  %745 = vst.msk [vmem:[#allocation3 + $0xc8] sm:$0xff] %vm719_vm3, %v674_v20 }
  0xc7   : > { %748 = vst.msk [vmem:[#allocation3 + $0xe0] sm:$0xff] %vm719_vm3, %v680_v12  ;;  %1591 = vrot.lane.b32.xlu1 %v3150_v13, %s2874_s13 }
  0xc8   : > { %1782 = vrot.lane.b32.xlu0 %v3067_v19, %s2875_s18 }
  0xc9   : > { %v678_v15 = vpop.permute.xlu1 %677 }
  0xca   : > { %v684_v58 = vpop.permute.xlu0 %683  ;;  %747 = vst.msk [vmem:[#allocation3 + $0xd8] sm:$0xff] %vm719_vm3, %v678_v15 }
  0xcb   : > { %750 = vst.msk [vmem:[#allocation3 + $0xf0] sm:$0xff] %vm719_vm3, %v684_v58  ;;  %1595 = vrot.lane.b32.xlu1 %v3174_v16, %s2874_s13 }
  0xcc   : > { %1786 = vrot.lane.b32.xlu0 %v3087_v30, %s2875_s18 }
  0xcd   : > { %v682_v19 = vpop.permute.xlu1 %681 }
  0xce   : > { %v817_v13 = vpop.permute.xlu0 %816  ;;  %749 = vst.msk [vmem:[#allocation3 + $0xe8] sm:$0xff] %vm719_vm3, %v682_v19 }
  0xcf   : > { %913 = vst.msk [vmem:[#allocation3] sm:$0xff] %vm912_vm4, %v817_v13  ;;  %1784 = vrot.lane.b32.xlu1 %v3115_v53, %s2875_s18  ;;  %v2239_v53 = vsel %vm2237_vm5, %v2857_v62, 0 }
  0xd0   : > { %1975 = vrot.lane.b32.xlu0 %v3289_v11, %s2876_s25  ;;  %2791 = vmatpush3.bf16.msra.mxu0 %v2239_v53 }
  0xd1   : > { %v686_v16 = vpop.permute.xlu1 %685  ;;  %2833 = vmatpush3.bf16.msra.mxu1 %v2239_v53 }
  0xd2   : > { %v821_v52 = vpop.permute.xlu0 %820  ;;  %751 = vst.msk [vmem:[#allocation3 + $0xf8] sm:$0xff] %vm719_vm3, %v686_v16 }
  0xd3   : > { %915 = vst.msk [vmem:[#allocation3 + $0x10] sm:$0xff] %vm912_vm4, %v821_v52  ;;  %1788 = vrot.lane.b32.xlu1 %v3142_v6, %s2875_s18 }
  0xd4   : > { %1979 = vrot.lane.b32.xlu0 %v3296_v22, %s2876_s25 }
  0xd5   : > { %v819_v11 = vpop.permute.xlu1 %818 }
  0xd6   : > { %v825_v63 = vpop.permute.xlu0 %824  ;;  %914 = vst.msk [vmem:[#allocation3 + $0x8] sm:$0xff] %vm912_vm4, %v819_v11 }
  0xd7   : > { %917 = vst.msk [vmem:[#allocation3 + $0x20] sm:$0xff] %vm912_vm4, %v825_v63  ;;  %1977 = vrot.lane.b32.xlu1 %v3302_v31, %s2876_s25 }
  0xd8   : > { %1210 = vrot.lane.b32.xlu0 %v3087_v30, %s2872_s11 }
  0xd9   : > { %v823_v0 = vpop.permute.xlu1 %822 }
  0xda   : > { %v829_v3 = vpop.permute.xlu0 %828  ;;  %916 = vst.msk [vmem:[#allocation3 + $0x18] sm:$0xff] %vm912_vm4, %v823_v0 }
  0xdb   : > { %919 = vst.msk [vmem:[#allocation3 + $0x30] sm:$0xff] %vm912_vm4, %v829_v3  ;;  %1981 = vrot.lane.b32.xlu1 %v3310_v43, %s2876_s25 }
  0xdc   : > { %1214 = vrot.lane.b32.xlu0 %v3117_v54, %s2872_s11 }
  0xdd   : > { %v827_v4 = vpop.permute.xlu1 %826 }
  0xde   : > { %v833_v18 = vpop.permute.xlu0 %832  ;;  %918 = vst.msk [vmem:[#allocation3 + $0x28] sm:$0xff] %vm912_vm4, %v827_v4 }
  0xdf   : > { %921 = vst.msk [vmem:[#allocation3 + $0x40] sm:$0xff] %vm912_vm4, %v833_v18  ;;  %1212 = vrot.lane.b32.xlu1 %v3142_v6, %s2872_s11 }
  0xe0   : > { %1403 = vrot.lane.b32.xlu0 %v3296_v22, %s2873_s12 }
  0xe1   : > { %v831_v30 = vpop.permute.xlu1 %830 }
  0xe2   : > { %v837_v31 = vpop.permute.xlu0 %836  ;;  %920 = vst.msk [vmem:[#allocation3 + $0x38] sm:$0xff] %vm912_vm4, %v831_v30 }
  0xe3   : > { %923 = vst.msk [vmem:[#allocation3 + $0x50] sm:$0xff] %vm912_vm4, %v837_v31  ;;  %1216 = vrot.lane.b32.xlu1 %v3164_v2, %s2872_s11 }
  0xe4   : > { %1407 = vrot.lane.b32.xlu0 %v3304_v38, %s2873_s12 }
  0xe5   : > { %v835_v5 = vpop.permute.xlu1 %834 }
  0xe6   : > { %v841_v1 = vpop.permute.xlu0 %840  ;;  %922 = vst.msk [vmem:[#allocation3 + $0x48] sm:$0xff] %vm912_vm4, %v835_v5 }
  0xe7   : > { %925 = vst.msk [vmem:[#allocation3 + $0x60] sm:$0xff] %vm912_vm4, %v841_v1  ;;  %1405 = vrot.lane.b32.xlu1 %v3310_v43, %s2873_s12 }
  0xe8   : > { %1597 = vrot.lane.b32.xlu0 %v3187_v23, %s2874_s13 }
  0xe9   : > { %v839_v6 = vpop.permute.xlu1 %838 }
  0xea   : > { %v845_v22 = vpop.permute.xlu0 %844  ;;  %924 = vst.msk [vmem:[#allocation3 + $0x58] sm:$0xff] %vm912_vm4, %v839_v6 }
  0xeb   : > { %927 = vst.msk [vmem:[#allocation3 + $0x70] sm:$0xff] %vm912_vm4, %v845_v22  ;;  %1409 = vrot.lane.b32.xlu1 %v3318_v47, %s2873_s12 }
  0xec   : > { %1601 = vrot.lane.b32.xlu0 %v3191_v25, %s2874_s13 }
  0xed   : > { %v843_v8 = vpop.permute.xlu1 %842 }
  0xee   : > { %v849_v29 = vpop.permute.xlu0 %848  ;;  %926 = vst.msk [vmem:[#allocation3 + $0x68] sm:$0xff] %vm912_vm4, %v843_v8 }
  0xef   : > { %929 = vst.msk [vmem:[#allocation3 + $0x80] sm:$0xff] %vm912_vm4, %v849_v29  ;;  %1599 = vrot.lane.b32.xlu1 %v3189_v24, %s2874_s13 }
  0xf0   : > { %1790 = vrot.lane.b32.xlu0 %v3117_v54, %s2875_s18 }
  0xf1   : > { %v847_v23 = vpop.permute.xlu1 %846 }
  0xf2   : > { %v853_v43 = vpop.permute.xlu0 %852  ;;  %928 = vst.msk [vmem:[#allocation3 + $0x78] sm:$0xff] %vm912_vm4, %v847_v23 }
  0xf3   : > { %931 = vst.msk [vmem:[#allocation3 + $0x90] sm:$0xff] %vm912_vm4, %v853_v43  ;;  %1603 = vrot.lane.b32.xlu1 %v3199_v26, %s2874_s13  ;;  %v1923_v43 = vld [vmem:[#allocation2 + $0xc2] sm:$0xff] }
  0xf4   : > { %1794 = vrot.lane.b32.xlu0 %v3144_v7, %s2875_s18 }
  0xf5   : > { %v851_v25 = vpop.permute.xlu1 %850 }
  0xf6   : > { %v857_v9 = vpop.permute.xlu0 %856  ;;  %930 = vst.msk [vmem:[#allocation3 + $0x88] sm:$0xff] %vm912_vm4, %v851_v25 }
  0xf7   : > { %933 = vst.msk [vmem:[#allocation3 + $0xa0] sm:$0xff] %vm912_vm4, %v857_v9  ;;  %1792 = vrot.lane.b32.xlu1 %v3164_v2, %s2875_s18 }
  0xf8   : > { %1983 = vrot.lane.b32.xlu0 %v3304_v38, %s2876_s25 }
  0xf9   : > { %v855_v54 = vpop.permute.xlu1 %854 }
  0xfa   : > { %v861_v24 = vpop.permute.xlu0 %860  ;;  %932 = vst.msk [vmem:[#allocation3 + $0x98] sm:$0xff] %vm912_vm4, %v855_v54 }
  0xfb   : > { %935 = vst.msk [vmem:[#allocation3 + $0xb0] sm:$0xff] %vm912_vm4, %v861_v24  ;;  %1796 = vrot.lane.b32.xlu1 %v3176_v17, %s2875_s18 }
  0xfc   : > { %1987 = vrot.lane.b32.xlu0 %v3312_v44, %s2876_s25 }
  0xfd   : > { %v859_v26 = vpop.permute.xlu1 %858 }
  0xfe   : > { %v865_v10 = vpop.permute.xlu0 %864  ;;  %934 = vst.msk [vmem:[#allocation3 + $0xa8] sm:$0xff] %vm912_vm4, %v859_v26  ;;  %v1733_v26 = vld [vmem:[#allocation2 + $0xe1] sm:$0xff] }
  0xff   : > { %937 = vst.msk [vmem:[#allocation3 + $0xc0] sm:$0xff] %vm912_vm4, %v865_v10  ;;  %1985 = vrot.lane.b32.xlu1 %v3318_v47, %s2876_s25  ;;  %v1925_v10 = vld [vmem:[#allocation2 + $0xda] sm:$0xff] }
 0x100   : > { %1029 = vrot.lane.b32.xlu0 %v3201_v27, %s2871_s10 }
 0x101   : > { %v863_v2 = vpop.permute.xlu1 %862 }
 0x102   : > { %v869_v38 = vpop.permute.xlu0 %868  ;;  %936 = vst.msk [vmem:[#allocation3 + $0xb8] sm:$0xff] %vm912_vm4, %v863_v2 }
 0x103   : > { %939 = vst.msk [vmem:[#allocation3 + $0xd0] sm:$0xff] %vm912_vm4, %v869_v38  ;;  %1989 = vrot.lane.b32.xlu1 %v3326_v49, %s2876_s25 }
 0x104   : > { %1218 = vrot.lane.b32.xlu0 %v3144_v7, %s2872_s11 }
 0x105   : > { %v867_v20 = vpop.permute.xlu1 %866 }
 0x106   : > { %v873_v12 = vpop.permute.xlu0 %872  ;;  %938 = vst.msk [vmem:[#allocation3 + $0xc8] sm:$0xff] %vm912_vm4, %v867_v20 }
 0x107   : > { %941 = vst.msk [vmem:[#allocation3 + $0xe0] sm:$0xff] %vm912_vm4, %v873_v12  ;;  %1031 = vrot.lane.b32.xlu1 %v3203_v28, %s2871_s10 }
 0x108   : > { %1222 = vrot.lane.b32.xlu0 %v3166_v14, %s2872_s11 }
 0x109   : > { %v871_v47 = vpop.permute.xlu1 %870 }
 0x10a   : > { %v877_v51 = vpop.permute.xlu0 %876  ;;  %940 = vst.msk [vmem:[#allocation3 + $0xd8] sm:$0xff] %vm912_vm4, %v871_v47  ;;  %v1924_v47 = vld [vmem:[#allocation2 + $0xca] sm:$0xff] }
 0x10b   : > { %943 = vst.msk [vmem:[#allocation3 + $0xf0] sm:$0xff] %vm912_vm4, %v877_v51  ;;  %1220 = vrot.lane.b32.xlu1 %v3176_v17, %s2872_s11 }
 0x10c   : > { %1411 = vrot.lane.b32.xlu0 %v3312_v44, %s2873_s12 }
 0x10d   : > { %v875_v7 = vpop.permute.xlu1 %874 }
 0x10e   : > { %v1010_v15 = vpop.permute.xlu0 %1009  ;;  %942 = vst.msk [vmem:[#allocation3 + $0xe8] sm:$0xff] %vm912_vm4, %v875_v7 }
 0x10f   : > { %1106 = vst.msk [vmem:[#allocation3] sm:$0xff] %vm1105_vm6, %v1010_v15  ;;  %1224 = vrot.lane.b32.xlu1 %v3184_v21, %s2872_s11  ;;  %v1726_v21 = vld [vmem:[#allocation2 + $0x91] sm:$0xff]  ;;  %v1926_v15 = vld [vmem:[#allocation2 + $0xe2] sm:$0xff] }
 0x110   : > { %1415 = vrot.lane.b32.xlu0 %v3320_v48, %s2873_s12 }
 0x111   : > { %v879_v14 = vpop.permute.xlu1 %878 }
 0x112   : > { %v1014_v58 = vpop.permute.xlu0 %1013  ;;  %944 = vst.msk [vmem:[#allocation3 + $0xf8] sm:$0xff] %vm912_vm4, %v879_v14 }
 0x113   : > { %1108 = vst.msk [vmem:[#allocation3 + $0x10] sm:$0xff] %vm1105_vm6, %v1014_v58  ;;  %1413 = vrot.lane.b32.xlu1 %v3326_v49, %s2873_s12 }
 0x114   : > { %1605 = vrot.lane.b32.xlu0 %v3201_v27, %s2874_s13  ;;  %v1728_v27 = vld [vmem:[#allocation2 + $0xa9] sm:$0xff] }
 0x115   : > { %v1012_v17 = vpop.permute.xlu1 %1011 }
 0x116   : > { %v1018_v44 = vpop.permute.xlu0 %1017  ;;  %1107 = vst.msk [vmem:[#allocation3 + $0x8] sm:$0xff] %vm1105_vm6, %v1012_v17 }
 0x117   : > { %1110 = vst.msk [vmem:[#allocation3 + $0x20] sm:$0xff] %vm1105_vm6, %v1018_v44  ;;  %1417 = vrot.lane.b32.xlu1 %v3334_v55, %s2873_s12 }
 0x118   : > { %1609 = vrot.lane.b32.xlu0 %v3211_v32, %s2874_s13 }
 0x119   : > { %v1016_v60 = vpop.permute.xlu1 %1015 }
 0x11a   : > { %v1022_v19 = vpop.permute.xlu0 %1021  ;;  %1109 = vst.msk [vmem:[#allocation3 + $0x18] sm:$0xff] %vm1105_vm6, %v1016_v60 }
 0x11b   : > { %1112 = vst.msk [vmem:[#allocation3 + $0x30] sm:$0xff] %vm1105_vm6, %v1022_v19  ;;  %1607 = vrot.lane.b32.xlu1 %v3203_v28, %s2874_s13  ;;  %v1729_v28 = vld [vmem:[#allocation2 + $0xb1] sm:$0xff] }
 0x11c   : > { %1798 = vrot.lane.b32.xlu0 %v1726_v21, %s2875_s18  ;;  %v304_v19 = vld [vmem:[%s2985_s29 + $0xf0] sm:$0xff] }
 0x11d   : > { %v1020_v49 = vpop.permute.xlu1 %1019 }
 0x11e   : > { %v1026_v13 = vpop.permute.xlu0 %1025  ;;  %1111 = vst.msk [vmem:[#allocation3 + $0x28] sm:$0xff] %vm1105_vm6, %v1020_v49 }
 0x11f   : > { %1114 = vst.msk [vmem:[#allocation3 + $0x40] sm:$0xff] %vm1105_vm6, %v1026_v13  ;;  %1611 = vrot.lane.b32.xlu1 %v3213_v33, %s2874_s13 }
 0x120   : > { %1802 = vrot.lane.b32.xlu0 %v1728_v27, %s2875_s18 }
 0x121   : > { %v1024_v16 = vpop.permute.xlu1 %1023 }
 0x122   : > { %v1203_v52 = vpop.permute.xlu0 %1202  ;;  %1113 = vst.msk [vmem:[#allocation3 + $0x38] sm:$0xff] %vm1105_vm6, %v1024_v16 }
 0x123   : > { %1299 = vst.msk [vmem:[#allocation3] sm:$0xff] %vm1298_vm7, %v1203_v52  ;;  %1800 = vrot.lane.b32.xlu1 %v1727_v61, %s2875_s18  ;;  %v2859_v52 = vld [vmem:[%s4094_s2] ss:$0 sm:$0xff] }
 0x124   : > { %1991 = vrot.lane.b32.xlu0 %v3320_v48, %s2876_s25 }
 0x125   : > { %v1028_v62 = vpop.permute.xlu1 %1027 }
 0x126   : > { %v1207_v53 = vpop.permute.xlu0 %1206  ;;  %1115 = vst.msk [vmem:[#allocation3 + $0x48] sm:$0xff] %vm1105_vm6, %v1028_v62 }
 0x127   : > { %1301 = vst.msk [vmem:[#allocation3 + $0x10] sm:$0xff] %vm1298_vm7, %v1207_v53  ;;  %1804 = vrot.lane.b32.xlu1 %v1729_v28, %s2875_s18  ;;  %v1157_v53 = vld [vmem:[#allocation2 + $0xf9] sm:$0xff] }
 0x128   : > { %1995 = vrot.lane.b32.xlu0 %v3328_v50, %s2876_s25 }
 0x129   : > { %v1205_v11 = vpop.permute.xlu1 %1204 }
 0x12a   : > { %v1396_v63 = vpop.permute.xlu0 %1395  ;;  %1300 = vst.msk [vmem:[#allocation3 + $0x8] sm:$0xff] %vm1298_vm7, %v1205_v11  ;;  %v1349_v11 = vld [vmem:[#allocation2 + $0xf2] sm:$0xff] }
 0x12b   : > { %1492 = vst.msk [vmem:[#allocation3] sm:$0xff] %vm1491_vm8, %v1396_v63  ;;  %1993 = vrot.lane.b32.xlu1 %v3334_v55, %s2876_s25 }
 0x12c   : > { %1033 = vrot.lane.b32.xlu0 %v3211_v32, %s2871_s10  ;;  %v1152_v32 = vld [vmem:[#allocation2 + $0xc1] sm:$0xff] }
 0x12d   : > { %v1209_v48 = vpop.permute.xlu1 %1208 }
 0x12e   : > { %v1400_v0 = vpop.permute.xlu0 %1399  ;;  %1302 = vst.msk [vmem:[#allocation3 + $0x18] sm:$0xff] %vm1298_vm7, %v1209_v48 }
 0x12f   : > { %1494 = vst.msk [vmem:[#allocation3 + $0x10] sm:$0xff] %vm1491_vm8, %v1400_v0  ;;  %1997 = vrot.lane.b32.xlu1 %v3342_v57, %s2876_s25 }
 0x130   : > { %1037 = vrot.lane.b32.xlu0 %v3215_v34, %s2871_s10 }
 0x131   : > { %v1398_v3 = vpop.permute.xlu1 %1397 }
 0x132   : > { %v1590_v4 = vpop.permute.xlu0 %1589  ;;  %1493 = vst.msk [vmem:[#allocation3 + $0x8] sm:$0xff] %vm1491_vm8, %v1398_v3 }
 0x133   : > { %1686 = vst.msk [vmem:[#allocation3] sm:$0xff] %vm1685_vm9, %v1590_v4  ;;  %1035 = vrot.lane.b32.xlu1 %v3213_v33, %s2871_s10  ;;  %v1153_v33 = vld [vmem:[#allocation2 + $0xc9] sm:$0xff] }
 0x134   : > { %1226 = vrot.lane.b32.xlu0 %v1728_v27, %s2872_s11  ;;  %v305_v27 = vld [vmem:[%s2985_s29 + $0xf8] sm:$0xff] }
 0x135   : > { %v1402_v55 = vpop.permute.xlu1 %1401 }
 0x136   : > { %v1594_v18 = vpop.permute.xlu0 %1593  ;;  %1495 = vst.msk [vmem:[#allocation3 + $0x18] sm:$0xff] %vm1491_vm8, %v1402_v55  ;;  %v1350_v55 = vld [vmem:[#allocation2 + $0xfa] sm:$0xff] }
 0x137   : > { %1688 = vst.msk [vmem:[#allocation3 + $0x10] sm:$0xff] %vm1685_vm9, %v1594_v18  ;;  %1039 = vrot.lane.b32.xlu1 %v3226_v35, %s2871_s10 }
 0x138   : > { %1230 = vrot.lane.b32.xlu0 %v1152_v32, %s2872_s11 }
 0x139   : > { %v1592_v30 = vpop.permute.xlu1 %1591 }
 0x13a   : > { %v1783_v31 = vpop.permute.xlu0 %1782  ;;  %1687 = vst.msk [vmem:[#allocation3 + $0x8] sm:$0xff] %vm1685_vm9, %v1592_v30 }
 0x13b   : > { %1879 = vst.msk [vmem:[#allocation3] sm:$0xff] %vm1878_vm10, %v1783_v31  ;;  %1228 = vrot.lane.b32.xlu1 %v1729_v28, %s2872_s11 }
 0x13c   : > { %1419 = vrot.lane.b32.xlu0 %v3328_v50, %s2873_s12 }
 0x13d   : > { %v1596_v5 = vpop.permute.xlu1 %1595 }
 0x13e   : > { %v1787_v1 = vpop.permute.xlu0 %1786  ;;  %1689 = vst.msk [vmem:[#allocation3 + $0x18] sm:$0xff] %vm1685_vm9, %v1596_v5 }
 0x13f   : > { %1881 = vst.msk [vmem:[#allocation3 + $0x10] sm:$0xff] %vm1878_vm10, %v1787_v1  ;;  %1232 = vrot.lane.b32.xlu1 %v1153_v33, %s2872_s11 }
 0x140   : > { %1423 = vrot.lane.b32.xlu0 %v3336_v56, %s2873_s12 }
 0x141   : > { %v1785_v6 = vpop.permute.xlu1 %1784 }
 0x142   : > { %v1976_v22 = vpop.permute.xlu0 %1975  ;;  %1880 = vst.msk [vmem:[#allocation3 + $0x8] sm:$0xff] %vm1878_vm10, %v1785_v6 }
 0x143   : > { %2072 = vst.msk [vmem:[#allocation3] sm:$0xff] %vm2071_vm11, %v1976_v22  ;;  %1421 = vrot.lane.b32.xlu1 %v3342_v57, %s2873_s12  ;;  %v1736_v22 = vld [vmem:[#allocation2 + $0x109] sm:$0xff] }
 0x144   : > { %1613 = vrot.lane.b32.xlu0 %v3215_v34, %s2874_s13  ;;  %v1732_v34 = vld [vmem:[#allocation2 + $0xd9] sm:$0xff] }
 0x145   : > { %v1789_v50 = vpop.permute.xlu1 %1788 }
 0x146   : > { %v1980_v8 = vpop.permute.xlu0 %1979  ;;  %1882 = vst.msk [vmem:[#allocation3 + $0x18] sm:$0xff] %vm1878_vm10, %v1789_v50 }
 0x147   : > { %2074 = vst.msk [vmem:[#allocation3 + $0x10] sm:$0xff] %vm2071_vm11, %v1980_v8  ;;  %1425 = vrot.lane.b32.xlu1 %v3347_v59, %s2873_s12 }
 0x148   : > { %1617 = vrot.lane.b32.xlu0 %v3228_v36, %s2874_s13 }
 0x149   : > { %v1978_v56 = vpop.permute.xlu1 %1977 }
 0x14a   : > { %v1211_v29 = vpop.permute.xlu0 %1210  ;;  %2073 = vst.msk [vmem:[#allocation3 + $0x8] sm:$0xff] %vm2071_vm11, %v1978_v56  ;;  %v2104_v59 = vld [vmem:[#allocation3] sm:$0xff] }
 0x14b   : > { %1303 = vst.msk [vmem:[#allocation3 + $0x20] sm:$0xff] %vm1298_vm7, %v1211_v29  ;;  %1615 = vrot.lane.b32.xlu1 %v3226_v35, %s2874_s13 }
 0x14c   : > { %1806 = vrot.lane.b32.xlu0 %v1152_v32, %s2875_s18 }
 0x14d   : > { %v1982_v57 = vpop.permute.xlu1 %1981 }
 0x14e   : > { %v1215_v23 = vpop.permute.xlu0 %1214  ;;  %2075 = vst.msk [vmem:[#allocation3 + $0x18] sm:$0xff] %vm2071_vm11, %v1982_v57  ;;  %v2106_v24 = vld [vmem:[#allocation3 + $0x10] sm:$0xff]  ;;  %v1737_v57 = vld [vmem:[#allocation2 + $0x111] sm:$0xff] }
 0x14f   : > { %1305 = vst.msk [vmem:[#allocation3 + $0x30] sm:$0xff] %vm1298_vm7, %v1215_v23  ;;  %1619 = vrot.lane.b32.xlu1 %v3230_v37, %s2874_s13  ;;  %v1929_v23 = vld [vmem:[#allocation2 + $0x10a] sm:$0xff] }
 0x150   : > { %1810 = vrot.lane.b32.xlu0 %v1732_v34, %s2875_s18 }
 0x151   : > { %v1213_v25 = vpop.permute.xlu1 %1212  ;;  %v2105_v9 = vld [vmem:[#allocation3 + $0x8] sm:$0xff] }
 0x152   : > { %v1404_v35 = vpop.permute.xlu0 %1403  ;;  %1304 = vst.msk [vmem:[#allocation3 + $0x28] sm:$0xff] %vm1298_vm7, %v1213_v25  ;;  %v2136_v54 = vpack.c.bf16 %v2105_v9, %v2104_v59 }
 0x153   : > { %1496 = vst.msk [vmem:[#allocation3 + $0x20] sm:$0xff] %vm1491_vm8, %v1404_v35  ;;  %1808 = vrot.lane.b32.xlu1 %v1153_v33, %s2875_s18  ;;  %v1930_v35 = vld [vmem:[#allocation2 + $0x112] sm:$0xff] }
 0x154   : > { %1999 = vrot.lane.b32.xlu0 %v1923_v43, %s2876_s25  ;;  %2792 = vmatprep.mubr.msk.bf16.mxu0 %vm2188_vm12, %v2136_v54 }
 0x155   : > { %v1217_v2 = vpop.permute.xlu1 %1216  ;;  %v2107_v38 = vld [vmem:[#allocation3 + $0x18] sm:$0xff] }
 0x156   : > { %v1408_v20 = vpop.permute.xlu0 %1407  ;;  %1306 = vst.msk [vmem:[#allocation3 + $0x38] sm:$0xff] %vm1298_vm7, %v1217_v2  ;;  %v2137_v12 = vpack.c.bf16 %v2107_v38, %v2106_v24 }
 0x157   : > { %1498 = vst.msk [vmem:[#allocation3 + $0x30] sm:$0xff] %vm1491_vm8, %v1408_v20  ;;  %1812 = vrot.lane.b32.xlu1 %v1733_v26, %s2875_s18 }
 0x158   : > { %2003 = vrot.lane.b32.xlu0 %v1925_v10, %s2876_s25  ;;  %2793 = vmatmul.mubr.msk.bf16.vlgmr.msra.gmra.mrb[0].mxu0 %vm2188_vm12, %v2137_v12  ;;  %v1353_v12 = vld [vmem:[#allocation2 + $0x122] sm:$0xff] }
 0x159   : > { %v1406_v51 = vpop.permute.xlu1 %1405 }
 0x15a   : > { %v1598_v7 = vpop.permute.xlu0 %1597  ;;  %1497 = vst.msk [vmem:[#allocation3 + $0x28] sm:$0xff] %vm1491_vm8, %v1406_v51 }
 0x15b   : > { %1690 = vst.msk [vmem:[#allocation3 + $0x20] sm:$0xff] %vm1685_vm9, %v1598_v7  ;;  %2001 = vrot.lane.b32.xlu1 %v1924_v47, %s2876_s25 }
 0x15c   : > { %1041 = vrot.lane.b32.xlu0 %v3228_v36, %s2871_s10  ;;  %v1156_v36 = vld [vmem:[#allocation2 + $0xf1] sm:$0xff] }
 0x15d   : > { %v1410_v14 = vpop.permute.xlu1 %1409 }
 0x15e   : > { %v1602_v58 = vpop.permute.xlu0 %1601  ;;  %1499 = vst.msk [vmem:[#allocation3 + $0x38] sm:$0xff] %vm1491_vm8, %v1410_v14 }
 0x15f   : > { %1692 = vst.msk [vmem:[#allocation3 + $0x30] sm:$0xff] %vm1685_vm9, %v1602_v58  ;;  %2005 = vrot.lane.b32.xlu1 %v1926_v15, %s2876_s25  ;;  %v1354_v58 = vld [vmem:[#allocation2 + $0x12a] sm:$0xff] }
 0x160   : > { %1045 = vrot.lane.b32.xlu0 %v3238_v39, %s2871_s10 }
 0x161   : > { %v1600_v17 = vpop.permute.xlu1 %1599 }
 0x162   : > { %v1791_v44 = vpop.permute.xlu0 %1790  ;;  %1691 = vst.msk [vmem:[#allocation3 + $0x28] sm:$0xff] %vm1685_vm9, %v1600_v17  ;;  %v1547_v17 = vld [vmem:[#allocation2 + $0x138] sm:$0xff] }
 0x163   : > { %1883 = vst.msk [vmem:[#allocation3 + $0x20] sm:$0xff] %vm1878_vm10, %v1791_v44  ;;  %1043 = vrot.lane.b32.xlu1 %v3230_v37, %s2871_s10  ;;  %v2858_v37 = vld [vmem:[%s4093_s1] ss:$0 sm:$0xff] }
 0x164   : > { %1234 = vrot.lane.b32.xlu0 %v1732_v34, %s2872_s11  ;;  %v343_v61 = vmul.f32 %v2858_v37, %v304_v19  ;;  %v344_v16 = vmul.f32 %v2858_v37, %v305_v27  ;;  %v1546_v27 = vld [vmem:[#allocation2 + $0x128] sm:$0xff] }
 0x165   : > { %v1604_v21 = vpop.permute.xlu1 %1603 }
 0x166   : > { %v1795_v60 = vpop.permute.xlu0 %1794  ;;  %1693 = vst.msk [vmem:[#allocation3 + $0x38] sm:$0xff] %vm1685_vm9, %v1604_v21  ;;  %v382_v28 = vadd.f32 %v2859_v52, %v343_v61  ;;  %v383_v62 = vadd.f32 %v2859_v52, %v344_v16  ;;  %v1548_v16 = vld [vmem:[#allocation2 + $0x140] sm:$0xff] }
 0x167   : > { %1885 = vst.msk [vmem:[#allocation3 + $0x30] sm:$0xff] %vm1878_vm10, %v1795_v60  ;;  %1047 = vrot.lane.b32.xlu1 %v3240_v40, %s2871_s10  ;;  %v1740_v52 = vld [vmem:[#allocation2 + $0x139] sm:$0xff] }
 0x168   : > { %1238 = vrot.lane.b32.xlu0 %v1156_v36, %s2872_s11  ;;  %v414_v0 = vmax.f32 %v382_v28, 0.0  ;;  %v415_v3 = vmax.f32 %v383_v62, 0.0 }
 0x169   : > { %v1793_v49 = vpop.permute.xlu1 %1792 }
 0x16a   : > { %v1984_v13 = vpop.permute.xlu0 %1983  ;;  %1884 = vst.msk [vmem:[#allocation3 + $0x28] sm:$0xff] %vm1878_vm10, %v1793_v49 }
 0x16b   : > { %2076 = vst.msk [vmem:[#allocation3 + $0x20] sm:$0xff] %vm2071_vm11, %v1984_v13  ;;  %1236 = vrot.lane.b32.xlu1 %v1733_v26, %s2872_s11 }
 0x16c   : > { %1427 = vrot.lane.b32.xlu0 %v1925_v10, %s2873_s12  ;;  %493 = vst.msk [vmem:[#allocation2 + $0x181] sm:$0xff] %vm416_vm0, %v414_v0  ;;  %494 = vst.msk [vmem:[#allocation2 + $0x189] sm:$0xff] %vm416_vm0, %v415_v3 }
 0x16d   : > { %v1797_v63 = vpop.permute.xlu1 %1796 }
 0x16e   : > { %v1988_v48 = vpop.permute.xlu0 %1987  ;;  %1886 = vst.msk [vmem:[#allocation3 + $0x38] sm:$0xff] %vm1878_vm10, %v1797_v63  ;;  %v1741_v63 = vld [vmem:[#allocation2 + $0x141] sm:$0xff] }
 0x16f   : > { %2078 = vst.msk [vmem:[#allocation3 + $0x30] sm:$0xff] %vm2071_vm11, %v1988_v48  ;;  %1240 = vrot.lane.b32.xlu1 %v1157_v53, %s2872_s11  ;;  %v1933_v48 = vld [vmem:[#allocation2 + $0x13a] sm:$0xff] }
 0x170   : > { %1431 = vrot.lane.b32.xlu0 %v1349_v11, %s2873_s12 }
 0x171   : > { %v1986_v4 = vpop.permute.xlu1 %1985 }
 0x172   : > { %v1030_v32 = vpop.permute.xlu0 %1029  ;;  %2077 = vst.msk [vmem:[#allocation3 + $0x28] sm:$0xff] %vm2071_vm11, %v1986_v4  ;;  %v2108_v31 = vld [vmem:[#allocation3 + $0x20] sm:$0xff] }
 0x173   : > { %1116 = vst.msk [vmem:[#allocation3 + $0x50] sm:$0xff] %vm1105_vm6, %v1030_v32  ;;  %1429 = vrot.lane.b32.xlu1 %v1926_v15, %s2873_s12 }
 0x174   : > { %1621 = vrot.lane.b32.xlu0 %v3238_v39, %s2874_s13 }
 0x175   : > { %v1990_v18 = vpop.permute.xlu1 %1989 }
 0x176   : > { %v1219_v30 = vpop.permute.xlu0 %1218  ;;  %2079 = vst.msk [vmem:[#allocation3 + $0x38] sm:$0xff] %vm2071_vm11, %v1990_v18  ;;  %v2110_v39 = vld [vmem:[#allocation3 + $0x30] sm:$0xff]  ;;  %v971_v18 = vld [vmem:[#allocation2 + $0x150] sm:$0xff] }
 0x177   : > { %1307 = vst.msk [vmem:[#allocation3 + $0x40] sm:$0xff] %vm1298_vm7, %v1219_v30  ;;  %1433 = vrot.lane.b32.xlu1 %v1350_v55, %s2873_s12 }
 0x178   : > { %1625 = vrot.lane.b32.xlu0 %v3248_v41, %s2874_s13 }
 0x179   : > { %v1032_v33 = vpop.permute.xlu1 %1031  ;;  %v2109_v5 = vld [vmem:[#allocation3 + $0x28] sm:$0xff] }
 0x17a   : > { %v1223_v1 = vpop.permute.xlu0 %1222  ;;  %1117 = vst.msk [vmem:[#allocation3 + $0x58] sm:$0xff] %vm1105_vm6, %v1032_v33  ;;  %v2138_v6 = vpack.c.bf16 %v2109_v5, %v2108_v31 }
 0x17b   : > { %1309 = vst.msk [vmem:[#allocation3 + $0x50] sm:$0xff] %vm1298_vm7, %v1223_v1  ;;  %1623 = vrot.lane.b32.xlu1 %v3240_v40, %s2874_s13  ;;  %v972_v1 = vld [vmem:[#allocation2 + $0x158] sm:$0xff] }
 0x17c   : > { %1814 = vrot.lane.b32.xlu0 %v1156_v36, %s2875_s18  ;;  %2796 = vmatprep.mubr.msk.bf16.mxu0 %vm2188_vm12, %v2138_v6  ;;  %v1164_v6 = vld [vmem:[#allocation2 + $0x151] sm:$0xff] }
 0x17d   : > { %v1221_v50 = vpop.permute.xlu1 %1220  ;;  %v2111_v8 = vld [vmem:[#allocation3 + $0x38] sm:$0xff] }
 0x17e   : > { %v1412_v56 = vpop.permute.xlu0 %1411  ;;  %1308 = vst.msk [vmem:[#allocation3 + $0x48] sm:$0xff] %vm1298_vm7, %v1221_v50  ;;  %v2139_v29 = vpack.c.bf16 %v2111_v8, %v2110_v39 }
 0x17f   : > { %1500 = vst.msk [vmem:[#allocation3 + $0x40] sm:$0xff] %vm1491_vm8, %v1412_v56  ;;  %1627 = vrot.lane.b32.xlu1 %v3250_v42, %s2874_s13  ;;  %v1165_v56 = vld [vmem:[#allocation2 + $0x159] sm:$0xff] }
 0x180   : > { %1818 = vrot.lane.b32.xlu0 %v1736_v22, %s2875_s18  ;;  %2797 = vmatmul.mubr.msk.bf16.gmra.mrb[4].mxu0 %vm2188_vm12, %v2139_v29  ;;  %v1357_v29 = vld [vmem:[#allocation2 + $0x152] sm:$0xff] }
 0x181   : > { %v1225_v40 = vpop.permute.xlu1 %1224 }
 0x182   : > { %v1416_v34 = vpop.permute.xlu0 %1415  ;;  %1310 = vst.msk [vmem:[#allocation3 + $0x58] sm:$0xff] %vm1298_vm7, %v1225_v40 }
 0x183   : > { %1502 = vst.msk [vmem:[#allocation3 + $0x50] sm:$0xff] %vm1491_vm8, %v1416_v34  ;;  %1816 = vrot.lane.b32.xlu1 %v1157_v53, %s2875_s18 }
 0x184   : > { %2007 = vrot.lane.b32.xlu0 %v1349_v11, %s2876_s25 }
 0x185   : > { %v1414_v59 = vpop.permute.xlu1 %1413 }
 0x186   : > { %v1606_v43 = vpop.permute.xlu0 %1605  ;;  %1501 = vst.msk [vmem:[#allocation3 + $0x48] sm:$0xff] %vm1491_vm8, %v1414_v59 }
 0x187   : > { %1694 = vst.msk [vmem:[#allocation3 + $0x40] sm:$0xff] %vm1685_vm9, %v1606_v43  ;;  %1820 = vrot.lane.b32.xlu1 %v1737_v57, %s2875_s18  ;;  %v1358_v43 = vld [vmem:[#allocation2 + $0x15a] sm:$0xff] }
 0x188   : > { %2011 = vrot.lane.b32.xlu0 %v1929_v23, %s2876_s25 }
 0x189   : > { %v1418_v25 = vpop.permute.xlu1 %1417 }
 0x18a   : > { %v1610_v9 = vpop.permute.xlu0 %1609  ;;  %1503 = vst.msk [vmem:[#allocation3 + $0x58] sm:$0xff] %vm1491_vm8, %v1418_v25  ;;  %v1551_v25 = vld [vmem:[#allocation2 + $0x168] sm:$0xff] }
 0x18b   : > { %1696 = vst.msk [vmem:[#allocation3 + $0x50] sm:$0xff] %vm1685_vm9, %v1610_v9  ;;  %2009 = vrot.lane.b32.xlu1 %v1350_v55, %s2876_s25  ;;  %v1934_v55 = vld [vmem:[#allocation2 + $0x142] sm:$0xff] }
 0x18c   : > { %1049 = vrot.lane.b32.xlu0 %v3248_v41, %s2871_s10  ;;  %v1160_v41 = vld [vmem:[#allocation2 + $0x121] sm:$0xff] }
 0x18d   : > { %v1608_v54 = vpop.permute.xlu1 %1607 }
 0x18e   : > { %v1799_v24 = vpop.permute.xlu0 %1798  ;;  %1695 = vst.msk [vmem:[#allocation3 + $0x48] sm:$0xff] %vm1685_vm9, %v1608_v54 }
 0x18f   : > { %1887 = vst.msk [vmem:[#allocation3 + $0x40] sm:$0xff] %vm1878_vm10, %v1799_v24  ;;  %2013 = vrot.lane.b32.xlu1 %v1930_v35, %s2876_s25 }
 0x190   : > { %1053 = vrot.lane.b32.xlu0 %v3258_v45, %s2871_s10 }
 0x191   : > { %v1612_v26 = vpop.permute.xlu1 %1611 }
 0x192   : > { %v1803_v10 = vpop.permute.xlu0 %1802  ;;  %1697 = vst.msk [vmem:[#allocation3 + $0x58] sm:$0xff] %vm1685_vm9, %v1612_v26 }
 0x193   : > { %1889 = vst.msk [vmem:[#allocation3 + $0x50] sm:$0xff] %vm1878_vm10, %v1803_v10  ;;  %1051 = vrot.lane.b32.xlu1 %v3250_v42, %s2871_s10  ;;  %v1161_v42 = vld [vmem:[#allocation2 + $0x129] sm:$0xff] }
 0x194   : > { %1242 = vrot.lane.b32.xlu0 %v1736_v22, %s2872_s11 }
 0x195   : > { %v1801_v2 = vpop.permute.xlu1 %1800 }
 0x196   : > { %v1992_v38 = vpop.permute.xlu0 %1991  ;;  %1888 = vst.msk [vmem:[#allocation3 + $0x48] sm:$0xff] %vm1878_vm10, %v1801_v2 }
 0x197   : > { %2080 = vst.msk [vmem:[#allocation3 + $0x40] sm:$0xff] %vm2071_vm11, %v1992_v38  ;;  %1055 = vrot.lane.b32.xlu1 %v3260_v46, %s2871_s10  ;;  %v1545_v46 = vld [vmem:[#allocation2 + $0x120] sm:$0xff] }
 0x198   : > { %1246 = vrot.lane.b32.xlu0 %v1160_v41, %s2872_s11 }
 0x199   : > { %v1805_v45 = vpop.permute.xlu1 %1804 }
 0x19a   : > { %v1996_v20 = vpop.permute.xlu0 %1995  ;;  %1890 = vst.msk [vmem:[#allocation3 + $0x58] sm:$0xff] %vm1878_vm10, %v1805_v45  ;;  %v1552_v45 = vld [vmem:[#allocation2 + $0x170] sm:$0xff] }
 0x19b   : > { %2082 = vst.msk [vmem:[#allocation3 + $0x50] sm:$0xff] %vm2071_vm11, %v1996_v20  ;;  %1244 = vrot.lane.b32.xlu1 %v1737_v57, %s2872_s11  ;;  %v1744_v20 = vld [vmem:[#allocation2 + $0x169] sm:$0xff] }
 0x19c   : > { %1435 = vrot.lane.b32.xlu0 %v1929_v23, %s2873_s12 }
 0x19d   : > { %v1994_v47 = vpop.permute.xlu1 %1993 }
 0x19e   : > { %v1034_v51 = vpop.permute.xlu0 %1033  ;;  %2081 = vst.msk [vmem:[#allocation3 + $0x48] sm:$0xff] %vm2071_vm11, %v1994_v47  ;;  %v2112_v14 = vld [vmem:[#allocation3 + $0x40] sm:$0xff] }
 0x19f   : > { %1118 = vst.msk [vmem:[#allocation3 + $0x60] sm:$0xff] %vm1105_vm6, %v1034_v51  ;;  %1248 = vrot.lane.b32.xlu1 %v1161_v42, %s2872_s11 }
 0x1a0   : > { %1439 = vrot.lane.b32.xlu0 %v1353_v12, %s2873_s12 }
 0x1a1   : > { %v1998_v7 = vpop.permute.xlu1 %1997 }
 0x1a2   : > { %v1038_v15 = vpop.permute.xlu0 %1037  ;;  %2083 = vst.msk [vmem:[#allocation3 + $0x58] sm:$0xff] %vm2071_vm11, %v1998_v7  ;;  %v2114_v19 = vld [vmem:[#allocation3 + $0x50] sm:$0xff]  ;;  %v1937_v7 = vld [vmem:[#allocation2 + $0x16a] sm:$0xff] }
 0x1a3   : > { %1120 = vst.msk [vmem:[#allocation3 + $0x70] sm:$0xff] %vm1105_vm6, %v1038_v15  ;;  %1437 = vrot.lane.b32.xlu1 %v1930_v35, %s2873_s12 }
 0x1a4   : > { %1629 = vrot.lane.b32.xlu0 %v1545_v46, %s2874_s13  ;;  %v1745_v46 = vld [vmem:[#allocation2 + $0x171] sm:$0xff] }
 0x1a5   : > { %v1036_v44 = vpop.permute.xlu1 %1035  ;;  %v2113_v36 = vld [vmem:[#allocation3 + $0x48] sm:$0xff] }
 0x1a6   : > { %v1227_v21 = vpop.permute.xlu0 %1226  ;;  %1119 = vst.msk [vmem:[#allocation3 + $0x68] sm:$0xff] %vm1105_vm6, %v1036_v44  ;;  %v2140_v60 = vpack.c.bf16 %v2113_v36, %v2112_v14  ;;  %v1938_v44 = vld [vmem:[#allocation2 + $0x172] sm:$0xff]  ;;  %v975_v36 = vld [vmem:[#allocation2 + $0x180] sm:$0xff] }
 0x1a7   : > { %1311 = vst.msk [vmem:[#allocation3 + $0x60] sm:$0xff] %vm1298_vm7, %v1227_v21  ;;  %1441 = vrot.lane.b32.xlu1 %v1354_v58, %s2873_s12 }
 0x1a8   : > { %1633 = vrot.lane.b32.xlu0 %v1547_v17, %s2874_s13  ;;  %2800 = vmatprep.mubr.msk.bf16.mxu0 %vm2188_vm12, %v2140_v60 }
 0x1a9   : > { %v1040_v49 = vpop.permute.xlu1 %1039  ;;  %v2115_v13 = vld [vmem:[#allocation3 + $0x58] sm:$0xff] }
 0x1aa   : > { %v1231_v37 = vpop.permute.xlu0 %1230  ;;  %1121 = vst.msk [vmem:[#allocation3 + $0x78] sm:$0xff] %vm1105_vm6, %v1040_v49  ;;  %v2141_v61 = vpack.c.bf16 %v2115_v13, %v2114_v19  ;;  %v976_v49 = vld [vmem:[#allocation2 + $0x188] sm:$0xff] }
 0x1ab   : > { %1313 = vst.msk [vmem:[#allocation3 + $0x70] sm:$0xff] %vm1298_vm7, %v1231_v37  ;;  %1631 = vrot.lane.b32.xlu1 %v1546_v27, %s2874_s13  ;;  %v1168_v13 = vld [vmem:[#allocation2 + $0x181] sm:$0xff] }
 0x1ac   : > { %1822 = vrot.lane.b32.xlu0 %v1160_v41, %s2875_s18  ;;  %2801 = vmatmul.mubr.msk.bf16.gmra.mrb[8].mxu0 %vm2188_vm12, %v2141_v61 }
 0x1ad   : > { %v1229_v28 = vpop.permute.xlu1 %1228 }
 0x1ae   : > { %v1420_v62 = vpop.permute.xlu0 %1419  ;;  %1312 = vst.msk [vmem:[#allocation3 + $0x68] sm:$0xff] %vm1298_vm7, %v1229_v28  ;;  %v1169_v28 = vld [vmem:[#allocation2 + $0x189] sm:$0xff] }
 0x1af   : > { %1504 = vst.msk [vmem:[#allocation3 + $0x60] sm:$0xff] %vm1491_vm8, %v1420_v62  ;;  %1635 = vrot.lane.b32.xlu1 %v1548_v16, %s2874_s13  ;;  %v1361_v62 = vld [vmem:[#allocation2 + $0x182] sm:$0xff] }
 0x1b0   : > { %1826 = vrot.lane.b32.xlu0 %v1740_v52, %s2875_s18 }
 0x1b1   : > { %v1233_v53 = vpop.permute.xlu1 %1232 }
 0x1b2   : > { %v1424_v11 = vpop.permute.xlu0 %1423  ;;  %1314 = vst.msk [vmem:[#allocation3 + $0x78] sm:$0xff] %vm1298_vm7, %v1233_v53 }
 0x1b3   : > { %1506 = vst.msk [vmem:[#allocation3 + $0x70] sm:$0xff] %vm1491_vm8, %v1424_v11  ;;  %1824 = vrot.lane.b32.xlu1 %v1161_v42, %s2875_s18 }
 0x1b4   : > { %2015 = vrot.lane.b32.xlu0 %v1353_v12, %s2876_s25 }
 0x1b5   : > { %v1422_v0 = vpop.permute.xlu1 %1421 }
 0x1b6   : > { %v1614_v3 = vpop.permute.xlu0 %1613  ;;  %1505 = vst.msk [vmem:[#allocation3 + $0x68] sm:$0xff] %vm1491_vm8, %v1422_v0 }
 0x1b7   : > { %1698 = vst.msk [vmem:[#allocation3 + $0x60] sm:$0xff] %vm1685_vm9, %v1614_v3  ;;  %1828 = vrot.lane.b32.xlu1 %v1741_v63, %s2875_s18  ;;  %v1362_v3 = vld [vmem:[#allocation2 + $0x18a] sm:$0xff] }
 0x1b8   : > { %2019 = vrot.lane.b32.xlu0 %v1933_v48, %s2876_s25 }
 0x1b9   : > { %v1426_v4 = vpop.permute.xlu1 %1425 }
 0x1ba   : > { %v1618_v32 = vpop.permute.xlu0 %1617  ;;  %1507 = vst.msk [vmem:[#allocation3 + $0x78] sm:$0xff] %vm1491_vm8, %v1426_v4  ;;  %v1555_v4 = vld [vmem:[#allocation2 + $0x198] sm:$0xff] }
 0x1bb   : > { %1700 = vst.msk [vmem:[#allocation3 + $0x70] sm:$0xff] %vm1685_vm9, %v1618_v32  ;;  %2017 = vrot.lane.b32.xlu1 %v1354_v58, %s2876_s25 }
 0x1bc   : > { %1057 = vrot.lane.b32.xlu0 %v1547_v17, %s2871_s10 }
 0x1bd   : > { %v1616_v30 = vpop.permute.xlu1 %1615 }
 0x1be   : > { %v1807_v31 = vpop.permute.xlu0 %1806  ;;  %1699 = vst.msk [vmem:[#allocation3 + $0x68] sm:$0xff] %vm1685_vm9, %v1616_v30 }
 0x1bf   : > { %1891 = vst.msk [vmem:[#allocation3 + $0x60] sm:$0xff] %vm1878_vm10, %v1807_v31  ;;  %2021 = vrot.lane.b32.xlu1 %v1934_v55, %s2876_s25 }
 0x1c0   : > { %1061 = vrot.lane.b32.xlu0 %v971_v18, %s2871_s10 }
 0x1c1   : > { %v1620_v33 = vpop.permute.xlu1 %1619 }
 0x1c2   : > { %v1811_v5 = vpop.permute.xlu0 %1810  ;;  %1701 = vst.msk [vmem:[#allocation3 + $0x78] sm:$0xff] %vm1685_vm9, %v1620_v33 }
 0x1c3   : > { %1893 = vst.msk [vmem:[#allocation3 + $0x70] sm:$0xff] %vm1878_vm10, %v1811_v5  ;;  %1059 = vrot.lane.b32.xlu1 %v1548_v16, %s2871_s10 }
 0x1c4   : > { %1250 = vrot.lane.b32.xlu0 %v1740_v52, %s2872_s11 }
 0x1c5   : > { %v1809_v39 = vpop.permute.xlu1 %1808 }
 0x1c6   : > { %v2000_v22 = vpop.permute.xlu0 %1999  ;;  %1892 = vst.msk [vmem:[#allocation3 + $0x68] sm:$0xff] %vm1878_vm10, %v1809_v39  ;;  %v1556_v39 = vld [vmem:[#allocation2 + $0x1a0] sm:$0xff] }
 0x1c7   : > { %2084 = vst.msk [vmem:[#allocation3 + $0x60] sm:$0xff] %vm2071_vm11, %v2000_v22  ;;  %1063 = vrot.lane.b32.xlu1 %v972_v1, %s2871_s10  ;;  %v1748_v22 = vld [vmem:[#allocation2 + $0x199] sm:$0xff] }
 0x1c8   : > { %1254 = vrot.lane.b32.xlu0 %v1164_v6, %s2872_s11 }
 0x1c9   : > { %v1813_v50 = vpop.permute.xlu1 %1812 }
 0x1ca   : > { %v2004_v8 = vpop.permute.xlu0 %2003  ;;  %1894 = vst.msk [vmem:[#allocation3 + $0x78] sm:$0xff] %vm1878_vm10, %v1813_v50 }
 0x1cb   : > { %2086 = vst.msk [vmem:[#allocation3 + $0x70] sm:$0xff] %vm2071_vm11, %v2004_v8  ;;  %1252 = vrot.lane.b32.xlu1 %v1741_v63, %s2872_s11 }
 0x1cc   : > { %1443 = vrot.lane.b32.xlu0 %v1933_v48, %s2873_s12 }
 0x1cd   : > { %v2002_v40 = vpop.permute.xlu1 %2001 }
 0x1ce   : > { %v1042_v34 = vpop.permute.xlu0 %1041  ;;  %2085 = vst.msk [vmem:[#allocation3 + $0x68] sm:$0xff] %vm2071_vm11, %v2002_v40  ;;  %v2116_v59 = vld [vmem:[#allocation3 + $0x60] sm:$0xff]  ;;  %v1749_v40 = vld [vmem:[#allocation2 + $0x1a1] sm:$0xff] }
 0x1cf   : > { %1122 = vst.msk [vmem:[#allocation3 + $0x80] sm:$0xff] %vm1105_vm6, %v1042_v34  ;;  %1256 = vrot.lane.b32.xlu1 %v1165_v56, %s2872_s11  ;;  %v1941_v34 = vld [vmem:[#allocation2 + $0x19a] sm:$0xff] }
 0x1d0   : > { %1447 = vrot.lane.b32.xlu0 %v1357_v29, %s2873_s12 }
 0x1d1   : > { %v2006_v57 = vpop.permute.xlu1 %2005 }
 0x1d2   : > { %v1046_v23 = vpop.permute.xlu0 %1045  ;;  %2087 = vst.msk [vmem:[#allocation3 + $0x78] sm:$0xff] %vm2071_vm11, %v2006_v57  ;;  %v2118_v26 = vld [vmem:[#allocation3 + $0x70] sm:$0xff] }
 0x1d3   : > { %1124 = vst.msk [vmem:[#allocation3 + $0x90] sm:$0xff] %vm1105_vm6, %v1046_v23  ;;  %1445 = vrot.lane.b32.xlu1 %v1934_v55, %s2873_s12 }
 0x1d4   : > { %1637 = vrot.lane.b32.xlu0 %v971_v18, %s2874_s13 }
 0x1d5   : > { %v1044_v9 = vpop.permute.xlu1 %1043  ;;  %v2117_v35 = vld [vmem:[#allocation3 + $0x68] sm:$0xff] }
 0x1d6   : > { %v1235_v54 = vpop.permute.xlu0 %1234  ;;  %1123 = vst.msk [vmem:[#allocation3 + $0x88] sm:$0xff] %vm1105_vm6, %v1044_v9  ;;  %v2142_v24 = vpack.c.bf16 %v2117_v35, %v2116_v59 }
 0x1d7   : > { %1315 = vst.msk [vmem:[#allocation3 + $0x80] sm:$0xff] %vm1298_vm7, %v1235_v54  ;;  %1449 = vrot.lane.b32.xlu1 %v1358_v43, %s2873_s12 }
 0x1d8   : > { %1641 = vrot.lane.b32.xlu0 %v1551_v25, %s2874_s13  ;;  %2804 = vmatprep.mubr.msk.bf16.mxu0 %vm2188_vm12, %v2142_v24 }
 0x1d9   : > { %v1048_v10 = vpop.permute.xlu1 %1047  ;;  %v2119_v41 = vld [vmem:[#allocation3 + $0x78] sm:$0xff] }
 0x1da   : > { %v1239_v2 = vpop.permute.xlu0 %1238  ;;  %1125 = vst.msk [vmem:[#allocation3 + $0x98] sm:$0xff] %vm1105_vm6, %v1048_v10  ;;  %v2143_v38 = vpack.c.bf16 %v2119_v41, %v2118_v26 }
 0x1db   : > { %1317 = vst.msk [vmem:[#allocation3 + $0x90] sm:$0xff] %vm1298_vm7, %v1239_v2  ;;  %1639 = vrot.lane.b32.xlu1 %v972_v1, %s2874_s13 }
 0x1dc   : > { %1830 = vrot.lane.b32.xlu0 %v1164_v6, %s2875_s18  ;;  %2805 = vmatmul.mubr.msk.bf16.gmra.mrb[12].mxu0 %vm2188_vm12, %v2143_v38 }
 0x1dd   : > { %v1237_v42 = vpop.permute.xlu1 %1236 }
 0x1de   : > { %v1428_v12 = vpop.permute.xlu0 %1427  ;;  %1316 = vst.msk [vmem:[#allocation3 + $0x88] sm:$0xff] %vm1298_vm7, %v1237_v42 }
 0x1df   : > { %1508 = vst.msk [vmem:[#allocation3 + $0x80] sm:$0xff] %vm1491_vm8, %v1428_v12  ;;  %1643 = vrot.lane.b32.xlu1 %v1552_v45, %s2874_s13 }
 0x1e0   : > { %1834 = vrot.lane.b32.xlu0 %v1744_v20, %s2875_s18 }
 0x1e1   : > { %v1241_v47 = vpop.permute.xlu1 %1240 }
 0x1e2   : > { %v1432_v51 = vpop.permute.xlu0 %1431  ;;  %1318 = vst.msk [vmem:[#allocation3 + $0x98] sm:$0xff] %vm1298_vm7, %v1241_v47 }
 0x1e3   : > { %1510 = vst.msk [vmem:[#allocation3 + $0x90] sm:$0xff] %vm1491_vm8, %v1432_v51  ;;  %1832 = vrot.lane.b32.xlu1 %v1165_v56, %s2875_s18 }
 0x1e4   : > { %2023 = vrot.lane.b32.xlu0 %v1357_v29, %s2876_s25 }
 0x1e5   : > { %v1430_v15 = vpop.permute.xlu1 %1429 }
 0x1e6   : > { %v1622_v14 = vpop.permute.xlu0 %1621  ;;  %1509 = vst.msk [vmem:[#allocation3 + $0x88] sm:$0xff] %vm1491_vm8, %v1430_v15 }
 0x1e7   : > { %1702 = vst.msk [vmem:[#allocation3 + $0x80] sm:$0xff] %vm1685_vm9, %v1622_v14  ;;  %1836 = vrot.lane.b32.xlu1 %v1745_v46, %s2875_s18 }
 0x1e8   : > { %2027 = vrot.lane.b32.xlu0 %v1937_v7, %s2876_s25 }
 0x1e9   : > { %v1434_v58 = vpop.permute.xlu1 %1433 }
 0x1ea   : > { %v1626_v17 = vpop.permute.xlu0 %1625  ;;  %1511 = vst.msk [vmem:[#allocation3 + $0x98] sm:$0xff] %vm1491_vm8, %v1434_v58 }
 0x1eb   : > { %1704 = vst.msk [vmem:[#allocation3 + $0x90] sm:$0xff] %vm1685_vm9, %v1626_v17  ;;  %2025 = vrot.lane.b32.xlu1 %v1358_v43, %s2876_s25 }
 0x1ec   : > { %1065 = vrot.lane.b32.xlu0 %v1551_v25, %s2871_s10  ;;  %v1942_v25 = vld [vmem:[#allocation2 + $0x1a2] sm:$0xff] }
 0x1ed   : > { %v1624_v21 = vpop.permute.xlu1 %1623 }
 0x1ee   : > { %v1815_v60 = vpop.permute.xlu0 %1814  ;;  %1703 = vst.msk [vmem:[#allocation3 + $0x88] sm:$0xff] %vm1685_vm9, %v1624_v21 }
 0x1ef   : > { %1895 = vst.msk [vmem:[#allocation3 + $0x80] sm:$0xff] %vm1878_vm10, %v1815_v60  ;;  %2029 = vrot.lane.b32.xlu1 %v1938_v44, %s2876_s25 }
 0x1f0   : > { %1069 = vrot.lane.b32.xlu0 %v975_v36, %s2871_s10 }
 0x1f1   : > { %v1628_v19 = vpop.permute.xlu1 %1627 }
 0x1f2   : > { %v1819_v27 = vpop.permute.xlu0 %1818  ;;  %1705 = vst.msk [vmem:[#allocation3 + $0x98] sm:$0xff] %vm1685_vm9, %v1628_v19 }
 0x1f3   : > { %1897 = vst.msk [vmem:[#allocation3 + $0x90] sm:$0xff] %vm1878_vm10, %v1819_v27  ;;  %1067 = vrot.lane.b32.xlu1 %v1552_v45, %s2871_s10 }
 0x1f4   : > { %1258 = vrot.lane.b32.xlu0 %v1744_v20, %s2872_s11 }
 0x1f5   : > { %v1817_v37 = vpop.permute.xlu1 %1816 }
 0x1f6   : > { %v2008_v61 = vpop.permute.xlu0 %2007  ;;  %1896 = vst.msk [vmem:[#allocation3 + $0x88] sm:$0xff] %vm1878_vm10, %v1817_v37 }
 0x1f7   : > { %2088 = vst.msk [vmem:[#allocation3 + $0x80] sm:$0xff] %vm2071_vm11, %v2008_v61  ;;  %1071 = vrot.lane.b32.xlu1 %v976_v49, %s2871_s10 }
 0x1f8   : > { %1262 = vrot.lane.b32.xlu0 %v1168_v13, %s2872_s11 }
 0x1f9   : > { %v1821_v16 = vpop.permute.xlu1 %1820 }
 0x1fa   : > { %v2012_v52 = vpop.permute.xlu0 %2011  ;;  %1898 = vst.msk [vmem:[#allocation3 + $0x98] sm:$0xff] %vm1878_vm10, %v1821_v16 }
 0x1fb   : > { %2090 = vst.msk [vmem:[#allocation3 + $0x90] sm:$0xff] %vm2071_vm11, %v2012_v52  ;;  %1260 = vrot.lane.b32.xlu1 %v1745_v46, %s2872_s11 }
 0x1fc   : > { %1451 = vrot.lane.b32.xlu0 %v1937_v7, %s2873_s12 }
 0x1fd   : > { %v2010_v53 = vpop.permute.xlu1 %2009 }
 0x1fe   : > { %v1050_v11 = vpop.permute.xlu0 %1049  ;;  %2089 = vst.msk [vmem:[#allocation3 + $0x88] sm:$0xff] %vm2071_vm11, %v2010_v53  ;;  %v2120_v0 = vld [vmem:[#allocation3 + $0x80] sm:$0xff] }
 0x1ff   : > { %1126 = vst.msk [vmem:[#allocation3 + $0xa0] sm:$0xff] %vm1105_vm6, %v1050_v11  ;;  %1264 = vrot.lane.b32.xlu1 %v1169_v28, %s2872_s11  ;;  %s3892_s11 = scalar_lea.vmem %s4096_s4, %s2759_s26  ;;  %s2732_s26 = sshll.u32 %s4101_s22, 3 }
 0x200   : > { %1455 = vrot.lane.b32.xlu0 %v1361_v62, %s2873_s12  ;;  %s268_s14 = scalar_lea.vmem %s4097_s5, %s2732_s26  ;;  %s272_s17 = scalar_lea.vmem %s4098_s6, %s2732_s26 }
 0x201   : > { %v2014_v63 = vpop.permute.xlu1 %2013 }
 0x202   : > { %v1054_v48 = vpop.permute.xlu0 %1053  ;;  %2091 = vst.msk [vmem:[#allocation3 + $0x98] sm:$0xff] %vm2071_vm11, %v2014_v63  ;;  %v2122_v31 = vld [vmem:[#allocation3 + $0x90] sm:$0xff] }
 0x203   : > { %1128 = vst.msk [vmem:[#allocation3 + $0xb0] sm:$0xff] %vm1105_vm6, %v1054_v48  ;;  %1453 = vrot.lane.b32.xlu1 %v1938_v44, %s2873_s12 }
 0x204   : > { %1645 = vrot.lane.b32.xlu0 %v975_v36, %s2874_s13 }
 0x205   : > { %v1052_v32 = vpop.permute.xlu1 %1051  ;;  %v2121_v55 = vld [vmem:[#allocation3 + $0x88] sm:$0xff] }
 0x206   : > { %v1243_v18 = vpop.permute.xlu0 %1242  ;;  %1127 = vst.msk [vmem:[#allocation3 + $0xa8] sm:$0xff] %vm1105_vm6, %v1052_v32  ;;  %v2144_v30 = vpack.c.bf16 %v2121_v55, %v2120_v0 }
 0x207   : > { %1319 = vst.msk [vmem:[#allocation3 + $0xa0] sm:$0xff] %vm1298_vm7, %v1243_v18  ;;  %1457 = vrot.lane.b32.xlu1 %v1362_v3, %s2873_s12 }
 0x208   : > { %1649 = vrot.lane.b32.xlu0 %v1555_v4, %s2874_s13  ;;  %2808 = vmatprep.mubr.msk.bf16.mxu1 %vm2188_vm12, %v2144_v30 }
 0x209   : > { %v1056_v33 = vpop.permute.xlu1 %1055  ;;  %v2123_v5 = vld [vmem:[#allocation3 + $0x98] sm:$0xff] }
 0x20a   : > { %v1247_v1 = vpop.permute.xlu0 %1246  ;;  %1129 = vst.msk [vmem:[#allocation3 + $0xb8] sm:$0xff] %vm1105_vm6, %v1056_v33  ;;  %v2145_v6 = vpack.c.bf16 %v2123_v5, %v2122_v31 }
 0x20b   : > { %1321 = vst.msk [vmem:[#allocation3 + $0xb0] sm:$0xff] %vm1298_vm7, %v1247_v1  ;;  %1647 = vrot.lane.b32.xlu1 %v976_v49, %s2874_s13 }
 0x20c   : > { %1838 = vrot.lane.b32.xlu0 %v1168_v13, %s2875_s18  ;;  %2809 = vmatmul.mubr.msk.bf16.vlgmr.msra.gmra.mrb[0].mxu1 %vm2188_vm12, %v2145_v6 }
 0x20d   : > { %v1245_v50 = vpop.permute.xlu1 %1244 }
 0x20e   : > { %v1436_v8 = vpop.permute.xlu0 %1435  ;;  %1320 = vst.msk [vmem:[#allocation3 + $0xa8] sm:$0xff] %vm1298_vm7, %v1245_v50 }
 0x20f   : > { %1512 = vst.msk [vmem:[#allocation3 + $0xa0] sm:$0xff] %vm1491_vm8, %v1436_v8  ;;  %1651 = vrot.lane.b32.xlu1 %v1556_v39, %s2874_s13 }
 0x210   : > { %1842 = vrot.lane.b32.xlu0 %v1748_v22, %s2875_s18 }
 0x211   : > { %v1249_v56 = vpop.permute.xlu1 %1248 }
 0x212   : > { %v1440_v29 = vpop.permute.xlu0 %1439  ;;  %1322 = vst.msk [vmem:[#allocation3 + $0xb8] sm:$0xff] %vm1298_vm7, %v1249_v56 }
 0x213   : > { %1514 = vst.msk [vmem:[#allocation3 + $0xb0] sm:$0xff] %vm1491_vm8, %v1440_v29  ;;  %1840 = vrot.lane.b32.xlu1 %v1169_v28, %s2875_s18 }
 0x214   : > { %2031 = vrot.lane.b32.xlu0 %v1361_v62, %s2876_s25 }
 0x215   : > { %v1438_v57 = vpop.permute.xlu1 %1437 }
 0x216   : > { %v1630_v23 = vpop.permute.xlu0 %1629  ;;  %1513 = vst.msk [vmem:[#allocation3 + $0xa8] sm:$0xff] %vm1491_vm8, %v1438_v57 }
 0x217   : > { %1706 = vst.msk [vmem:[#allocation3 + $0xa0] sm:$0xff] %vm1685_vm9, %v1630_v23  ;;  %1844 = vrot.lane.b32.xlu1 %v1749_v40, %s2875_s18 }
 0x218   : > { %2035 = vrot.lane.b32.xlu0 %v1941_v34, %s2876_s25 }
 0x219   : > { %v1442_v59 = vpop.permute.xlu1 %1441 }
 0x21a   : > { %v1634_v43 = vpop.permute.xlu0 %1633  ;;  %1515 = vst.msk [vmem:[#allocation3 + $0xb8] sm:$0xff] %vm1491_vm8, %v1442_v59 }
 0x21b   : > { %1708 = vst.msk [vmem:[#allocation3 + $0xb0] sm:$0xff] %vm1685_vm9, %v1634_v43  ;;  %2033 = vrot.lane.b32.xlu1 %v1362_v3, %s2876_s25 }
 0x21d   : > { %v1632_v9 = vpop.permute.xlu1 %1631 }
 0x21e   : > { %v1823_v35 = vpop.permute.xlu0 %1822  ;;  %1707 = vst.msk [vmem:[#allocation3 + $0xa8] sm:$0xff] %vm1685_vm9, %v1632_v9 }
 0x21f   : > { %1899 = vst.msk [vmem:[#allocation3 + $0xa0] sm:$0xff] %vm1878_vm10, %v1823_v35  ;;  %2037 = vrot.lane.b32.xlu1 %v1942_v25, %s2876_s25 }
 0x221   : > { %v1636_v54 = vpop.permute.xlu1 %1635 }
 0x222   : > { %v1827_v24 = vpop.permute.xlu0 %1826  ;;  %1709 = vst.msk [vmem:[#allocation3 + $0xb8] sm:$0xff] %vm1685_vm9, %v1636_v54 }
 0x223   : > { %1901 = vst.msk [vmem:[#allocation3 + $0xb0] sm:$0xff] %vm1878_vm10, %v1827_v24 }
 0x225   : > { %v1825_v26 = vpop.permute.xlu1 %1824 }
 0x226   : > { %v2016_v10 = vpop.permute.xlu0 %2015  ;;  %1900 = vst.msk [vmem:[#allocation3 + $0xa8] sm:$0xff] %vm1878_vm10, %v1825_v26 }
 0x227   : > { %2092 = vst.msk [vmem:[#allocation3 + $0xa0] sm:$0xff] %vm2071_vm11, %v2016_v10 }
 0x229   : > { %v1829_v41 = vpop.permute.xlu1 %1828 }
 0x22a   : > { %v2020_v2 = vpop.permute.xlu0 %2019  ;;  %1902 = vst.msk [vmem:[#allocation3 + $0xb8] sm:$0xff] %vm1878_vm10, %v1829_v41 }
 0x22b   : > { %2094 = vst.msk [vmem:[#allocation3 + $0xb0] sm:$0xff] %vm2071_vm11, %v2020_v2  ;;  %v2794_v38 = vpop.f32.mrb[0].mxu0 }
 0x22c   : > { %2404 = vst.msk [vmem:[%s3892_s11 + $0x10] sm:$0xff] %vm416_vm0, %v2794_v38  ;;  %v2275_v45 = vpop.f32.mrb[1].mxu0  ;;  %v2506_v46 = vmul.f32 %v2794_v38, %v2794_v38  ;;  %v2437_v17 = vsel %vm416_vm0, %v2794_v38, 0.0 }
 0x22d   : > { %2402 = vst.msk [vmem:[%s3892_s11] sm:$0xff] %vm416_vm0, %v2275_v45  ;;  %v2504_v20 = vmul.f32 %v2275_v45, %v2275_v45  ;;  %v2018_v42 = vpop.permute.xlu1 %2017  ;;  %v2795_v12 = vpop.f32.mrb[2].mxu0  ;;  %v2434_v7 = vsel %vm416_vm0, %v2275_v45, 0.0 }
 0x22e   : > { %2093 = vst.msk [vmem:[#allocation3 + $0xa8] sm:$0xff] %vm2071_vm11, %v2018_v42  ;;  %v2278_v47 = vpop.f32.mrb[3].mxu0  ;;  %v1058_v51 = vpop.permute.xlu0 %1057  ;;  %v2507_v36 = vmul.f32 %v2795_v12, %v2795_v12  ;;  %v2539_v13 = vsel %vm416_vm0, %v2506_v46, 0.0  ;;  %v2439_v37 = vsel %vm416_vm0, %v2795_v12, 0.0  ;;  %v2124_v61 = vld [vmem:[#allocation3 + $0xa0] sm:$0xff] }
 0x22f   : > { %2405 = vst.msk [vmem:[%s3892_s11 + $0x18] sm:$0xff] %vm416_vm0, %v2795_v12  ;;  %2403 = vst.msk [vmem:[%s3892_s11 + $0x8] sm:$0xff] %vm416_vm0, %v2278_v47  ;;  %v2435_v15 = vsel %vm416_vm0, %v2278_v47, 0.0  ;;  %v2505_v14 = vmul.f32 %v2278_v47, %v2278_v47  ;;  %v2536_v44 = vsel %vm416_vm0, %v2504_v20, 0.0 }
 0x230   : > { %1130 = vst.msk [vmem:[#allocation3 + $0xc0] sm:$0xff] %vm1105_vm6, %v1058_v51  ;;  %v2436_v58 = vadd.f32 %v2435_v15, %v2434_v7  ;;  %v2541_v28 = vsel %vm416_vm0, %v2507_v36, 0.0 }
 0x231   : > { %v2537_v21 = vsel %vm416_vm0, %v2505_v14, 0.0  ;;  %v2022_v60 = vpop.permute.xlu1 %2021 }
 0x232   : > { %v2438_v19 = vadd.f32 %v2437_v17, %v2436_v58  ;;  %v2538_v27 = vadd.f32 %v2537_v21, %v2536_v44  ;;  %2095 = vst.msk [vmem:[#allocation3 + $0xb8] sm:$0xff] %vm2071_vm11, %v2022_v60  ;;  %v1062_v49 = vpop.permute.xlu0 %1061  ;;  %v2126_v0 = vld [vmem:[#allocation3 + $0xb0] sm:$0xff] }
 0x233   : > { %1132 = vst.msk [vmem:[#allocation3 + $0xd0] sm:$0xff] %vm1105_vm6, %v1062_v49 }
 0x234   : > { %v2540_v16 = vadd.f32 %v2539_v13, %v2538_v27  ;;  %v2440_v52 = vadd.f32 %v2439_v37, %v2438_v19 }
 0x235   : > { %v1060_v62 = vpop.permute.xlu1 %1059  ;;  %v2125_v53 = vld [vmem:[#allocation3 + $0xa8] sm:$0xff] }
 0x236   : > { %1131 = vst.msk [vmem:[#allocation3 + $0xc8] sm:$0xff] %vm1105_vm6, %v1060_v62  ;;  %v2146_v11 = vpack.c.bf16 %v2125_v53, %v2124_v61  ;;  %v1251_v63 = vpop.permute.xlu0 %1250  ;;  %v2542_v48 = vadd.f32 %v2541_v28, %v2540_v16 }
 0x237   : > { %1323 = vst.msk [vmem:[#allocation3 + $0xc0] sm:$0xff] %vm1298_vm7, %v1251_v63 }
 0x238   : > { %2812 = vmatprep.mubr.msk.bf16.mxu1 %vm2188_vm12, %v2146_v11 }
 0x239   : > { %v1064_v3 = vpop.permute.xlu1 %1063  ;;  %v2127_v4 = vld [vmem:[#allocation3 + $0xb8] sm:$0xff] }
 0x23a   : > { %1133 = vst.msk [vmem:[#allocation3 + $0xd8] sm:$0xff] %vm1105_vm6, %v1064_v3  ;;  %v2147_v32 = vpack.c.bf16 %v2127_v4, %v2126_v0  ;;  %v1255_v55 = vpop.permute.xlu0 %1254 }
 0x23b   : > { %1325 = vst.msk [vmem:[#allocation3 + $0xd0] sm:$0xff] %vm1298_vm7, %v1255_v55 }
 0x23c   : > { %2813 = vmatmul.mubr.msk.bf16.gmra.mrb[4].mxu1 %vm2188_vm12, %v2147_v32 }
 0x23d   : > { %v1253_v18 = vpop.permute.xlu1 %1252 }
 0x23e   : > { %1324 = vst.msk [vmem:[#allocation3 + $0xc8] sm:$0xff] %vm1298_vm7, %v1253_v18  ;;  %v1444_v30 = vpop.permute.xlu0 %1443 }
 0x23f   : > { %1516 = vst.msk [vmem:[#allocation3 + $0xc0] sm:$0xff] %vm1491_vm8, %v1444_v30 }
 0x241   : > { %v1257_v31 = vpop.permute.xlu1 %1256 }
 0x242   : > { %1326 = vst.msk [vmem:[#allocation3 + $0xd8] sm:$0xff] %vm1298_vm7, %v1257_v31  ;;  %v1448_v33 = vpop.permute.xlu0 %1447 }
 0x243   : > { %1518 = vst.msk [vmem:[#allocation3 + $0xd0] sm:$0xff] %vm1491_vm8, %v1448_v33 }
 0x245   : > { %v1446_v5 = vpop.permute.xlu1 %1445 }
 0x246   : > { %1517 = vst.msk [vmem:[#allocation3 + $0xc8] sm:$0xff] %vm1491_vm8, %v1446_v5  ;;  %v1638_v1 = vpop.permute.xlu0 %1637 }
 0x247   : > { %1710 = vst.msk [vmem:[#allocation3 + $0xc0] sm:$0xff] %vm1685_vm9, %v1638_v1 }
 0x249   : > { %v1450_v6 = vpop.permute.xlu1 %1449 }
 0x24a   : > { %1519 = vst.msk [vmem:[#allocation3 + $0xd8] sm:$0xff] %vm1491_vm8, %v1450_v6  ;;  %v1642_v39 = vpop.permute.xlu0 %1641 }
 0x24b   : > { %1712 = vst.msk [vmem:[#allocation3 + $0xd0] sm:$0xff] %vm1685_vm9, %v1642_v39 }
 0x24d   : > { %v1640_v22 = vpop.permute.xlu1 %1639 }
 0x24e   : > { %1711 = vst.msk [vmem:[#allocation3 + $0xc8] sm:$0xff] %vm1685_vm9, %v1640_v22  ;;  %v1831_v50 = vpop.permute.xlu0 %1830 }
 0x24f   : > { %1903 = vst.msk [vmem:[#allocation3 + $0xc0] sm:$0xff] %vm1878_vm10, %v1831_v50 }
 0x251   : > { %v1644_v8 = vpop.permute.xlu1 %1643 }
 0x252   : > { %1713 = vst.msk [vmem:[#allocation3 + $0xd8] sm:$0xff] %vm1685_vm9, %v1644_v8  ;;  %v1835_v56 = vpop.permute.xlu0 %1834 }
 0x253   : > { %v2798_v29 = vpop.f32.mrb[4].mxu0  ;;  %1905 = vst.msk [vmem:[#allocation3 + $0xd0] sm:$0xff] %vm1878_vm10, %v1835_v56 }
 0x254   : > { %2408 = vst.msk [vmem:[%s3892_s11 + $0x30] sm:$0xff] %vm416_vm0, %v2798_v29  ;;  %v2291_v40 = vpop.f32.mrb[5].mxu0  ;;  %v2510_v35 = vmul.f32 %v2798_v29, %v2798_v29  ;;  %v2445_v2 = vsel %vm416_vm0, %v2798_v29, 0.0 }
 0x255   : > { %2406 = vst.msk [vmem:[%s3892_s11 + $0x20] sm:$0xff] %vm416_vm0, %v2291_v40  ;;  %v2441_v34 = vsel %vm416_vm0, %v2291_v40, 0.0  ;;  %v2508_v57 = vmul.f32 %v2291_v40, %v2291_v40  ;;  %v1833_v23 = vpop.permute.xlu1 %1832  ;;  %v2799_v59 = vpop.f32.mrb[6].mxu0 }
 0x256   : > { %v2442_v43 = vadd.f32 %v2441_v34, %v2440_v52  ;;  %1904 = vst.msk [vmem:[#allocation3 + $0xc8] sm:$0xff] %vm1878_vm10, %v1833_v23  ;;  %v2294_v25 = vpop.f32.mrb[7].mxu0  ;;  %v2024_v9 = vpop.permute.xlu0 %2023  ;;  %v2511_v38 = vmul.f32 %v2799_v59, %v2799_v59  ;;  %v2547_v51 = vsel %vm416_vm0, %v2510_v35, 0.0  ;;  %v2447_v46 = vsel %vm416_vm0, %v2799_v59, 0.0 }
 0x257   : > { %2409 = vst.msk [vmem:[%s3892_s11 + $0x38] sm:$0xff] %vm416_vm0, %v2799_v59  ;;  %v2543_v54 = vsel %vm416_vm0, %v2508_v57, 0.0  ;;  %2407 = vst.msk [vmem:[%s3892_s11 + $0x28] sm:$0xff] %vm416_vm0, %v2294_v25  ;;  %v2443_v24 = vsel %vm416_vm0, %v2294_v25, 0.0  ;;  %v2509_v26 = vmul.f32 %v2294_v25, %v2294_v25 }
 0x258   : > { %2096 = vst.msk [vmem:[#allocation3 + $0xc0] sm:$0xff] %vm2071_vm11, %v2024_v9  ;;  %v2544_v10 = vadd.f32 %v2543_v54, %v2542_v48  ;;  %v2444_v41 = vadd.f32 %v2443_v24, %v2442_v43  ;;  %v2549_v14 = vsel %vm416_vm0, %v2511_v38, 0.0 }
 0x259   : > { %v2545_v45 = vsel %vm416_vm0, %v2509_v26, 0.0  ;;  %v1837_v20 = vpop.permute.xlu1 %1836 }
 0x25a   : > { %v2446_v42 = vadd.f32 %v2445_v2, %v2444_v41  ;;  %v2546_v12 = vadd.f32 %v2545_v45, %v2544_v10  ;;  %1906 = vst.msk [vmem:[#allocation3 + $0xd8] sm:$0xff] %vm1878_vm10, %v1837_v20  ;;  %v2028_v47 = vpop.permute.xlu0 %2027 }
 0x25b   : > { %2098 = vst.msk [vmem:[#allocation3 + $0xd0] sm:$0xff] %vm2071_vm11, %v2028_v47 }
 0x25c   : > { %v2548_v7 = vadd.f32 %v2547_v51, %v2546_v12  ;;  %v2448_v15 = vadd.f32 %v2447_v46, %v2446_v42 }
 0x25d   : > { %v2026_v58 = vpop.permute.xlu1 %2025 }
 0x25e   : > { %2097 = vst.msk [vmem:[#allocation3 + $0xc8] sm:$0xff] %vm2071_vm11, %v2026_v58  ;;  %v1066_v17 = vpop.permute.xlu0 %1065  ;;  %v2550_v44 = vadd.f32 %v2549_v14, %v2548_v7 }
 0x25f   : > { %1134 = vst.msk [vmem:[#allocation3 + $0xe0] sm:$0xff] %vm1105_vm6, %v1066_v17  ;;  %v2128_v60 = vld [vmem:[#allocation3 + $0xc0] sm:$0xff] }
 0x261   : > { %v2030_v36 = vpop.permute.xlu1 %2029 }
 0x262   : > { %2099 = vst.msk [vmem:[#allocation3 + $0xd8] sm:$0xff] %vm2071_vm11, %v2030_v36  ;;  %v1070_v21 = vpop.permute.xlu0 %1069  ;;  %v2130_v37 = vld [vmem:[#allocation3 + $0xd0] sm:$0xff] }
 0x263   : > { %1136 = vst.msk [vmem:[#allocation3 + $0xf0] sm:$0xff] %vm1105_vm6, %v1070_v21 }
 0x265   : > { %v1068_v19 = vpop.permute.xlu1 %1067  ;;  %v2129_v27 = vld [vmem:[#allocation3 + $0xc8] sm:$0xff] }
 0x266   : > { %1135 = vst.msk [vmem:[#allocation3 + $0xe8] sm:$0xff] %vm1105_vm6, %v1068_v19  ;;  %v2148_v49 = vpack.c.bf16 %v2129_v27, %v2128_v60  ;;  %v1259_v13 = vpop.permute.xlu0 %1258 }
 0x267   : > { %1327 = vst.msk [vmem:[#allocation3 + $0xe0] sm:$0xff] %vm1298_vm7, %v1259_v13 }
 0x268   : > { %2816 = vmatprep.mubr.msk.bf16.mxu1 %vm2188_vm12, %v2148_v49 }
 0x269   : > { %v1072_v61 = vpop.permute.xlu1 %1071  ;;  %v2131_v16 = vld [vmem:[#allocation3 + $0xd8] sm:$0xff] }
 0x26a   : > { %1137 = vst.msk [vmem:[#allocation3 + $0xf8] sm:$0xff] %vm1105_vm6, %v1072_v61  ;;  %v2149_v52 = vpack.c.bf16 %v2131_v16, %v2130_v37  ;;  %v1263_v28 = vpop.permute.xlu0 %1262 }
 0x26b   : > { %1329 = vst.msk [vmem:[#allocation3 + $0xf0] sm:$0xff] %vm1298_vm7, %v1263_v28 }
 0x26c   : > { %2817 = vmatmul.mubr.msk.bf16.gmra.mrb[8].mxu1 %vm2188_vm12, %v2149_v52 }
 0x26d   : > { %v1261_v62 = vpop.permute.xlu1 %1260 }
 0x26e   : > { %1328 = vst.msk [vmem:[#allocation3 + $0xe8] sm:$0xff] %vm1298_vm7, %v1261_v62  ;;  %v1452_v53 = vpop.permute.xlu0 %1451 }
 0x26f   : > { %1520 = vst.msk [vmem:[#allocation3 + $0xe0] sm:$0xff] %vm1491_vm8, %v1452_v53 }
 0x271   : > { %v1265_v11 = vpop.permute.xlu1 %1264 }
 0x272   : > { %1330 = vst.msk [vmem:[#allocation3 + $0xf8] sm:$0xff] %vm1298_vm7, %v1265_v11  ;;  %v1456_v63 = vpop.permute.xlu0 %1455 }
 0x273   : > { %1522 = vst.msk [vmem:[#allocation3 + $0xf0] sm:$0xff] %vm1491_vm8, %v1456_v63 }
 0x275   : > { %v1454_v48 = vpop.permute.xlu1 %1453 }
 0x276   : > { %1521 = vst.msk [vmem:[#allocation3 + $0xe8] sm:$0xff] %vm1491_vm8, %v1454_v48  ;;  %v1646_v0 = vpop.permute.xlu0 %1645 }
 0x277   : > { %1714 = vst.msk [vmem:[#allocation3 + $0xe0] sm:$0xff] %vm1685_vm9, %v1646_v0 }
 0x279   : > { %v1458_v3 = vpop.permute.xlu1 %1457 }
 0x27a   : > { %1523 = vst.msk [vmem:[#allocation3 + $0xf8] sm:$0xff] %vm1491_vm8, %v1458_v3  ;;  %v1650_v4 = vpop.permute.xlu0 %1649 }
 0x27b   : > { %1716 = vst.msk [vmem:[#allocation3 + $0xf0] sm:$0xff] %vm1685_vm9, %v1650_v4 }
 0x27d   : > { %v1648_v32 = vpop.permute.xlu1 %1647 }
 0x27e   : > { %1715 = vst.msk [vmem:[#allocation3 + $0xe8] sm:$0xff] %vm1685_vm9, %v1648_v32  ;;  %v1839_v55 = vpop.permute.xlu0 %1838 }
 0x27f   : > { %v2802_v18 = vpop.f32.mrb[8].mxu0  ;;  %1907 = vst.msk [vmem:[#allocation3 + $0xe0] sm:$0xff] %vm1878_vm10, %v1839_v55 }
 0x280   : > { %2412 = vst.msk [vmem:[%s3892_s11 + $0x50] sm:$0xff] %vm416_vm0, %v2802_v18  ;;  %v2307_v30 = vpop.f32.mrb[9].mxu0  ;;  %v2514_v50 = vmul.f32 %v2802_v18, %v2802_v18  ;;  %v2453_v57 = vsel %vm416_vm0, %v2802_v18, 0.0 }
 0x281   : > { %2410 = vst.msk [vmem:[%s3892_s11 + $0x40] sm:$0xff] %vm416_vm0, %v2307_v30  ;;  %v2449_v31 = vsel %vm416_vm0, %v2307_v30, 0.0  ;;  %v2512_v33 = vmul.f32 %v2307_v30, %v2307_v30  ;;  %v1652_v5 = vpop.permute.xlu1 %1651  ;;  %v2803_v1 = vpop.f32.mrb[10].mxu0 }
 0x282   : > { %v2450_v6 = vadd.f32 %v2449_v31, %v2448_v15  ;;  %1717 = vst.msk [vmem:[#allocation3 + $0xf8] sm:$0xff] %vm1685_vm9, %v1652_v5  ;;  %v2310_v39 = vpop.f32.mrb[11].mxu0  ;;  %v1843_v22 = vpop.permute.xlu0 %1842  ;;  %v2515_v23 = vmul.f32 %v2803_v1, %v2803_v1  ;;  %v2555_v54 = vsel %vm416_vm0, %v2514_v50, 0.0  ;;  %v2455_v24 = vsel %vm416_vm0, %v2803_v1, 0.0 }
 0x283   : > { %2413 = vst.msk [vmem:[%s3892_s11 + $0x58] sm:$0xff] %vm416_vm0, %v2803_v1  ;;  %v2551_v8 = vsel %vm416_vm0, %v2512_v33, 0.0  ;;  %2411 = vst.msk [vmem:[%s3892_s11 + $0x48] sm:$0xff] %vm416_vm0, %v2310_v39  ;;  %v2451_v56 = vsel %vm416_vm0, %v2310_v39, 0.0  ;;  %v2513_v29 = vmul.f32 %v2310_v39, %v2310_v39 }
 0x284   : > { %1909 = vst.msk [vmem:[#allocation3 + $0xf0] sm:$0xff] %vm1878_vm10, %v1843_v22  ;;  %v2552_v40 = vadd.f32 %v2551_v8, %v2550_v44  ;;  %v2452_v34 = vadd.f32 %v2451_v56, %v2450_v6  ;;  %v2557_v41 = vsel %vm416_vm0, %v2515_v23, 0.0 }
 0x285   : > { %v2553_v59 = vsel %vm416_vm0, %v2513_v29, 0.0  ;;  %v1841_v43 = vpop.permute.xlu1 %1840 }
 0x286   : > { %v2454_v25 = vadd.f32 %v2453_v57, %v2452_v34  ;;  %v2554_v9 = vadd.f32 %v2553_v59, %v2552_v40  ;;  %1908 = vst.msk [vmem:[#allocation3 + $0xe8] sm:$0xff] %vm1878_vm10, %v1841_v43  ;;  %v2032_v35 = vpop.permute.xlu0 %2031 }
 0x287   : > { %2100 = vst.msk [vmem:[#allocation3 + $0xe0] sm:$0xff] %vm2071_vm11, %v2032_v35 }
 0x288   : > { %v2556_v26 = vadd.f32 %v2555_v54, %v2554_v9  ;;  %v2456_v10 = vadd.f32 %v2455_v24, %v2454_v25 }
 0x289   : > { %v1845_v2 = vpop.permute.xlu1 %1844 }
 0x28a   : > { %1910 = vst.msk [vmem:[#allocation3 + $0xf8] sm:$0xff] %vm1878_vm10, %v1845_v2  ;;  %v2036_v38 = vpop.permute.xlu0 %2035  ;;  %v2558_v45 = vadd.f32 %v2557_v41, %v2556_v26 }
 0x28b   : > { %2102 = vst.msk [vmem:[#allocation3 + $0xf0] sm:$0xff] %vm2071_vm11, %v2036_v38 }
 0x28d   : > { %v2034_v20 = vpop.permute.xlu1 %2033 }
 0x28e   : > { %2101 = vst.msk [vmem:[#allocation3 + $0xe8] sm:$0xff] %vm2071_vm11, %v2034_v20  ;;  %v2132_v12 = vld [vmem:[#allocation3 + $0xe0] sm:$0xff] }
 0x291   : > { %v2038_v42 = vpop.permute.xlu1 %2037 }
 0x292   : > { %2103 = vst.msk [vmem:[#allocation3 + $0xf8] sm:$0xff] %vm2071_vm11, %v2038_v42  ;;  %v2134_v46 = vld [vmem:[#allocation3 + $0xf0] sm:$0xff] }
 0x295   : > { %v2133_v47 = vld [vmem:[#allocation3 + $0xe8] sm:$0xff] }
 0x296   : > { %v2150_v51 = vpack.c.bf16 %v2133_v47, %v2132_v12 }
 0x298   : > { %2820 = vmatprep.mubr.msk.bf16.mxu1 %vm2188_vm12, %v2150_v51 }
 0x299   : > { %v2135_v7 = vld [vmem:[#allocation3 + $0xf8] sm:$0xff] }
 0x29a   : > { %v2151_v15 = vpack.c.bf16 %v2135_v7, %v2134_v46 }
 0x29c   : > { %2821 = vmatmul.mubr.msk.bf16.gmra.mrb[12].mxu1 %vm2188_vm12, %v2151_v15 }
 0x2af   : > { %v2806_v14 = vpop.f32.mrb[12].mxu0 }
 0x2b0   : > { %2416 = vst.msk [vmem:[%s3892_s11 + $0x70] sm:$0xff] %vm416_vm0, %v2806_v14  ;;  %v2323_v58 = vpop.f32.mrb[13].mxu0  ;;  %v2518_v19 = vmul.f32 %v2806_v14, %v2806_v14  ;;  %v2461_v16 = vsel %vm416_vm0, %v2806_v14, 0.0 }
 0x2b1   : > { %2414 = vst.msk [vmem:[%s3892_s11 + $0x60] sm:$0xff] %vm416_vm0, %v2323_v58  ;;  %v2457_v17 = vsel %vm416_vm0, %v2323_v58, 0.0  ;;  %v2516_v44 = vmul.f32 %v2323_v58, %v2323_v58  ;;  %v2807_v36 = vpop.f32.mrb[14].mxu0 }
 0x2b2   : > { %v2458_v21 = vadd.f32 %v2457_v17, %v2456_v10  ;;  %2417 = vst.msk [vmem:[%s3892_s11 + $0x78] sm:$0xff] %vm416_vm0, %v2807_v36  ;;  %v2326_v60 = vpop.f32.mrb[15].mxu0  ;;  %v2519_v52 = vmul.f32 %v2807_v36, %v2807_v36  ;;  %v2563_v11 = vsel %vm416_vm0, %v2518_v19, 0.0  ;;  %v2463_v63 = vsel %vm416_vm0, %v2807_v36, 0.0 }
 0x2b3   : > { %v2559_v27 = vsel %vm416_vm0, %v2516_v44, 0.0  ;;  %2415 = vst.msk [vmem:[%s3892_s11 + $0x68] sm:$0xff] %vm416_vm0, %v2326_v60  ;;  %v2459_v49 = vsel %vm416_vm0, %v2326_v60, 0.0  ;;  %v2517_v13 = vmul.f32 %v2326_v60, %v2326_v60 }
 0x2b4   : > { %v2560_v37 = vadd.f32 %v2559_v27, %v2558_v45  ;;  %v2460_v61 = vadd.f32 %v2459_v49, %v2458_v21  ;;  %v2565_v3 = vsel %vm416_vm0, %v2519_v52, 0.0 }
 0x2b5   : > { %v2561_v28 = vsel %vm416_vm0, %v2517_v13, 0.0 }
 0x2b6   : > { %v2462_v62 = vadd.f32 %v2461_v16, %v2460_v61  ;;  %v2562_v53 = vadd.f32 %v2561_v28, %v2560_v37 }
 0x2b8   : > { %v2564_v48 = vadd.f32 %v2563_v11, %v2562_v53  ;;  %v2464_v0 = vadd.f32 %v2463_v63, %v2462_v62 }
 0x2ba   : > { %v2566_v4 = vadd.f32 %v2565_v3, %v2564_v48 }
 0x2df   : > { %v2810_v32 = vpop.f32.mrb[0].mxu1 }
 0x2e0   : > { %2420 = vst.msk [vmem:[%s3892_s11 + $0x90] sm:$0xff] %vm416_vm0, %v2810_v32  ;;  %v2339_v55 = vpop.f32.mrb[1].mxu1  ;;  %v2522_v1 = vmul.f32 %v2810_v32, %v2810_v32  ;;  %v2469_v56 = vsel %vm416_vm0, %v2810_v32, 0.0 }
 0x2e1   : > { %2418 = vst.msk [vmem:[%s3892_s11 + $0x80] sm:$0xff] %vm416_vm0, %v2339_v55  ;;  %v2465_v18 = vsel %vm416_vm0, %v2339_v55, 0.0  ;;  %v2520_v30 = vmul.f32 %v2339_v55, %v2339_v55  ;;  %v2811_v31 = vpop.f32.mrb[2].mxu1 }
 0x2e2   : > { %v2466_v33 = vadd.f32 %v2465_v18, %v2464_v0  ;;  %2421 = vst.msk [vmem:[%s3892_s11 + $0x98] sm:$0xff] %vm416_vm0, %v2811_v31  ;;  %v2342_v5 = vpop.f32.mrb[3].mxu1  ;;  %v2523_v29 = vmul.f32 %v2811_v31, %v2811_v31  ;;  %v2571_v23 = vsel %vm416_vm0, %v2522_v1, 0.0  ;;  %v2471_v59 = vsel %vm416_vm0, %v2811_v31, 0.0 }
 0x2e3   : > { %v2567_v6 = vsel %vm416_vm0, %v2520_v30, 0.0  ;;  %2419 = vst.msk [vmem:[%s3892_s11 + $0x88] sm:$0xff] %vm416_vm0, %v2342_v5  ;;  %v2467_v39 = vsel %vm416_vm0, %v2342_v5, 0.0  ;;  %v2521_v22 = vmul.f32 %v2342_v5, %v2342_v5 }
 0x2e4   : > { %v2568_v50 = vadd.f32 %v2567_v6, %v2566_v4  ;;  %v2468_v8 = vadd.f32 %v2467_v39, %v2466_v33  ;;  %v2573_v9 = vsel %vm416_vm0, %v2523_v29, 0.0 }
 0x2e5   : > { %v2569_v40 = vsel %vm416_vm0, %v2521_v22, 0.0 }
 0x2e6   : > { %v2470_v34 = vadd.f32 %v2469_v56, %v2468_v8  ;;  %v2570_v57 = vadd.f32 %v2569_v40, %v2568_v50 }
 0x2e8   : > { %v2572_v43 = vadd.f32 %v2571_v23, %v2570_v57  ;;  %v2472_v25 = vadd.f32 %v2471_v59, %v2470_v34 }
 0x2ea   : > { %v2574_v35 = vadd.f32 %v2573_v9, %v2572_v43 }
 0x30f   : > { %v2814_v54 = vpop.f32.mrb[4].mxu1 }
 0x310   : > { %2424 = vst.msk [vmem:[%s3892_s11 + $0xb0] sm:$0xff] %vm416_vm0, %v2814_v54  ;;  %v2355_v24 = vpop.f32.mrb[5].mxu1  ;;  %v2526_v45 = vmul.f32 %v2814_v54, %v2814_v54  ;;  %v2477_v46 = vsel %vm416_vm0, %v2814_v54, 0.0 }
 0x311   : > { %2422 = vst.msk [vmem:[%s3892_s11 + $0xa0] sm:$0xff] %vm416_vm0, %v2355_v24  ;;  %v2473_v26 = vsel %vm416_vm0, %v2355_v24, 0.0  ;;  %v2524_v10 = vmul.f32 %v2355_v24, %v2355_v24  ;;  %v2815_v41 = vpop.f32.mrb[6].mxu1 }
 0x312   : > { %v2474_v2 = vadd.f32 %v2473_v26, %v2472_v25  ;;  %2425 = vst.msk [vmem:[%s3892_s11 + $0xb8] sm:$0xff] %vm416_vm0, %v2815_v41  ;;  %v2358_v38 = vpop.f32.mrb[7].mxu1  ;;  %v2527_v7 = vmul.f32 %v2815_v41, %v2815_v41  ;;  %v2579_v17 = vsel %vm416_vm0, %v2526_v45, 0.0  ;;  %v2479_v44 = vsel %vm416_vm0, %v2815_v41, 0.0 }
 0x313   : > { %v2575_v20 = vsel %vm416_vm0, %v2524_v10, 0.0  ;;  %2423 = vst.msk [vmem:[%s3892_s11 + $0xa8] sm:$0xff] %vm416_vm0, %v2358_v38  ;;  %v2475_v42 = vsel %vm416_vm0, %v2358_v38, 0.0  ;;  %v2525_v12 = vmul.f32 %v2358_v38, %v2358_v38 }
 0x314   : > { %v2576_v47 = vadd.f32 %v2575_v20, %v2574_v35  ;;  %v2476_v51 = vadd.f32 %v2475_v42, %v2474_v2  ;;  %v2581_v60 = vsel %vm416_vm0, %v2527_v7, 0.0 }
 0x315   : > { %v2577_v15 = vsel %vm416_vm0, %v2525_v12, 0.0 }
 0x316   : > { %v2478_v14 = vadd.f32 %v2477_v46, %v2476_v51  ;;  %v2578_v58 = vadd.f32 %v2577_v15, %v2576_v47 }
 0x318   : > { %v2580_v36 = vadd.f32 %v2579_v17, %v2578_v58  ;;  %v2480_v21 = vadd.f32 %v2479_v44, %v2478_v14 }
 0x31a   : > { %v2582_v19 = vadd.f32 %v2581_v60, %v2580_v36 }
 0x33f   : > { %v2818_v27 = vpop.f32.mrb[8].mxu1 }
 0x340   : > { %2428 = vst.msk [vmem:[%s3892_s11 + $0xd0] sm:$0xff] %vm416_vm0, %v2818_v27  ;;  %v2371_v49 = vpop.f32.mrb[9].mxu1  ;;  %v2530_v28 = vmul.f32 %v2818_v27, %v2818_v27  ;;  %v2485_v0 = vsel %vm416_vm0, %v2818_v27, 0.0 }
 0x341   : > { %2426 = vst.msk [vmem:[%s3892_s11 + $0xc0] sm:$0xff] %vm416_vm0, %v2371_v49  ;;  %v2481_v13 = vsel %vm416_vm0, %v2371_v49, 0.0  ;;  %v2528_v37 = vmul.f32 %v2371_v49, %v2371_v49  ;;  %v2819_v61 = vpop.f32.mrb[10].mxu1 }
 0x342   : > { %v2482_v16 = vadd.f32 %v2481_v13, %v2480_v21  ;;  %2429 = vst.msk [vmem:[%s3892_s11 + $0xd8] sm:$0xff] %vm416_vm0, %v2819_v61  ;;  %v2374_v52 = vpop.f32.mrb[11].mxu1  ;;  %v2531_v3 = vmul.f32 %v2819_v61, %v2819_v61  ;;  %v2587_v18 = vsel %vm416_vm0, %v2530_v28, 0.0  ;;  %v2487_v30 = vsel %vm416_vm0, %v2819_v61, 0.0 }
 0x343   : > { %v2583_v62 = vsel %vm416_vm0, %v2528_v37, 0.0  ;;  %2427 = vst.msk [vmem:[%s3892_s11 + $0xc8] sm:$0xff] %vm416_vm0, %v2374_v52  ;;  %v2483_v53 = vsel %vm416_vm0, %v2374_v52, 0.0  ;;  %v2529_v11 = vmul.f32 %v2374_v52, %v2374_v52 }
 0x344   : > { %v2584_v63 = vadd.f32 %v2583_v62, %v2582_v19  ;;  %v2484_v48 = vadd.f32 %v2483_v53, %v2482_v16  ;;  %v2589_v5 = vsel %vm416_vm0, %v2531_v3, 0.0 }
 0x345   : > { %v2585_v4 = vsel %vm416_vm0, %v2529_v11, 0.0 }
 0x346   : > { %v2486_v32 = vadd.f32 %v2485_v0, %v2484_v48  ;;  %v2586_v55 = vadd.f32 %v2585_v4, %v2584_v63 }
 0x348   : > { %v2588_v31 = vadd.f32 %v2587_v18, %v2586_v55  ;;  %v2488_v33 = vadd.f32 %v2487_v30, %v2486_v32 }
 0x34a   : > { %v2590_v1 = vadd.f32 %v2589_v5, %v2588_v31 }
 0x36f   : > { %v2822_v6 = vpop.f32.mrb[12].mxu1 }
 0x370   : > { %2432 = vst.msk [vmem:[%s3892_s11 + $0xf0] sm:$0xff] %vm416_vm0, %v2822_v6  ;;  %v2387_v39 = vpop.f32.mrb[13].mxu1  ;;  %v2534_v40 = vmul.f32 %v2822_v6, %v2822_v6  ;;  %v2493_v25 = vsel %vm416_vm0, %v2822_v6, 0.0 }
 0x371   : > { %2430 = vst.msk [vmem:[%s3892_s11 + $0xe0] sm:$0xff] %vm416_vm0, %v2387_v39  ;;  %v2489_v22 = vsel %vm416_vm0, %v2387_v39, 0.0  ;;  %v2532_v50 = vmul.f32 %v2387_v39, %v2387_v39  ;;  %v2823_v8 = vpop.f32.mrb[14].mxu1 }
 0x372   : > { %v2490_v56 = vadd.f32 %v2489_v22, %v2488_v33  ;;  %2433 = vst.msk [vmem:[%s3892_s11 + $0xf8] sm:$0xff] %vm416_vm0, %v2823_v8  ;;  %v2390_v29 = vpop.f32.mrb[15].mxu1  ;;  %v2535_v9 = vmul.f32 %v2823_v8, %v2823_v8  ;;  %v2595_v26 = vsel %vm416_vm0, %v2534_v40, 0.0  ;;  %v2495_v10 = vsel %vm416_vm0, %v2823_v8, 0.0 }
 0x373   : > { %v2591_v34 = vsel %vm416_vm0, %v2532_v50, 0.0  ;;  %2431 = vst.msk [vmem:[%s3892_s11 + $0xe8] sm:$0xff] %vm416_vm0, %v2390_v29  ;;  %v2491_v57 = vsel %vm416_vm0, %v2390_v29, 0.0  ;;  %v2533_v23 = vmul.f32 %v2390_v29, %v2390_v29 }
 0x374   : > { %v2592_v59 = vadd.f32 %v2591_v34, %v2590_v1  ;;  %v2492_v43 = vadd.f32 %v2491_v57, %v2490_v56  ;;  %v2597_v38 = vsel %vm416_vm0, %v2535_v9, 0.0 }
 0x375   : > { %v2593_v35 = vsel %vm416_vm0, %v2533_v23, 0.0 }
 0x376   : > { %v2494_v54 = vadd.f32 %v2493_v25, %v2492_v43  ;;  %v2594_v24 = vadd.f32 %v2593_v35, %v2592_v59 }
 0x378   : > { %v2496_v41 = vadd.f32 %v2495_v10, %v2494_v54  ;;  %v2596_v2 = vadd.f32 %v2595_v26, %v2594_v24 }
 0x37a   : > { %v2497_v45 = vrot.slane %v2496_v41, 4  ;;  %v2598_v20 = vadd.f32 %v2597_v38, %v2596_v2 }
 0x37c   : > { %v2498_v42 = vadd.f32 %v2497_v45, %v2496_v41  ;;  %v2599_v12 = vrot.slane %v2598_v20, 4 }
 0x37e   : > { %v2499_v47 = vrot.slane %v2498_v42, 2  ;;  %v2600_v51 = vadd.f32 %v2599_v12, %v2598_v20 }
 0x380   : > { %v2500_v46 = vadd.f32 %v2499_v47, %v2498_v42  ;;  %v2601_v7 = vrot.slane %v2600_v51, 2 }
 0x382   : > { %v2501_v15 = vrot.slane %v2500_v46, 1  ;;  %v2602_v14 = vadd.f32 %v2601_v7, %v2600_v51 }
 0x384   : > { %v2502_v58 = vadd.f32 %v2501_v15, %v2500_v46  ;;  %v2603_v17 = vrot.slane %v2602_v14, 1 }
 0x386   : > { %2503 = vst.msk [vmem:[%s268_s14] sm:$0xff] %vm416_vm0, %v2502_v58  ;;  %v2604_v44 = vadd.f32 %v2603_v17, %v2602_v14 }
 0x388   : > { %2605 = vst.msk [vmem:[%s272_s17] sm:$0xff] %vm416_vm0, %v2604_v44 }
 0x389 PF: > { %s17_s21 = sadd.s32 1, %s2866_s21  }
 0x38a   : > { %p14_p4 = scmp.ge.s32.totalorder %s17_s21, 4  }
 0x38c   :  { %16 = sbr.rel (!%p14_p4) target bundleno = 1 (0x1), region = 93 }

</bundles_post_ra>
